<compile_context>
chip_gen: v7x
topology: tpu7x:2x2x1
jax: 0.10.0
libtpu: 0.0.40
codegen_flags: <defaults>
</compile_context>

<pallas_src>
import functools

import jax
import jax.numpy as jnp
from jax import lax
from jax.experimental import pallas as pl
from jax.experimental.pallas import tpu as pltpu

# ---- module hyper-parameters (from nn.Conv1d(1, 64, 1000, stride=64)) ----
C_IN = 1
C_OUT = 64
KSIZE = 1000
STRIDE = 64
K_PAD = 1024                  # kernel taps zero-padded to 16 full frames
W_FR = K_PAD // STRIDE        # 16 frames span one receptive field
MAX_TILE = 512                # output positions per grid step


def _round_up(x, m):
    return ((x + m - 1) // m) * m


def _enc_kernel(win_ref, w_ref, b_ref, o_ref, acc_ref, *, tile):
    # win_ref: (tile + W_FR, 64)   frames covering this output tile (row=frame)
    # w_ref:   (W_FR, C_OUT, 64)   w_ref[j, c, r] = weight[c, 0, 64*j + r]
    # b_ref:   (C_OUT, 1)
    # o_ref:   (C_OUT, tile)       lane-dense NCW output block
    # acc_ref: (C_OUT, tile)       f32 scratch accumulator
    acc_ref[...] = jnp.broadcast_to(b_ref[...], acc_ref.shape)
    for j in range(W_FR):                                   # static, unrolled
        # acc[c, t] += sum_r weight[c, 64*j + r] * frames[t + j, r]
        acc_ref[...] += lax.dot_general(
            w_ref[j], win_ref[pl.ds(j, tile), :],
            dimension_numbers=(((1,), (1,)), ((), ())),      # NT contraction
            preferred_element_type=jnp.float32)
    o_ref[...] = jnp.maximum(acc_ref[...], 0.0).astype(o_ref.dtype)


def encoder_forward(x, weight, bias, *, tile=None):
    """x: (N, 1, L) f32; weight: (64, 1, 1000); bias: (64,).

    Returns (N, 64, L_out), L_out = (L - 1000)//64 + 1, matching
    nn.Conv1d(1, 64, 1000, stride=64, padding=0) followed by ReLU."""
    N, cin, L = x.shape
    assert cin == C_IN
    L_out = (L - KSIZE) // STRIDE + 1
    assert L_out >= 1, "input length must be >= kernel_size (1000)"

    if tile is None:
        tile = min(MAX_TILE, _round_up(L_out, 128))
    tile = max(128, _round_up(tile, 128))
    num_tiles = pl.cdiv(L_out, tile)
    l_out_pad = num_tiles * tile

    # ---- glue: frame the signal into 64-sample frames (no 16x im2col) ----
    f_need = l_out_pad + W_FR                            # frames per batch row
    x_pad = jnp.pad(x[:, 0, :], ((0, 0), (0, f_need * STRIDE - L)))
    frames = x_pad.reshape(N, f_need, STRIDE)            # (N, F, 64)

    # per-tile frame windows: (N, num_tiles, tile + W_FR, 64)  (~3% duplication)
    win_idx = (jnp.arange(num_tiles) * tile)[:, None] + \
        jnp.arange(tile + W_FR)[None, :]
    windows = frames[:, win_idx, :]

    # weights (64, 1, 1000) -> (W_FR, C_OUT, 64), taps 1000..1023 zero-padded
    w_pad = jnp.pad(weight[:, 0, :], ((0, 0), (0, K_PAD - KSIZE)))  # (64, 1024)
    w_stack = jnp.transpose(w_pad.reshape(C_OUT, W_FR, STRIDE), (1, 0, 2))
    b2 = bias.reshape(C_OUT, 1).astype(jnp.float32)

    kernel = functools.partial(_enc_kernel, tile=tile)
    out = pl.pallas_call(
        kernel,
        out_shape=jax.ShapeDtypeStruct((N, C_OUT, l_out_pad), jnp.float32),
        grid_spec=pltpu.PrefetchScalarGridSpec(
            num_scalar_prefetch=0,
            grid=(N, num_tiles),
            in_specs=[
                # frame window for (batch n, tile t); leading dims squeezed
                pl.BlockSpec((None, None, tile + W_FR, STRIDE),
                             lambda n, t: (n, t, 0, 0)),
                # weights + bias: constant block index -> resident in VMEM
                pl.BlockSpec((W_FR, C_OUT, STRIDE), lambda n, t: (0, 0, 0)),
                pl.BlockSpec((C_OUT, 1), lambda n, t: (0, 0)),
            ],
            out_specs=pl.BlockSpec((None, C_OUT, tile), lambda n, t: (n, 0, t)),
            scratch_shapes=[pltpu.VMEM((C_OUT, tile), jnp.float32)],
        ),
        compiler_params=pltpu.CompilerParams(
            dimension_semantics=("parallel", "parallel")),
    )(windows, w_stack, b2)

    # already in NCW layout; just drop the padded output positions
    return out[:, :, :L_out]


def _reference_forward(x, weight, bias):
    # plain-JAX reference: lax conv (NCW) + ReLU
    y = jax.lax.conv_general_dilated(
        x, weight, window_strides=(STRIDE,), padding="VALID",
        dimension_numbers=("NCH", "OIH", "NCH"))
    return jnp.maximum(y + bias[None, :, None], 0.0)


if __name__ == "__main__":
    key = jax.random.PRNGKey(0)
    k_x, k_w, k_b = jax.random.split(key, 3)

    # small but representative: L_out = 1100 -> 3 grid tiles of 512 per batch
    N = 2
    L_OUT = 1100
    L = KSIZE + STRIDE * (L_OUT - 1)
    x = jax.random.normal(k_x, (N, C_IN, L), dtype=jnp.float32)

    # deterministic synthetic parameters (shapes from nn.Conv1d(1, 64, 1000))
    fan_in = C_IN * KSIZE
    weight = jax.random.normal(k_w, (C_OUT, C_IN, KSIZE),
                               dtype=jnp.float32) / jnp.sqrt(fan_in)
    bias = jax.random.normal(k_b, (C_OUT,), dtype=jnp.float32) * 0.01

    y = jax.block_until_ready(encoder_forward(x, weight, bias))
    y_ref = jax.block_until_ready(_reference_forward(x, weight, bias))

    assert y.shape == (N, C_OUT, L_OUT), y.shape
    assert jnp.allclose(y, y_ref, atol=1e-4, rtol=1e-4), "mismatch vs reference"

    print("KERNEL_OK")
</pallas_src>

<mosaic_0001>
module attributes {stable_mosaic.version = 11 : i64} {
  func.func @_enc_kernel(%arg0: i32, %arg1: i32, %arg2: memref<1x1x528x64xf32, #tpu.memory_space<vmem>>, %arg3: memref<16x64x64xf32, #tpu.memory_space<vmem>>, %arg4: memref<64x1xf32, #tpu.memory_space<vmem>>, %arg5: memref<1x64x512xf32, #tpu.memory_space<vmem>>, %arg6: memref<64x512xf32, #tpu.memory_space<vmem>>) attributes {dimension_semantics = [#tpu.dimension_semantics<parallel>, #tpu.dimension_semantics<parallel>], iteration_bounds = array<i64: 2, 3>, scalar_prefetch = 0 : i64, scratch_operands = 1 : i64, tpu.core_type = #tpu.core_type<tc>, window_params = [{transform_indices = @transform_0, window_bounds = array<i64: 1, 1, 528, 64>}, {pipeline_mode = #tpu.pipeline_mode<synchronous>, transform_indices = @transform_1, window_bounds = array<i64: 16, 64, 64>}, {pipeline_mode = #tpu.pipeline_mode<synchronous>, transform_indices = @transform_2, window_bounds = array<i64: 64, 1>}, {transform_indices = @transform_3, window_bounds = array<i64: 1, 64, 512>}]} {
    %c0 = arith.constant 0 : index
    %c0_0 = arith.constant 0 : index
    %0 = vector.load %arg4[%c0, %c0_0] : memref<64x1xf32, #tpu.memory_space<vmem>>, vector<64x1xf32>
    %1 = vector.shape_cast %0 : vector<64x1xf32> to vector<64x1xf32>
    %2 = vector.broadcast %1 : vector<64x1xf32> to vector<64x512xf32>
    %c0_1 = arith.constant 0 : index
    %c0_2 = arith.constant 0 : index
    %3 = vector.load %arg6[%c0_1, %c0_2] : memref<64x512xf32, #tpu.memory_space<vmem>>, vector<64x512xf32>
    tpu.vector_store %arg6[%c0_1, %c0_2], %2 {strides = array<i32>} : memref<64x512xf32, #tpu.memory_space<vmem>>, vector<64x512xf32>,
    %c0_3 = arith.constant 0 : index
    %c0_4 = arith.constant 0 : index
    %4 = vector.load %arg6[%c0_3, %c0_4] : memref<64x512xf32, #tpu.memory_space<vmem>>, vector<64x512xf32>
    %c0_5 = arith.constant 0 : index
    %c0_6 = arith.constant 0 : index
    %c0_7 = arith.constant 0 : index
    %5 = vector.load %arg3[%c0_5, %c0_6, %c0_7] : memref<16x64x64xf32, #tpu.memory_space<vmem>>, vector<1x64x64xf32>
    %6 = vector.shape_cast %5 : vector<1x64x64xf32> to vector<64x64xf32>
    %c0_8 = arith.constant 0 : index
    %c0_9 = arith.constant 0 : index
    %c0_10 = arith.constant 0 : index
    %c0_11 = arith.constant 0 : index
    %7 = vector.load %arg2[%c0_8, %c0_9, %c0_10, %c0_11] : memref<1x1x528x64xf32, #tpu.memory_space<vmem>>, vector<1x1x512x64xf32>
    %8 = vector.shape_cast %7 : vector<1x1x512x64xf32> to vector<512x64xf32>
    %cst = arith.constant dense<0.000000e+00> : vector<64x512xf32>
    %9 = tpu.matmul %6, %8, %cst {dimension_numbers = #tpu.dot_dimension_numbers<[1], [1], [0], [0], [0, 0, 1, 0], [], []>} : vector<64x64xf32>, vector<512x64xf32>, vector<64x512xf32> -> vector<64x512xf32>
    %10 = arith.addf %4, %9 : vector<64x512xf32>
    %c0_12 = arith.constant 0 : index
    %c0_13 = arith.constant 0 : index
    %11 = vector.load %arg6[%c0_12, %c0_13] : memref<64x512xf32, #tpu.memory_space<vmem>>, vector<64x512xf32>
    tpu.vector_store %arg6[%c0_12, %c0_13], %10 {strides = array<i32>} : memref<64x512xf32, #tpu.memory_space<vmem>>, vector<64x512xf32>,
    %c0_14 = arith.constant 0 : index
    %c0_15 = arith.constant 0 : index
    %12 = vector.load %arg6[%c0_14, %c0_15] : memref<64x512xf32, #tpu.memory_space<vmem>>, vector<64x512xf32>
    %c1 = arith.constant 1 : index
    %c0_16 = arith.constant 0 : index
    %c0_17 = arith.constant 0 : index
    %13 = vector.load %arg3[%c1, %c0_16, %c0_17] : memref<16x64x64xf32, #tpu.memory_space<vmem>>, vector<1x64x64xf32>
    %14 = vector.shape_cast %13 : vector<1x64x64xf32> to vector<64x64xf32>
    %c0_18 = arith.constant 0 : index
    %c0_19 = arith.constant 0 : index
    %c1_20 = arith.constant 1 : index
    %c0_21 = arith.constant 0 : index
    %15 = vector.load %arg2[%c0_18, %c0_19, %c1_20, %c0_21] : memref<1x1x528x64xf32, #tpu.memory_space<vmem>>, vector<1x1x512x64xf32>
    %16 = vector.shape_cast %15 : vector<1x1x512x64xf32> to vector<512x64xf32>
    %cst_22 = arith.constant dense<0.000000e+00> : vector<64x512xf32>
    %17 = tpu.matmul %14, %16, %cst_22 {dimension_numbers = #tpu.dot_dimension_numbers<[1], [1], [0], [0], [0, 0, 1, 0], [], []>} : vector<64x64xf32>, vector<512x64xf32>, vector<64x512xf32> -> vector<64x512xf32>
    %18 = arith.addf %12, %17 : vector<64x512xf32>
    %c0_23 = arith.constant 0 : index
    %c0_24 = arith.constant 0 : index
    %19 = vector.load %arg6[%c0_23, %c0_24] : memref<64x512xf32, #tpu.memory_space<vmem>>, vector<64x512xf32>
    tpu.vector_store %arg6[%c0_23, %c0_24], %18 {strides = array<i32>} : memref<64x512xf32, #tpu.memory_space<vmem>>, vector<64x512xf32>,
    %c0_25 = arith.constant 0 : index
    %c0_26 = arith.constant 0 : index
    %20 = vector.load %arg6[%c0_25, %c0_26] : memref<64x512xf32, #tpu.memory_space<vmem>>, vector<64x512xf32>
    %c2 = arith.constant 2 : index
    %c0_27 = arith.constant 0 : index
    %c0_28 = arith.constant 0 : index
    %21 = vector.load %arg3[%c2, %c0_27, %c0_28] : memref<16x64x64xf32, #tpu.memory_space<vmem>>, vector<1x64x64xf32>
    %22 = vector.shape_cast %21 : vector<1x64x64xf32> to vector<64x64xf32>
    %c0_29 = arith.constant 0 : index
    %c0_30 = arith.constant 0 : index
    %c2_31 = arith.constant 2 : index
    %c0_32 = arith.constant 0 : index
    %23 = vector.load %arg2[%c0_29, %c0_30, %c2_31, %c0_32] : memref<1x1x528x64xf32, #tpu.memory_space<vmem>>, vector<1x1x512x64xf32>
    %24 = vector.shape_cast %23 : vector<1x1x512x64xf32> to vector<512x64xf32>
    %cst_33 = arith.constant dense<0.000000e+00> : vector<64x512xf32>
    %25 = tpu.matmul %22, %24, %cst_33 {dimension_numbers = #tpu.dot_dimension_numbers<[1], [1], [0], [0], [0, 0, 1, 0], [], []>} : vector<64x64xf32>, vector<512x64xf32>, vector<64x512xf32> -> vector<64x512xf32>
    %26 = arith.addf %20, %25 : vector<64x512xf32>
    %c0_34 = arith.constant 0 : index
    %c0_35 = arith.constant 0 : index
    %27 = vector.load %arg6[%c0_34, %c0_35] : memref<64x512xf32, #tpu.memory_space<vmem>>, vector<64x512xf32>
    tpu.vector_store %arg6[%c0_34, %c0_35], %26 {strides = array<i32>} : memref<64x512xf32, #tpu.memory_space<vmem>>, vector<64x512xf32>,
    %c0_36 = arith.constant 0 : index
    %c0_37 = arith.constant 0 : index
    %28 = vector.load %arg6[%c0_36, %c0_37] : memref<64x512xf32, #tpu.memory_space<vmem>>, vector<64x512xf32>
    %c3 = arith.constant 3 : index
    %c0_38 = arith.constant 0 : index
    %c0_39 = arith.constant 0 : index
    %29 = vector.load %arg3[%c3, %c0_38, %c0_39] : memref<16x64x64xf32, #tpu.memory_space<vmem>>, vector<1x64x64xf32>
    %30 = vector.shape_cast %29 : vector<1x64x64xf32> to vector<64x64xf32>
    %c0_40 = arith.constant 0 : index
    %c0_41 = arith.constant 0 : index
    %c3_42 = arith.constant 3 : index
    %c0_43 = arith.constant 0 : index
    %31 = vector.load %arg2[%c0_40, %c0_41, %c3_42, %c0_43] : memref<1x1x528x64xf32, #tpu.memory_space<vmem>>, vector<1x1x512x64xf32>
    %32 = vector.shape_cast %31 : vector<1x1x512x64xf32> to vector<512x64xf32>
    %cst_44 = arith.constant dense<0.000000e+00> : vector<64x512xf32>
    %33 = tpu.matmul %30, %32, %cst_44 {dimension_numbers = #tpu.dot_dimension_numbers<[1], [1], [0], [0], [0, 0, 1, 0], [], []>} : vector<64x64xf32>, vector<512x64xf32>, vector<64x512xf32> -> vector<64x512xf32>
    %34 = arith.addf %28, %33 : vector<64x512xf32>
    %c0_45 = arith.constant 0 : index
    %c0_46 = arith.constant 0 : index
    %35 = vector.load %arg6[%c0_45, %c0_46] : memref<64x512xf32, #tpu.memory_space<vmem>>, vector<64x512xf32>
    tpu.vector_store %arg6[%c0_45, %c0_46], %34 {strides = array<i32>} : memref<64x512xf32, #tpu.memory_space<vmem>>, vector<64x512xf32>,
    %c0_47 = arith.constant 0 : index
    %c0_48 = arith.constant 0 : index
    %36 = vector.load %arg6[%c0_47, %c0_48] : memref<64x512xf32, #tpu.memory_space<vmem>>, vector<64x512xf32>
    %c4 = arith.constant 4 : index
    %c0_49 = arith.constant 0 : index
    %c0_50 = arith.constant 0 : index
    %37 = vector.load %arg3[%c4, %c0_49, %c0_50] : memref<16x64x64xf32, #tpu.memory_space<vmem>>, vector<1x64x64xf32>
    %38 = vector.shape_cast %37 : vector<1x64x64xf32> to vector<64x64xf32>
    %c0_51 = arith.constant 0 : index
    %c0_52 = arith.constant 0 : index
    %c4_53 = arith.constant 4 : index
    %c0_54 = arith.constant 0 : index
    %39 = vector.load %arg2[%c0_51, %c0_52, %c4_53, %c0_54] : memref<1x1x528x64xf32, #tpu.memory_space<vmem>>, vector<1x1x512x64xf32>
    %40 = vector.shape_cast %39 : vector<1x1x512x64xf32> to vector<512x64xf32>
    %cst_55 = arith.constant dense<0.000000e+00> : vector<64x512xf32>
    %41 = tpu.matmul %38, %40, %cst_55 {dimension_numbers = #tpu.dot_dimension_numbers<[1], [1], [0], [0], [0, 0, 1, 0], [], []>} : vector<64x64xf32>, vector<512x64xf32>, vector<64x512xf32> -> vector<64x512xf32>
    %42 = arith.addf %36, %41 : vector<64x512xf32>
    %c0_56 = arith.constant 0 : index
    %c0_57 = arith.constant 0 : index
    %43 = vector.load %arg6[%c0_56, %c0_57] : memref<64x512xf32, #tpu.memory_space<vmem>>, vector<64x512xf32>
    tpu.vector_store %arg6[%c0_56, %c0_57], %42 {strides = array<i32>} : memref<64x512xf32, #tpu.memory_space<vmem>>, vector<64x512xf32>,
    %c0_58 = arith.constant 0 : index
    %c0_59 = arith.constant 0 : index
    %44 = vector.load %arg6[%c0_58, %c0_59] : memref<64x512xf32, #tpu.memory_space<vmem>>, vector<64x512xf32>
    %c5 = arith.constant 5 : index
    %c0_60 = arith.constant 0 : index
    %c0_61 = arith.constant 0 : index
    %45 = vector.load %arg3[%c5, %c0_60, %c0_61] : memref<16x64x64xf32, #tpu.memory_space<vmem>>, vector<1x64x64xf32>
    %46 = vector.shape_cast %45 : vector<1x64x64xf32> to vector<64x64xf32>
    %c0_62 = arith.constant 0 : index
    %c0_63 = arith.constant 0 : index
    %c5_64 = arith.constant 5 : index
    %c0_65 = arith.constant 0 : index
    %47 = vector.load %arg2[%c0_62, %c0_63, %c5_64, %c0_65] : memref<1x1x528x64xf32, #tpu.memory_space<vmem>>, vector<1x1x512x64xf32>
    %48 = vector.shape_cast %47 : vector<1x1x512x64xf32> to vector<512x64xf32>
    %cst_66 = arith.constant dense<0.000000e+00> : vector<64x512xf32>
    %49 = tpu.matmul %46, %48, %cst_66 {dimension_numbers = #tpu.dot_dimension_numbers<[1], [1], [0], [0], [0, 0, 1, 0], [], []>} : vector<64x64xf32>, vector<512x64xf32>, vector<64x512xf32> -> vector<64x512xf32>
    %50 = arith.addf %44, %49 : vector<64x512xf32>
    %c0_67 = arith.constant 0 : index
    %c0_68 = arith.constant 0 : index
    %51 = vector.load %arg6[%c0_67, %c0_68] : memref<64x512xf32, #tpu.memory_space<vmem>>, vector<64x512xf32>
    tpu.vector_store %arg6[%c0_67, %c0_68], %50 {strides = array<i32>} : memref<64x512xf32, #tpu.memory_space<vmem>>, vector<64x512xf32>,
    %c0_69 = arith.constant 0 : index
    %c0_70 = arith.constant 0 : index
    %52 = vector.load %arg6[%c0_69, %c0_70] : memref<64x512xf32, #tpu.memory_space<vmem>>, vector<64x512xf32>
    %c6 = arith.constant 6 : index
    %c0_71 = arith.constant 0 : index
    %c0_72 = arith.constant 0 : index
    %53 = vector.load %arg3[%c6, %c0_71, %c0_72] : memref<16x64x64xf32, #tpu.memory_space<vmem>>, vector<1x64x64xf32>
    %54 = vector.shape_cast %53 : vector<1x64x64xf32> to vector<64x64xf32>
    %c0_73 = arith.constant 0 : index
    %c0_74 = arith.constant 0 : index
    %c6_75 = arith.constant 6 : index
    %c0_76 = arith.constant 0 : index
    %55 = vector.load %arg2[%c0_73, %c0_74, %c6_75, %c0_76] : memref<1x1x528x64xf32, #tpu.memory_space<vmem>>, vector<1x1x512x64xf32>
    %56 = vector.shape_cast %55 : vector<1x1x512x64xf32> to vector<512x64xf32>
    %cst_77 = arith.constant dense<0.000000e+00> : vector<64x512xf32>
    %57 = tpu.matmul %54, %56, %cst_77 {dimension_numbers = #tpu.dot_dimension_numbers<[1], [1], [0], [0], [0, 0, 1, 0], [], []>} : vector<64x64xf32>, vector<512x64xf32>, vector<64x512xf32> -> vector<64x512xf32>
    %58 = arith.addf %52, %57 : vector<64x512xf32>
    %c0_78 = arith.constant 0 : index
    %c0_79 = arith.constant 0 : index
    %59 = vector.load %arg6[%c0_78, %c0_79] : memref<64x512xf32, #tpu.memory_space<vmem>>, vector<64x512xf32>
    tpu.vector_store %arg6[%c0_78, %c0_79], %58 {strides = array<i32>} : memref<64x512xf32, #tpu.memory_space<vmem>>, vector<64x512xf32>,
    %c0_80 = arith.constant 0 : index
    %c0_81 = arith.constant 0 : index
    %60 = vector.load %arg6[%c0_80, %c0_81] : memref<64x512xf32, #tpu.memory_space<vmem>>, vector<64x512xf32>
    %c7 = arith.constant 7 : index
    %c0_82 = arith.constant 0 : index
    %c0_83 = arith.constant 0 : index
    %61 = vector.load %arg3[%c7, %c0_82, %c0_83] : memref<16x64x64xf32, #tpu.memory_space<vmem>>, vector<1x64x64xf32>
    %62 = vector.shape_cast %61 : vector<1x64x64xf32> to vector<64x64xf32>
    %c0_84 = arith.constant 0 : index
    %c0_85 = arith.constant 0 : index
    %c7_86 = arith.constant 7 : index
    %c0_87 = arith.constant 0 : index
    %63 = vector.load %arg2[%c0_84, %c0_85, %c7_86, %c0_87] : memref<1x1x528x64xf32, #tpu.memory_space<vmem>>, vector<1x1x512x64xf32>
    %64 = vector.shape_cast %63 : vector<1x1x512x64xf32> to vector<512x64xf32>
    %cst_88 = arith.constant dense<0.000000e+00> : vector<64x512xf32>
    %65 = tpu.matmul %62, %64, %cst_88 {dimension_numbers = #tpu.dot_dimension_numbers<[1], [1], [0], [0], [0, 0, 1, 0], [], []>} : vector<64x64xf32>, vector<512x64xf32>, vector<64x512xf32> -> vector<64x512xf32>
    %66 = arith.addf %60, %65 : vector<64x512xf32>
    %c0_89 = arith.constant 0 : index
    %c0_90 = arith.constant 0 : index
    %67 = vector.load %arg6[%c0_89, %c0_90] : memref<64x512xf32, #tpu.memory_space<vmem>>, vector<64x512xf32>
    tpu.vector_store %arg6[%c0_89, %c0_90], %66 {strides = array<i32>} : memref<64x512xf32, #tpu.memory_space<vmem>>, vector<64x512xf32>,
    %c0_91 = arith.constant 0 : index
    %c0_92 = arith.constant 0 : index
    %68 = vector.load %arg6[%c0_91, %c0_92] : memref<64x512xf32, #tpu.memory_space<vmem>>, vector<64x512xf32>
    %c8 = arith.constant 8 : index
    %c0_93 = arith.constant 0 : index
    %c0_94 = arith.constant 0 : index
    %69 = vector.load %arg3[%c8, %c0_93, %c0_94] : memref<16x64x64xf32, #tpu.memory_space<vmem>>, vector<1x64x64xf32>
    %70 = vector.shape_cast %69 : vector<1x64x64xf32> to vector<64x64xf32>
    %c0_95 = arith.constant 0 : index
    %c0_96 = arith.constant 0 : index
    %c8_97 = arith.constant 8 : index
    %c0_98 = arith.constant 0 : index
    %71 = vector.load %arg2[%c0_95, %c0_96, %c8_97, %c0_98] : memref<1x1x528x64xf32, #tpu.memory_space<vmem>>, vector<1x1x512x64xf32>
    %72 = vector.shape_cast %71 : vector<1x1x512x64xf32> to vector<512x64xf32>
    %cst_99 = arith.constant dense<0.000000e+00> : vector<64x512xf32>
    %73 = tpu.matmul %70, %72, %cst_99 {dimension_numbers = #tpu.dot_dimension_numbers<[1], [1], [0], [0], [0, 0, 1, 0], [], []>} : vector<64x64xf32>, vector<512x64xf32>, vector<64x512xf32> -> vector<64x512xf32>
    %74 = arith.addf %68, %73 : vector<64x512xf32>
    %c0_100 = arith.constant 0 : index
    %c0_101 = arith.constant 0 : index
    %75 = vector.load %arg6[%c0_100, %c0_101] : memref<64x512xf32, #tpu.memory_space<vmem>>, vector<64x512xf32>
    tpu.vector_store %arg6[%c0_100, %c0_101], %74 {strides = array<i32>} : memref<64x512xf32, #tpu.memory_space<vmem>>, vector<64x512xf32>,
    %c0_102 = arith.constant 0 : index
    %c0_103 = arith.constant 0 : index
    %76 = vector.load %arg6[%c0_102, %c0_103] : memref<64x512xf32, #tpu.memory_space<vmem>>, vector<64x512xf32>
    %c9 = arith.constant 9 : index
    %c0_104 = arith.constant 0 : index
    %c0_105 = arith.constant 0 : index
    %77 = vector.load %arg3[%c9, %c0_104, %c0_105] : memref<16x64x64xf32, #tpu.memory_space<vmem>>, vector<1x64x64xf32>
    %78 = vector.shape_cast %77 : vector<1x64x64xf32> to vector<64x64xf32>
    %c0_106 = arith.constant 0 : index
    %c0_107 = arith.constant 0 : index
    %c9_108 = arith.constant 9 : index
    %c0_109 = arith.constant 0 : index
    %79 = vector.load %arg2[%c0_106, %c0_107, %c9_108, %c0_109] : memref<1x1x528x64xf32, #tpu.memory_space<vmem>>, vector<1x1x512x64xf32>
    %80 = vector.shape_cast %79 : vector<1x1x512x64xf32> to vector<512x64xf32>
    %cst_110 = arith.constant dense<0.000000e+00> : vector<64x512xf32>
    %81 = tpu.matmul %78, %80, %cst_110 {dimension_numbers = #tpu.dot_dimension_numbers<[1], [1], [0], [0], [0, 0, 1, 0], [], []>} : vector<64x64xf32>, vector<512x64xf32>, vector<64x512xf32> -> vector<64x512xf32>
    %82 = arith.addf %76, %81 : vector<64x512xf32>
    %c0_111 = arith.constant 0 : index
    %c0_112 = arith.constant 0 : index
    %83 = vector.load %arg6[%c0_111, %c0_112] : memref<64x512xf32, #tpu.memory_space<vmem>>, vector<64x512xf32>
    tpu.vector_store %arg6[%c0_111, %c0_112], %82 {strides = array<i32>} : memref<64x512xf32, #tpu.memory_space<vmem>>, vector<64x512xf32>,
    %c0_113 = arith.constant 0 : index
    %c0_114 = arith.constant 0 : index
    %84 = vector.load %arg6[%c0_113, %c0_114] : memref<64x512xf32, #tpu.memory_space<vmem>>, vector<64x512xf32>
    %c10 = arith.constant 10 : index
    %c0_115 = arith.constant 0 : index
    %c0_116 = arith.constant 0 : index
    %85 = vector.load %arg3[%c10, %c0_115, %c0_116] : memref<16x64x64xf32, #tpu.memory_space<vmem>>, vector<1x64x64xf32>
    %86 = vector.shape_cast %85 : vector<1x64x64xf32> to vector<64x64xf32>
    %c0_117 = arith.constant 0 : index
    %c0_118 = arith.constant 0 : index
    %c10_119 = arith.constant 10 : index
    %c0_120 = arith.constant 0 : index
    %87 = vector.load %arg2[%c0_117, %c0_118, %c10_119, %c0_120] : memref<1x1x528x64xf32, #tpu.memory_space<vmem>>, vector<1x1x512x64xf32>
    %88 = vector.shape_cast %87 : vector<1x1x512x64xf32> to vector<512x64xf32>
    %cst_121 = arith.constant dense<0.000000e+00> : vector<64x512xf32>
    %89 = tpu.matmul %86, %88, %cst_121 {dimension_numbers = #tpu.dot_dimension_numbers<[1], [1], [0], [0], [0, 0, 1, 0], [], []>} : vector<64x64xf32>, vector<512x64xf32>, vector<64x512xf32> -> vector<64x512xf32>
    %90 = arith.addf %84, %89 : vector<64x512xf32>
    %c0_122 = arith.constant 0 : index
    %c0_123 = arith.constant 0 : index
    %91 = vector.load %arg6[%c0_122, %c0_123] : memref<64x512xf32, #tpu.memory_space<vmem>>, vector<64x512xf32>
    tpu.vector_store %arg6[%c0_122, %c0_123], %90 {strides = array<i32>} : memref<64x512xf32, #tpu.memory_space<vmem>>, vector<64x512xf32>,
    %c0_124 = arith.constant 0 : index
    %c0_125 = arith.constant 0 : index
    %92 = vector.load %arg6[%c0_124, %c0_125] : memref<64x512xf32, #tpu.memory_space<vmem>>, vector<64x512xf32>
    %c11 = arith.constant 11 : index
    %c0_126 = arith.constant 0 : index
    %c0_127 = arith.constant 0 : index
    %93 = vector.load %arg3[%c11, %c0_126, %c0_127] : memref<16x64x64xf32, #tpu.memory_space<vmem>>, vector<1x64x64xf32>
    %94 = vector.shape_cast %93 : vector<1x64x64xf32> to vector<64x64xf32>
    %c0_128 = arith.constant 0 : index
    %c0_129 = arith.constant 0 : index
    %c11_130 = arith.constant 11 : index
    %c0_131 = arith.constant 0 : index
    %95 = vector.load %arg2[%c0_128, %c0_129, %c11_130, %c0_131] : memref<1x1x528x64xf32, #tpu.memory_space<vmem>>, vector<1x1x512x64xf32>
    %96 = vector.shape_cast %95 : vector<1x1x512x64xf32> to vector<512x64xf32>
    %cst_132 = arith.constant dense<0.000000e+00> : vector<64x512xf32>
    %97 = tpu.matmul %94, %96, %cst_132 {dimension_numbers = #tpu.dot_dimension_numbers<[1], [1], [0], [0], [0, 0, 1, 0], [], []>} : vector<64x64xf32>, vector<512x64xf32>, vector<64x512xf32> -> vector<64x512xf32>
    %98 = arith.addf %92, %97 : vector<64x512xf32>
    %c0_133 = arith.constant 0 : index
    %c0_134 = arith.constant 0 : index
    %99 = vector.load %arg6[%c0_133, %c0_134] : memref<64x512xf32, #tpu.memory_space<vmem>>, vector<64x512xf32>
    tpu.vector_store %arg6[%c0_133, %c0_134], %98 {strides = array<i32>} : memref<64x512xf32, #tpu.memory_space<vmem>>, vector<64x512xf32>,
    %c0_135 = arith.constant 0 : index
    %c0_136 = arith.constant 0 : index
    %100 = vector.load %arg6[%c0_135, %c0_136] : memref<64x512xf32, #tpu.memory_space<vmem>>, vector<64x512xf32>
    %c12 = arith.constant 12 : index
    %c0_137 = arith.constant 0 : index
    %c0_138 = arith.constant 0 : index
    %101 = vector.load %arg3[%c12, %c0_137, %c0_138] : memref<16x64x64xf32, #tpu.memory_space<vmem>>, vector<1x64x64xf32>
    %102 = vector.shape_cast %101 : vector<1x64x64xf32> to vector<64x64xf32>
    %c0_139 = arith.constant 0 : index
    %c0_140 = arith.constant 0 : index
    %c12_141 = arith.constant 12 : index
    %c0_142 = arith.constant 0 : index
    %103 = vector.load %arg2[%c0_139, %c0_140, %c12_141, %c0_142] : memref<1x1x528x64xf32, #tpu.memory_space<vmem>>, vector<1x1x512x64xf32>
    %104 = vector.shape_cast %103 : vector<1x1x512x64xf32> to vector<512x64xf32>
    %cst_143 = arith.constant dense<0.000000e+00> : vector<64x512xf32>
    %105 = tpu.matmul %102, %104, %cst_143 {dimension_numbers = #tpu.dot_dimension_numbers<[1], [1], [0], [0], [0, 0, 1, 0], [], []>} : vector<64x64xf32>, vector<512x64xf32>, vector<64x512xf32> -> vector<64x512xf32>
    %106 = arith.addf %100, %105 : vector<64x512xf32>
    %c0_144 = arith.constant 0 : index
    %c0_145 = arith.constant 0 : index
    %107 = vector.load %arg6[%c0_144, %c0_145] : memref<64x512xf32, #tpu.memory_space<vmem>>, vector<64x512xf32>
    tpu.vector_store %arg6[%c0_144, %c0_145], %106 {strides = array<i32>} : memref<64x512xf32, #tpu.memory_space<vmem>>, vector<64x512xf32>,
    %c0_146 = arith.constant 0 : index
    %c0_147 = arith.constant 0 : index
    %108 = vector.load %arg6[%c0_146, %c0_147] : memref<64x512xf32, #tpu.memory_space<vmem>>, vector<64x512xf32>
    %c13 = arith.constant 13 : index
    %c0_148 = arith.constant 0 : index
    %c0_149 = arith.constant 0 : index
    %109 = vector.load %arg3[%c13, %c0_148, %c0_149] : memref<16x64x64xf32, #tpu.memory_space<vmem>>, vector<1x64x64xf32>
    %110 = vector.shape_cast %109 : vector<1x64x64xf32> to vector<64x64xf32>
    %c0_150 = arith.constant 0 : index
    %c0_151 = arith.constant 0 : index
    %c13_152 = arith.constant 13 : index
    %c0_153 = arith.constant 0 : index
    %111 = vector.load %arg2[%c0_150, %c0_151, %c13_152, %c0_153] : memref<1x1x528x64xf32, #tpu.memory_space<vmem>>, vector<1x1x512x64xf32>
    %112 = vector.shape_cast %111 : vector<1x1x512x64xf32> to vector<512x64xf32>
    %cst_154 = arith.constant dense<0.000000e+00> : vector<64x512xf32>
    %113 = tpu.matmul %110, %112, %cst_154 {dimension_numbers = #tpu.dot_dimension_numbers<[1], [1], [0], [0], [0, 0, 1, 0], [], []>} : vector<64x64xf32>, vector<512x64xf32>, vector<64x512xf32> -> vector<64x512xf32>
    %114 = arith.addf %108, %113 : vector<64x512xf32>
    %c0_155 = arith.constant 0 : index
    %c0_156 = arith.constant 0 : index
    %115 = vector.load %arg6[%c0_155, %c0_156] : memref<64x512xf32, #tpu.memory_space<vmem>>, vector<64x512xf32>
    tpu.vector_store %arg6[%c0_155, %c0_156], %114 {strides = array<i32>} : memref<64x512xf32, #tpu.memory_space<vmem>>, vector<64x512xf32>,
    %c0_157 = arith.constant 0 : index
    %c0_158 = arith.constant 0 : index
    %116 = vector.load %arg6[%c0_157, %c0_158] : memref<64x512xf32, #tpu.memory_space<vmem>>, vector<64x512xf32>
    %c14 = arith.constant 14 : index
    %c0_159 = arith.constant 0 : index
    %c0_160 = arith.constant 0 : index
    %117 = vector.load %arg3[%c14, %c0_159, %c0_160] : memref<16x64x64xf32, #tpu.memory_space<vmem>>, vector<1x64x64xf32>
    %118 = vector.shape_cast %117 : vector<1x64x64xf32> to vector<64x64xf32>
    %c0_161 = arith.constant 0 : index
    %c0_162 = arith.constant 0 : index
    %c14_163 = arith.constant 14 : index
    %c0_164 = arith.constant 0 : index
    %119 = vector.load %arg2[%c0_161, %c0_162, %c14_163, %c0_164] : memref<1x1x528x64xf32, #tpu.memory_space<vmem>>, vector<1x1x512x64xf32>
    %120 = vector.shape_cast %119 : vector<1x1x512x64xf32> to vector<512x64xf32>
    %cst_165 = arith.constant dense<0.000000e+00> : vector<64x512xf32>
    %121 = tpu.matmul %118, %120, %cst_165 {dimension_numbers = #tpu.dot_dimension_numbers<[1], [1], [0], [0], [0, 0, 1, 0], [], []>} : vector<64x64xf32>, vector<512x64xf32>, vector<64x512xf32> -> vector<64x512xf32>
    %122 = arith.addf %116, %121 : vector<64x512xf32>
    %c0_166 = arith.constant 0 : index
    %c0_167 = arith.constant 0 : index
    %123 = vector.load %arg6[%c0_166, %c0_167] : memref<64x512xf32, #tpu.memory_space<vmem>>, vector<64x512xf32>
    tpu.vector_store %arg6[%c0_166, %c0_167], %122 {strides = array<i32>} : memref<64x512xf32, #tpu.memory_space<vmem>>, vector<64x512xf32>,
    %c0_168 = arith.constant 0 : index
    %c0_169 = arith.constant 0 : index
    %124 = vector.load %arg6[%c0_168, %c0_169] : memref<64x512xf32, #tpu.memory_space<vmem>>, vector<64x512xf32>
    %c15 = arith.constant 15 : index
    %c0_170 = arith.constant 0 : index
    %c0_171 = arith.constant 0 : index
    %125 = vector.load %arg3[%c15, %c0_170, %c0_171] : memref<16x64x64xf32, #tpu.memory_space<vmem>>, vector<1x64x64xf32>
    %126 = vector.shape_cast %125 : vector<1x64x64xf32> to vector<64x64xf32>
    %c0_172 = arith.constant 0 : index
    %c0_173 = arith.constant 0 : index
    %c15_174 = arith.constant 15 : index
    %c0_175 = arith.constant 0 : index
    %127 = vector.load %arg2[%c0_172, %c0_173, %c15_174, %c0_175] : memref<1x1x528x64xf32, #tpu.memory_space<vmem>>, vector<1x1x512x64xf32>
    %128 = vector.shape_cast %127 : vector<1x1x512x64xf32> to vector<512x64xf32>
    %cst_176 = arith.constant dense<0.000000e+00> : vector<64x512xf32>
    %129 = tpu.matmul %126, %128, %cst_176 {dimension_numbers = #tpu.dot_dimension_numbers<[1], [1], [0], [0], [0, 0, 1, 0], [], []>} : vector<64x64xf32>, vector<512x64xf32>, vector<64x512xf32> -> vector<64x512xf32>
    %130 = arith.addf %124, %129 : vector<64x512xf32>
    %c0_177 = arith.constant 0 : index
    %c0_178 = arith.constant 0 : index
    %131 = vector.load %arg6[%c0_177, %c0_178] : memref<64x512xf32, #tpu.memory_space<vmem>>, vector<64x512xf32>
    tpu.vector_store %arg6[%c0_177, %c0_178], %130 {strides = array<i32>} : memref<64x512xf32, #tpu.memory_space<vmem>>, vector<64x512xf32>,
    %c0_179 = arith.constant 0 : index
    %c0_180 = arith.constant 0 : index
    %132 = vector.load %arg6[%c0_179, %c0_180] : memref<64x512xf32, #tpu.memory_space<vmem>>, vector<64x512xf32>
    %cst_181 = arith.constant 0.000000e+00 : f32
    %133 = vector.broadcast %cst_181 : f32 to vector<64x512xf32>
    %134 = arith.maximumf %132, %133 : vector<64x512xf32>
    %c0_182 = arith.constant 0 : index
    %c0_183 = arith.constant 0 : index
    %c0_184 = arith.constant 0 : index
    %135 = vector.load %arg5[%c0_182, %c0_183, %c0_184] : memref<1x64x512xf32, #tpu.memory_space<vmem>>, vector<1x64x512xf32>
    %136 = vector.shape_cast %135 : vector<1x64x512xf32> to vector<64x512xf32>
    %137 = vector.shape_cast %134 : vector<64x512xf32> to vector<1x64x512xf32>
    tpu.vector_store %arg5[%c0_182, %c0_183, %c0_184], %137 {strides = array<i32>} : memref<1x64x512xf32, #tpu.memory_space<vmem>>, vector<1x64x512xf32>,
    return
  }
  func.func @transform_0(%arg0: i32, %arg1: i32) -> (i32, i32, i32, i32) {
    %c0_i32 = arith.constant 0 : i32
    %c0_i32_0 = arith.constant 0 : i32
    %c0_i32_1 = arith.constant 0 : i32
    return %arg0, %arg1, %c0_i32, %c0_i32_0 : i32, i32, i32, i32
  }
  func.func @transform_1(%arg0: i32, %arg1: i32) -> (i32, i32, i32) {
    %c0_i32 = arith.constant 0 : i32
    %c0_i32_0 = arith.constant 0 : i32
    %c0_i32_1 = arith.constant 0 : i32
    %c0_i32_2 = arith.constant 0 : i32
    return %c0_i32, %c0_i32_0, %c0_i32_1 : i32, i32, i32
  }
  func.func @transform_2(%arg0: i32, %arg1: i32) -> (i32, i32) {
    %c0_i32 = arith.constant 0 : i32
    %c0_i32_0 = arith.constant 0 : i32
    %c0_i32_1 = arith.constant 0 : i32
    return %c0_i32, %c0_i32_0 : i32, i32
  }
  func.func @transform_3(%arg0: i32, %arg1: i32) -> (i32, i32, i32) {
    %c0_i32 = arith.constant 0 : i32
    %c0_i32_0 = arith.constant 0 : i32
    return %arg0, %c0_i32, %arg1 : i32, i32, i32
  }
}

</mosaic_0001>

<bundles_post_ra>
// kernel: tpu_custom_call.1
= control target key start
LH: loop header
LB: loop body
LE: loop exit
PB: predicated region body
PF: predicated region fallthrough
CT: control target
= control target key end

     0   :  { %8 = vsyncpa [#allocation4], 0  ;;  %s18702_s0 = inlined_call_operand.vmem [shape: f32[2,3,528,64], index: 0, kind: input, shape index: {}]   ;;  %s18703_s1 = inlined_call_operand.vmem [shape: f32[16,64,64], index: 1, kind: input, shape index: {}]   ;;  %s18704_s2 = inlined_call_operand.vmem [shape: f32[64,1], index: 2, kind: input, shape index: {}]   ;;  %s18705_s3 = inlined_call_operand.hbm [shape: f32[2,64,1536], index: 3, kind: output, shape index: {}]  }
   0x1   :  { %10 = vsyncpa [#allocation4 + $0x1], 0  ;;  %s15448_s12 = smov 0   ;;  %s15450_s13 = smov 0  }
   0x2   :  { %s15452_s14 = smov 0   ;;  %s15454_s15 = smov 0  }
   0x3   :  { %s15456_s16 = smov 0   ;;  %s15458_s17 = smov 0  }
   0x4   :  { %s15460_s18 = smov 0   ;;  %s15462_s19 = smov 0  }
   0x5 LB: > { %s10251_s20 = sadd.s32 4294967295, %s15421_s19   ;;  %s10252_s21 = sadd.s32 4294967294, %s15421_s19   ;;  %s15421_s19 = sphi %s15462_s19, %s16_s19   ;;  %s15417_s18 = sphi %s15460_s18, %s18716_s18   ;;  %s15413_s17 = sphi %s15458_s17, %s18715_s17   ;;  %s15409_s16 = sphi %s15456_s16, %s18714_s16   ;;  %s15405_s15 = sphi %s15454_s15, %s18713_s15   ;;  %s15401_s14 = sphi %s15452_s14, %s18712_s14   ;;  %s15397_s13 = sphi %s15450_s13, %s18711_s13   ;;  %s15393_s12 = sphi %s15448_s12, %s18710_s12  }
   0x6   : > { %s25_s22 = sadd.s32 1, %s15413_s17  ;;  %s28_s23 = sadd.s32 1, %s15417_s18 }
   0x7   : > { %p26_p0 = scmp.ge.s32.totalorder %s25_s22, 3  ;;  %p117_p1 = scmp.ne.s32.totalorder %s15401_s14, %s15397_s13 }
   0x8   : > { %p118_p2 = scmp.eq.s32.totalorder %s10251_s20, 5  ;;  %p123_p5 = scmp.ne.s32.totalorder %s15397_s13, %s15393_s12 }
   0x9   : > { %s18718_s22 = smov (%p26_p0, %s25_s22), 0  ;;  %s18720_s23 = smov (!%p26_p0, %s28_s23), %s15417_s18 }
   0xa   : > { %s103_s24 = ssub.s32 %s15413_s17, %s18718_s22  ;;  %p15499_p3 = por %p118_p2, %p117_p1 }
   0xb   : > { %p30_p4 = scmp.ge.s32.totalorder %s18720_s23, 2  ;;  %p124_p6 = scmp.eq.s32.totalorder %s10252_s21, 5 }
   0xc   : > { %p10255_p7 = scmp.ge.s32.totalorder %s15421_s19, 1  ;;  %p160_p9 = scmp.lt.s32.totalorder %s15421_s19, 7 }
   0xd   : > { %s18722_s23 = smov (%p30_p4, %s18720_s23), 0  ;;  %p15508_p8 = por %p124_p6, %p123_p5 }
   0xe   : > { %s102_s27 = ssub.s32 %s15417_s18, %s18722_s23  ;;  %s107_s28 = sadd.s32 1, %s15401_s14 }
   0xf   : > { %s104_s29 = sor.u32 %s103_s24, %s102_s27  ;;  %p161_p10 = pnand %p10255_p7, %p160_p9 }
  0x10   : > { %p105_p11 = scmp.eq.s32.totalorder %s104_s29, 0  ;;  %p188_p12 = scmp.lt.s32.totalorder (!%p161_p10), %s15409_s16, 1  ;;  %vm382_vm0 = vcmask (!%p161_p10), 523264   ;;  %v15524_v0 = vld [vmem:[%s18703_s1] sm:$0xff] (!%p161_p10)  ;;  %v11573_v1 = vld [vmem:[%s18703_s1 + $0x3d8] sm:$0xff] (!%p161_p10) }
  0x11   : > { %164 = sbr.rel (%p161_p10) target bundleno = 1322 (0x52a), region = 32  ;;  %p190_p13 = scmp.lt.s32.totalorder (!%p161_p10), %s15405_s15, 2  ;;  %11695 = vmatprep.mubr.msk.f32.mxu0 (!%p161_p10), %vm382_vm0, %v15524_v0  ;;  %11743 = vmatprep.mubr.msk.f32.mxu1 (!%p161_p10), %vm382_vm0, %v15524_v0  ;;  %vm15539_vm1 = vmpackc.low (!%p161_p10), %vm382_vm0, %vm382_vm0 }
  0x12   : > { %s15517_s30 = scalar_select %p105_p11, %s15401_s14, %s107_s28  }
  0x13   : > { %s15249_s20 = smul.u32 (!%p161_p10), 96, %s15409_s16  ;;  %s11659_s21 = sshll.u32 (!%p161_p10), %s15405_s15, 2 }
  0x18   : > { %s189_s6 = scalar_select %p188_p12, %s15409_s16, 1 }
  0x19   : > { %s191_s7 = scalar_select %p190_p13, %s15405_s15, 2 }
  0x1a   : > { %s15248_s8 = smul.u32 198, %s189_s6  ;;  %s18626_s16 = sadd.s32 %s15249_s20, %s11659_s21 }
  0x1b   : > { %s15247_s9 = smul.u32 66, %s191_s7  ;;  %s11660_s15 = sshll.u32 %s18626_s16, 7 }
  0x1c   : > { %s18640_s4 = scalar_lea.hbm %s18705_s3, %s11660_s15  ;;  %s15424_s7 = smov [#allocation3]  }
  0x1d   : > { %s194_s10 = sadd.s32 %s15248_s8, %s15247_s9  ;;  %s15331_s8 = sshll.u32 %s15424_s7, 4  ;;  %s15332_s8 = int_to_ptr.vmem [resolvable:$false] %s15331_s8 }
  0x1e   : > { %s10257_s11 = sshll.u32 %s194_s10, 3  ;;  %s185_s10 = sand.u32 1, %s15397_s13  }
  0x1f   : > { %s15535_s24 = scalar_lea.vmem %s18702_s0, %s10257_s11  ;;  %s10256_s11 = sshll.u32 %s185_s10, 8 }
  0x20   : > { %v334_v2 = vld [vmem:[%s15535_s24 + $0x80] sm:$0xff]  ;;  %v335_v3 = vld [vmem:[%s15535_s24 + $0x88] sm:$0xff]  ;;  %v336_v13 = vld [vmem:[%s15535_s24 + $0x90] sm:$0xff]  ;;  %s18650_s5 = scalar_lea.sflag [#allocation4], %s185_s10  ;;  %s15333_s9 = scalar_lea.vmem %s15332_s8, 8192 }
  0x21   : > { %v366_v4 = vld [vmem:[%s15535_s24 + $0x180] sm:$0xff]  ;;  %v13199_v5 = vpack.c.bf16 %v335_v3, %v334_v2  ;;  %v367_v6 = vld [vmem:[%s15535_s24 + $0x188] sm:$0xff]  ;;  %v337_v15 = vld [vmem:[%s15535_s24 + $0x98] sm:$0xff] }
  0x22   : > { %v318_v7 = vld [vmem:[%s15535_s24] sm:$0xff]  ;;  %v319_v8 = vld [vmem:[%s15535_s24 + $0x8] sm:$0xff]  ;;  %v13247_v9 = vpack.c.bf16 %v367_v6, %v366_v4  ;;  %v368_v16 = vld [vmem:[%s15535_s24 + $0x190] sm:$0xff]  ;;  %v13205_v18 = vpack.c.bf16 %v337_v15, %v336_v13 }
  0x23   : > { %v13202_v10 = vpack.c.bf16 %v319_v8, %v318_v7  ;;  %v350_v11 = vld [vmem:[%s15535_s24 + $0x100] sm:$0xff]  ;;  %v351_v12 = vld [vmem:[%s15535_s24 + $0x108] sm:$0xff]  ;;  %13201 = vmatprep.subr.msk.bf16.mxu0 %vm15539_vm1, %v13199_v5  ;;  %v369_v17 = vld [vmem:[%s15535_s24 + $0x198] sm:$0xff] }
  0x24   : > { %v13250_v14 = vpack.c.bf16 %v351_v12, %v350_v11  ;;  %13249 = vmatprep.subr.msk.bf16.mxu1 %vm15539_vm1, %v13247_v9  ;;  %v13253_v19 = vpack.c.bf16 %v369_v17, %v368_v16  ;;  %v320_v20 = vld [vmem:[%s15535_s24 + $0x10] sm:$0xff]  ;;  %v321_v21 = vld [vmem:[%s15535_s24 + $0x18] sm:$0xff]  ;;  %v338_v24 = vld [vmem:[%s15535_s24 + $0xa0] sm:$0xff] }
  0x25   : > { %13204 = vmatpush3.bf16.xpose.msk.msra.mxu0 %vm15539_vm1, %v13202_v10  ;;  %v352_v22 = vld [vmem:[%s15535_s24 + $0x110] sm:$0xff]  ;;  %v353_v23 = vld [vmem:[%s15535_s24 + $0x118] sm:$0xff]  ;;  %v339_v25 = vld [vmem:[%s15535_s24 + $0xa8] sm:$0xff]  ;;  %v13208_v28 = vpack.c.bf16 %v321_v21, %v320_v20 }
  0x26   : > { %13252 = vmatpush3.bf16.xpose.msk.msra.mxu1 %vm15539_vm1, %v13250_v14  ;;  %13207 = vmatprep.subr.msk.bf16.mxu0 %vm15539_vm1, %v13205_v18  ;;  %v370_v26 = vld [vmem:[%s15535_s24 + $0x1a0] sm:$0xff]  ;;  %v371_v27 = vld [vmem:[%s15535_s24 + $0x1a8] sm:$0xff]  ;;  %v13256_v29 = vpack.c.bf16 %v353_v23, %v352_v22  ;;  %v13211_v30 = vpack.c.bf16 %v339_v25, %v338_v24  ;;  %v340_v36 = vld [vmem:[%s15535_s24 + $0xb0] sm:$0xff] }
  0x27   : > { %13255 = vmatprep.subr.msk.bf16.mxu1 %vm15539_vm1, %v13253_v19  ;;  %v13259_v31 = vpack.c.bf16 %v371_v27, %v370_v26  ;;  %v322_v32 = vld [vmem:[%s15535_s24 + $0x20] sm:$0xff]  ;;  %v323_v33 = vld [vmem:[%s15535_s24 + $0x28] sm:$0xff]  ;;  %v341_v37 = vld [vmem:[%s15535_s24 + $0xb8] sm:$0xff] }
  0x28   : > { %v354_v34 = vld [vmem:[%s15535_s24 + $0x120] sm:$0xff]  ;;  %v355_v35 = vld [vmem:[%s15535_s24 + $0x128] sm:$0xff]  ;;  %v372_v38 = vld [vmem:[%s15535_s24 + $0x1b0] sm:$0xff]  ;;  %v13214_v40 = vpack.c.bf16 %v323_v33, %v322_v32  ;;  %v13217_v42 = vpack.c.bf16 %v341_v37, %v340_v36 }
  0x29   : > { %v373_v39 = vld [vmem:[%s15535_s24 + $0x1b8] sm:$0xff]  ;;  %v13262_v41 = vpack.c.bf16 %v355_v35, %v354_v34  ;;  %v324_v44 = vld [vmem:[%s15535_s24 + $0x30] sm:$0xff]  ;;  %v342_v48 = vld [vmem:[%s15535_s24 + $0xc0] sm:$0xff] }
  0x2a   : > { %v13265_v43 = vpack.c.bf16 %v373_v39, %v372_v38  ;;  %v325_v45 = vld [vmem:[%s15535_s24 + $0x38] sm:$0xff]  ;;  %v356_v46 = vld [vmem:[%s15535_s24 + $0x130] sm:$0xff]  ;;  %v343_v49 = vld [vmem:[%s15535_s24 + $0xc8] sm:$0xff] }
  0x2b   : > { %v357_v47 = vld [vmem:[%s15535_s24 + $0x138] sm:$0xff]  ;;  %v374_v50 = vld [vmem:[%s15535_s24 + $0x1c0] sm:$0xff]  ;;  %v375_v51 = vld [vmem:[%s15535_s24 + $0x1c8] sm:$0xff]  ;;  %v13220_v52 = vpack.c.bf16 %v325_v45, %v324_v44  ;;  %v13223_v54 = vpack.c.bf16 %v343_v49, %v342_v48 }
  0x2c   : > { %v13268_v53 = vpack.c.bf16 %v357_v47, %v356_v46  ;;  %v13271_v55 = vpack.c.bf16 %v375_v51, %v374_v50  ;;  %v326_v56 = vld [vmem:[%s15535_s24 + $0x40] sm:$0xff]  ;;  %v327_v57 = vld [vmem:[%s15535_s24 + $0x48] sm:$0xff]  ;;  %v344_v60 = vld [vmem:[%s15535_s24 + $0xd0] sm:$0xff] }
  0x2d   : > { %13210 = vmatpush3.bf16.xpose.msk.msra.mxu0 %vm15539_vm1, %v13208_v28  ;;  %v358_v58 = vld [vmem:[%s15535_s24 + $0x140] sm:$0xff]  ;;  %v359_v59 = vld [vmem:[%s15535_s24 + $0x148] sm:$0xff]  ;;  %v345_v61 = vld [vmem:[%s15535_s24 + $0xd8] sm:$0xff]  ;;  %v13226_v2 = vpack.c.bf16 %v327_v57, %v326_v56 }
  0x2e   : > { %13258 = vmatpush3.bf16.xpose.msk.msra.mxu1 %vm15539_vm1, %v13256_v29  ;;  %13213 = vmatprep.subr.msk.bf16.mxu0 %vm15539_vm1, %v13211_v30  ;;  %v376_v62 = vld [vmem:[%s15535_s24 + $0x1d0] sm:$0xff]  ;;  %v377_v63 = vld [vmem:[%s15535_s24 + $0x1d8] sm:$0xff]  ;;  %v13274_v3 = vpack.c.bf16 %v359_v59, %v358_v58  ;;  %v13229_v4 = vpack.c.bf16 %v345_v61, %v344_v60  ;;  %v346_v10 = vld [vmem:[%s15535_s24 + $0xe0] sm:$0xff] }
  0x2f   : > { %13261 = vmatprep.subr.msk.bf16.mxu1 %vm15539_vm1, %v13259_v31  ;;  %v13277_v5 = vpack.c.bf16 %v377_v63, %v376_v62  ;;  %v328_v6 = vld [vmem:[%s15535_s24 + $0x50] sm:$0xff]  ;;  %v329_v7 = vld [vmem:[%s15535_s24 + $0x58] sm:$0xff]  ;;  %v347_v11 = vld [vmem:[%s15535_s24 + $0xe8] sm:$0xff] }
  0x30   : > { %v360_v8 = vld [vmem:[%s15535_s24 + $0x150] sm:$0xff]  ;;  %v361_v9 = vld [vmem:[%s15535_s24 + $0x158] sm:$0xff]  ;;  %v378_v12 = vld [vmem:[%s15535_s24 + $0x1e0] sm:$0xff]  ;;  %v13232_v14 = vpack.c.bf16 %v329_v7, %v328_v6  ;;  %v13235_v16 = vpack.c.bf16 %v347_v11, %v346_v10 }
  0x31   : > { %v379_v13 = vld [vmem:[%s15535_s24 + $0x1e8] sm:$0xff]  ;;  %v13280_v15 = vpack.c.bf16 %v361_v9, %v360_v8  ;;  %v330_v18 = vld [vmem:[%s15535_s24 + $0x60] sm:$0xff]  ;;  %v348_v22 = vld [vmem:[%s15535_s24 + $0xf0] sm:$0xff] }
  0x32   : > { %v13283_v17 = vpack.c.bf16 %v379_v13, %v378_v12  ;;  %v331_v19 = vld [vmem:[%s15535_s24 + $0x68] sm:$0xff]  ;;  %v362_v20 = vld [vmem:[%s15535_s24 + $0x160] sm:$0xff]  ;;  %v349_v23 = vld [vmem:[%s15535_s24 + $0xf8] sm:$0xff] }
  0x33   : > { %v363_v21 = vld [vmem:[%s15535_s24 + $0x168] sm:$0xff]  ;;  %v380_v24 = vld [vmem:[%s15535_s24 + $0x1f0] sm:$0xff]  ;;  %v381_v25 = vld [vmem:[%s15535_s24 + $0x1f8] sm:$0xff]  ;;  %v13238_v26 = vpack.c.bf16 %v331_v19, %v330_v18  ;;  %v13241_v28 = vpack.c.bf16 %v349_v23, %v348_v22 }
  0x34   : > { %v13286_v27 = vpack.c.bf16 %v363_v21, %v362_v20  ;;  %v13289_v29 = vpack.c.bf16 %v381_v25, %v380_v24  ;;  %v332_v30 = vld [vmem:[%s15535_s24 + $0x70] sm:$0xff]  ;;  %v333_v31 = vld [vmem:[%s15535_s24 + $0x78] sm:$0xff]  ;;  %v946_v34 = vld [vmem:[%s15535_s24 + $0x81] sm:$0xff] }
  0x35   : > { %13216 = vmatpush3.bf16.xpose.msk.msra.mxu0 %vm15539_vm1, %v13214_v40  ;;  %v364_v32 = vld [vmem:[%s15535_s24 + $0x170] sm:$0xff]  ;;  %v365_v33 = vld [vmem:[%s15535_s24 + $0x178] sm:$0xff]  ;;  %v978_v36 = vld [vmem:[%s15535_s24 + $0x181] sm:$0xff]  ;;  %v13244_v38 = vpack.c.bf16 %v333_v31, %v332_v30 }
  0x36   : > { %13264 = vmatpush3.bf16.xpose.msk.msra.mxu1 %vm15539_vm1, %v13262_v41  ;;  %13219 = vmatprep.subr.msk.bf16.mxu0 %vm15539_vm1, %v13217_v42  ;;  %v947_v35 = vld [vmem:[%s15535_s24 + $0x89] sm:$0xff]  ;;  %v13292_v39 = vpack.c.bf16 %v365_v33, %v364_v32  ;;  %v930_v42 = vld [vmem:[%s15535_s24 + $0x1] sm:$0xff]  ;;  %v948_v46 = vld [vmem:[%s15535_s24 + $0x91] sm:$0xff] }
  0x37   : > { %13267 = vmatprep.subr.msk.bf16.mxu1 %vm15539_vm1, %v13265_v43  ;;  %v979_v37 = vld [vmem:[%s15535_s24 + $0x189] sm:$0xff]  ;;  %v13295_v40 = vpack.c.bf16 %v947_v35, %v946_v34  ;;  %v962_v44 = vld [vmem:[%s15535_s24 + $0x101] sm:$0xff]  ;;  %v949_v47 = vld [vmem:[%s15535_s24 + $0x99] sm:$0xff] }
  0x38   : > { %v13343_v41 = vpack.c.bf16 %v979_v37, %v978_v36  ;;  %v931_v43 = vld [vmem:[%s15535_s24 + $0x9] sm:$0xff]  ;;  %v980_v48 = vld [vmem:[%s15535_s24 + $0x191] sm:$0xff]  ;;  %v981_v49 = vld [vmem:[%s15535_s24 + $0x199] sm:$0xff] }
  0x39   : > { %v963_v45 = vld [vmem:[%s15535_s24 + $0x109] sm:$0xff]  ;;  %v13298_v50 = vpack.c.bf16 %v931_v43, %v930_v42  ;;  %v932_v56 = vld [vmem:[%s15535_s24 + $0x11] sm:$0xff]  ;;  %v933_v57 = vld [vmem:[%s15535_s24 + $0x19] sm:$0xff] }
  0x3a   : > { %v13346_v51 = vpack.c.bf16 %v963_v45, %v962_v44  ;;  %v964_v58 = vld [vmem:[%s15535_s24 + $0x111] sm:$0xff]  ;;  %v950_v59 = vld [vmem:[%s15535_s24 + $0xa1] sm:$0xff]  ;;  %v951_v60 = vld [vmem:[%s15535_s24 + $0xa9] sm:$0xff]  ;;  %v13304_v63 = vpack.c.bf16 %v933_v57, %v932_v56 }
  0x3b   : > { %v982_v61 = vld [vmem:[%s15535_s24 + $0x1a1] sm:$0xff]  ;;  %v983_v62 = vld [vmem:[%s15535_s24 + $0x1a9] sm:$0xff]  ;;  %v952_v11 = vld [vmem:[%s15535_s24 + $0xb1] sm:$0xff] }
  0x3c   : > { %v314_v6 = vld [vmem:[%s18703_s1 + $0x20] sm:$0xff]  ;;  %v935_v8 = vld [vmem:[%s15535_s24 + $0x29] sm:$0xff]  ;;  %v984_v13 = vld [vmem:[%s15535_s24 + $0x1b1] sm:$0xff] }
  0x3d   : > { %13222 = vmatpush3.bf16.xpose.msk.msra.mxu0 %vm15539_vm1, %v13220_v52  ;;  %v13301_v52 = vpack.c.bf16 %v949_v47, %v948_v46  ;;  %v934_v7 = vld [vmem:[%s15535_s24 + $0x21] sm:$0xff]  ;;  %v967_v10 = vld [vmem:[%s15535_s24 + $0x129] sm:$0xff]  ;;  %v953_v12 = vld [vmem:[%s15535_s24 + $0xb9] sm:$0xff] }
  0x3e   : > { %13270 = vmatpush3.bf16.xpose.msk.msra.mxu1 %vm15539_vm1, %v13268_v53  ;;  %13225 = vmatprep.subr.msk.bf16.mxu0 %vm15539_vm1, %v13223_v54  ;;  %v13349_v53 = vpack.c.bf16 %v981_v49, %v980_v48  ;;  %v311_v54 = vld [vmem:[%s18703_s1 + $0x8] sm:$0xff]  ;;  %v316_v20 = vld [vmem:[%s18703_s1 + $0x30] sm:$0xff]  ;;  %v937_v22 = vld [vmem:[%s15535_s24 + $0x39] sm:$0xff] }
  0x3f   : > { %13273 = vmatprep.subr.msk.bf16.mxu1 %vm15539_vm1, %v13271_v55  ;;  %v312_v55 = vld [vmem:[%s18703_s1 + $0x10] sm:$0xff]  ;;  %v966_v9 = vld [vmem:[%s15535_s24 + $0x121] sm:$0xff]  ;;  %v969_v24 = vld [vmem:[%s15535_s24 + $0x139] sm:$0xff] }
  0x40   : > { %v315_v19 = vld [vmem:[%s18703_s1 + $0x28] sm:$0xff]  ;;  %v936_v21 = vld [vmem:[%s15535_s24 + $0x31] sm:$0xff]  ;;  %v15789_v34 = vld [vmem:[%s18703_s1 + $0x40] sm:$0xff] }
  0x41   : > { %v968_v23 = vld [vmem:[%s15535_s24 + $0x131] sm:$0xff]  ;;  %v954_v25 = vld [vmem:[%s15535_s24 + $0xc1] sm:$0xff]  ;;  %v939_v36 = vld [vmem:[%s15535_s24 + $0x49] sm:$0xff] }
  0x42   : > { %v13364_v30 = vpack.c.bf16 %v969_v24, %v968_v23  ;;  %v317_v33 = vld [vmem:[%s18703_s1 + $0x38] sm:$0xff]  ;;  %v938_v35 = vld [vmem:[%s15535_s24 + $0x41] sm:$0xff]  ;;  %v1574_v23 = vld [vmem:[%s15535_s24 + $0x10a] sm:$0xff] }
  0x43   : > { %v970_v37 = vld [vmem:[%s15535_s24 + $0x141] sm:$0xff]  ;;  %v989_v42 = vld [vmem:[%s15535_s24 + $0x1d9] sm:$0xff]  ;;  %v13322_v43 = vpack.c.bf16 %v939_v36, %v938_v35  ;;  %v940_v47 = vld [vmem:[%s15535_s24 + $0x51] sm:$0xff] }
  0x44   : > { %v941_v48 = vld [vmem:[%s15535_s24 + $0x59] sm:$0xff]  ;;  %v972_v49 = vld [vmem:[%s15535_s24 + $0x151] sm:$0xff] }
  0x45   : > { %13228 = vmatpush3.bf16.xpose.msk.msra.mxu0 %vm15539_vm1, %v13226_v2  ;;  %v1559_v24 = vld [vmem:[%s15535_s24 + $0x92] sm:$0xff]  ;;  %v1544_v35 = vld [vmem:[%s15535_s24 + $0x1a] sm:$0xff] }
  0x46   : > { %13276 = vmatpush3.bf16.xpose.msk.msra.mxu1 %vm15539_vm1, %v13274_v3  ;;  %13231 = vmatprep.subr.msk.bf16.mxu0 %vm15539_vm1, %v13229_v4  ;;  %v13307_v3 = vpack.c.bf16 %v951_v60, %v950_v59  ;;  %v13355_v4 = vpack.c.bf16 %v983_v62, %v982_v61  ;;  %v943_v59 = vld [vmem:[%s15535_s24 + $0x69] sm:$0xff]  ;;  %v974_v60 = vld [vmem:[%s15535_s24 + $0x161] sm:$0xff]  ;;  %v960_v62 = vld [vmem:[%s15535_s24 + $0xf1] sm:$0xff] }
  0x47   : > { %13279 = vmatprep.subr.msk.bf16.mxu1 %vm15539_vm1, %v13277_v5  ;;  %v313_v5 = vld [vmem:[%s18703_s1 + $0x18] sm:$0xff]  ;;  %v975_v61 = vld [vmem:[%s15535_s24 + $0x169] sm:$0xff] }
  0x48   : > { %v1575_v36 = vld [vmem:[%s15535_s24 + $0x112] sm:$0xff] }
  0x4d   : > { %13234 = vmatpush3.bf16.xpose.msk.msra.mxu0 %vm15539_vm1, %v13232_v14  ;;  %v985_v14 = vld [vmem:[%s15535_s24 + $0x1b9] sm:$0xff] }
  0x4e   : > { %13282 = vmatpush3.bf16.xpose.msk.msra.mxu1 %vm15539_vm1, %v13280_v15  ;;  %13237 = vmatprep.subr.msk.bf16.mxu0 %vm15539_vm1, %v13235_v16  ;;  %v13310_v15 = vpack.c.bf16 %v935_v8, %v934_v7  ;;  %v13358_v16 = vpack.c.bf16 %v967_v10, %v966_v9  ;;  %v13361_v18 = vpack.c.bf16 %v985_v14, %v984_v13  ;;  %v944_v8 = vld [vmem:[%s15535_s24 + $0x71] sm:$0xff]  ;;  %v945_v9 = vld [vmem:[%s15535_s24 + $0x79] sm:$0xff]  ;;  %v1589_v14 = vld [vmem:[%s15535_s24 + $0x182] sm:$0xff] }
  0x4f   : > { %13285 = vmatprep.subr.msk.bf16.mxu1 %vm15539_vm1, %v13283_v17  ;;  %v13313_v17 = vpack.c.bf16 %v953_v12, %v952_v11  ;;  %v976_v10 = vld [vmem:[%s15535_s24 + $0x171] sm:$0xff]  ;;  %v977_v11 = vld [vmem:[%s15535_s24 + $0x179] sm:$0xff]  ;;  %v1557_v12 = vld [vmem:[%s15535_s24 + $0x82] sm:$0xff] }
  0x50   : > { %v1558_v13 = vld [vmem:[%s15535_s24 + $0x8a] sm:$0xff] }
  0x55   : > { %13240 = vmatpush3.bf16.xpose.msk.msra.mxu0 %vm15539_vm1, %v13238_v26  ;;  %v955_v26 = vld [vmem:[%s15535_s24 + $0xc9] sm:$0xff] }
  0x56   : > { %13288 = vmatpush3.bf16.xpose.msk.msra.mxu1 %vm15539_vm1, %v13286_v27  ;;  %13243 = vmatprep.subr.msk.bf16.mxu0 %vm15539_vm1, %v13241_v28  ;;  %v986_v27 = vld [vmem:[%s15535_s24 + $0x1c1] sm:$0xff]  ;;  %v987_v28 = vld [vmem:[%s15535_s24 + $0x1c9] sm:$0xff]  ;;  %v13319_v31 = vpack.c.bf16 %v955_v26, %v954_v25  ;;  %v1591_v26 = vld [vmem:[%s15535_s24 + $0x192] sm:$0xff] }
  0x57   : > { %13291 = vmatprep.subr.msk.bf16.mxu1 %vm15539_vm1, %v13289_v29  ;;  %v13316_v29 = vpack.c.bf16 %v937_v22, %v936_v21  ;;  %v13367_v32 = vpack.c.bf16 %v987_v28, %v986_v27  ;;  %v1542_v21 = vld [vmem:[%s15535_s24 + $0xa] sm:$0xff]  ;;  %v1573_v22 = vld [vmem:[%s15535_s24 + $0x102] sm:$0xff]  ;;  %v1560_v25 = vld [vmem:[%s15535_s24 + $0x9a] sm:$0xff] }
  0x58   : > { %v1592_v27 = vld [vmem:[%s15535_s24 + $0x19a] sm:$0xff] }
  0x5d   : > { %13246 = vmatpush3.bf16.xpose.msk.msra.mxu0 %vm15539_vm1, %v13244_v38  ;;  %v971_v38 = vld [vmem:[%s15535_s24 + $0x149] sm:$0xff] }
  0x5e   : > { %13294 = vmatpush3.bf16.xpose.msk.msra.mxu1 %vm15539_vm1, %v13292_v39  ;;  %13297 = vmatprep.subr.msk.bf16.mxu0 %vm15539_vm1, %v13295_v40  ;;  %v956_v39 = vld [vmem:[%s15535_s24 + $0xd1] sm:$0xff]  ;;  %v957_v40 = vld [vmem:[%s15535_s24 + $0xd9] sm:$0xff]  ;;  %v13370_v44 = vpack.c.bf16 %v971_v38, %v970_v37  ;;  %v1561_v38 = vld [vmem:[%s15535_s24 + $0xa2] sm:$0xff] }
  0x5f   : > { %13345 = vmatprep.subr.msk.bf16.mxu1 %vm15539_vm1, %v13343_v41  ;;  %v988_v41 = vld [vmem:[%s15535_s24 + $0x1d1] sm:$0xff]  ;;  %v13325_v45 = vpack.c.bf16 %v957_v40, %v956_v39  ;;  %v1593_v40 = vld [vmem:[%s15535_s24 + $0x1a2] sm:$0xff] }
  0x60   : > { %v13373_v46 = vpack.c.bf16 %v989_v42, %v988_v41  ;;  %v10340_v37 = vld [vmem:[%s18703_s1 + $0x50] sm:$0xff] }
  0x61   : > { %v1562_v39 = vld [vmem:[%s15535_s24 + $0xaa] sm:$0xff] }
  0x62   : > { %v1594_v41 = vld [vmem:[%s15535_s24 + $0x1aa] sm:$0xff] }
  0x64   : > { %11696 = vmatmul.mubr.msk.f32.vlgmr.msra.gmra.mrb[0].mxu0 %vm382_vm0, %v15524_v0 }
  0x65   : > { %11744 = vmatmul.mubr.msk.f32.vlgmr.msra.gmra.mrb[0].mxu1 %vm382_vm0, %v15524_v0  ;;  %13300 = vmatpush3.bf16.xpose.msk.msra.mxu0 %vm15539_vm1, %v13298_v50  ;;  %v965_v0 = vld [vmem:[%s15535_s24 + $0x119] sm:$0xff] }
  0x66   : > { %13348 = vmatpush3.bf16.xpose.msk.msra.mxu1 %vm15539_vm1, %v13346_v51  ;;  %13303 = vmatprep.subr.msk.bf16.mxu0 %vm15539_vm1, %v13301_v52  ;;  %v13352_v2 = vpack.c.bf16 %v965_v0, %v964_v58  ;;  %v973_v50 = vld [vmem:[%s15535_s24 + $0x159] sm:$0xff]  ;;  %v958_v51 = vld [vmem:[%s15535_s24 + $0xe1] sm:$0xff]  ;;  %v959_v52 = vld [vmem:[%s15535_s24 + $0xe9] sm:$0xff] }
  0x67   : > { %13351 = vmatprep.subr.msk.bf16.mxu1 %vm15539_vm1, %v13349_v53  ;;  %11697 = vmatprep.mubr.msk.f32.mxu0 %vm382_vm0, %v311_v54  ;;  %v990_v53 = vld [vmem:[%s15535_s24 + $0x1e1] sm:$0xff]  ;;  %v13376_v56 = vpack.c.bf16 %v973_v50, %v972_v49  ;;  %v13331_v57 = vpack.c.bf16 %v959_v52, %v958_v51  ;;  %v1578_v51 = vld [vmem:[%s15535_s24 + $0x12a] sm:$0xff]  ;;  %v1563_v52 = vld [vmem:[%s15535_s24 + $0xb2] sm:$0xff] }
  0x68   : > { %11745 = vmatprep.mubr.msk.f32.mxu1 %vm382_vm0, %v311_v54  ;;  %11698 = vmatmul.mubr.msk.f32.gmra.mrb[2].mxu0 %vm382_vm0, %v311_v54  ;;  %v942_v0 = vld [vmem:[%s15535_s24 + $0x61] sm:$0xff] }
  0x69   : > { %11746 = vmatmul.mubr.msk.f32.gmra.mrb[2].mxu1 %vm382_vm0, %v311_v54  ;;  %11699 = vmatprep.mubr.msk.f32.mxu0 %vm382_vm0, %v312_v55  ;;  %v991_v54 = vld [vmem:[%s15535_s24 + $0x1e9] sm:$0xff]  ;;  %v10342_v50 = vld [vmem:[%s18703_s1 + $0x60] sm:$0xff] }
  0x6a   : > { %11747 = vmatprep.mubr.msk.f32.mxu1 %vm382_vm0, %v312_v55  ;;  %v13379_v58 = vpack.c.bf16 %v991_v54, %v990_v53  ;;  %v1577_v49 = vld [vmem:[%s15535_s24 + $0x122] sm:$0xff]  ;;  %v1564_v53 = vld [vmem:[%s15535_s24 + $0xba] sm:$0xff]  ;;  %v1595_v54 = vld [vmem:[%s15535_s24 + $0x1b2] sm:$0xff] }
  0x6c   : > { %11700 = vmatmul.mubr.msk.f32.gmra.mrb[4].mxu0 %vm382_vm0, %v312_v55 }
  0x6d   : > { %13306 = vmatpush3.bf16.xpose.msk.msra.mxu0 %vm15539_vm1, %v13304_v63  ;;  %11748 = vmatmul.mubr.msk.f32.gmra.mrb[4].mxu1 %vm382_vm0, %v312_v55  ;;  %v13328_v55 = vpack.c.bf16 %v941_v48, %v940_v47  ;;  %v961_v63 = vld [vmem:[%s15535_s24 + $0xf9] sm:$0xff]  ;;  %v1545_v47 = vld [vmem:[%s15535_s24 + $0x22] sm:$0xff]  ;;  %v1546_v48 = vld [vmem:[%s15535_s24 + $0x2a] sm:$0xff] }
  0x6e   : > { %13354 = vmatpush3.bf16.xpose.msk.msra.mxu1 %vm15539_vm1, %v13352_v2  ;;  %13309 = vmatprep.subr.msk.bf16.mxu0 %vm15539_vm1, %v13307_v3  ;;  %v992_v2 = vld [vmem:[%s15535_s24 + $0x1f1] sm:$0xff]  ;;  %v993_v3 = vld [vmem:[%s15535_s24 + $0x1f9] sm:$0xff] }
  0x6f   : > { %13357 = vmatprep.subr.msk.bf16.mxu1 %vm15539_vm1, %v13355_v4  ;;  %11701 = vmatprep.mubr.msk.f32.mxu0 %vm382_vm0, %v313_v5  ;;  %v13334_v4 = vpack.c.bf16 %v943_v59, %v942_v0  ;;  %v13385_v7 = vpack.c.bf16 %v993_v3, %v992_v2  ;;  %v10343_v59 = vld [vmem:[%s18703_s1 + $0x68] sm:$0xff]  ;;  %v1580_v2 = vld [vmem:[%s15535_s24 + $0x13a] sm:$0xff] }
  0x70   : > { %11749 = vmatprep.mubr.msk.f32.mxu1 %vm382_vm0, %v313_v5  ;;  %11702 = vmatmul.mubr.msk.f32.gmra.mrb[6].mxu0 %vm382_vm0, %v313_v5  ;;  %v1565_v3 = vld [vmem:[%s15535_s24 + $0xc2] sm:$0xff] }
  0x71   : > { %11750 = vmatmul.mubr.msk.f32.gmra.mrb[6].mxu1 %vm382_vm0, %v313_v5  ;;  %11703 = vmatprep.mubr.msk.f32.mxu0 %vm382_vm0, %v314_v6  ;;  %v13382_v5 = vpack.c.bf16 %v975_v61, %v974_v60  ;;  %v1547_v60 = vld [vmem:[%s15535_s24 + $0x32] sm:$0xff]  ;;  %v1548_v61 = vld [vmem:[%s15535_s24 + $0x3a] sm:$0xff] }
  0x72   : > { %11751 = vmatprep.mubr.msk.f32.mxu1 %vm382_vm0, %v314_v6 }
  0x74   : > { %11704 = vmatmul.mubr.msk.f32.gmra.mrb[8].mxu0 %vm382_vm0, %v314_v6 }
  0x75   : > { %13312 = vmatpush3.bf16.xpose.msk.msra.mxu0 %vm15539_vm1, %v13310_v15  ;;  %11752 = vmatmul.mubr.msk.f32.gmra.mrb[8].mxu1 %vm382_vm0, %v314_v6  ;;  %v13337_v6 = vpack.c.bf16 %v961_v63, %v960_v62  ;;  %v1590_v15 = vld [vmem:[%s15535_s24 + $0x18a] sm:$0xff]  ;;  %v1579_v62 = vld [vmem:[%s15535_s24 + $0x132] sm:$0xff] }
  0x76   : > { %13360 = vmatpush3.bf16.xpose.msk.msra.mxu1 %vm15539_vm1, %v13358_v16  ;;  %13315 = vmatprep.subr.msk.bf16.mxu0 %vm15539_vm1, %v13313_v17  ;;  %v13340_v16 = vpack.c.bf16 %v945_v9, %v944_v8  ;;  %v13388_v17 = vpack.c.bf16 %v977_v11, %v976_v10  ;;  %v10344_v63 = vld [vmem:[%s18703_s1 + $0x70] sm:$0xff]  ;;  %v13460_v8 = vpack.c.bf16 %v1580_v2, %v1579_v62  ;;  %v10345_v11 = vld [vmem:[%s18703_s1 + $0x78] sm:$0xff]  ;;  %v2184_v62 = vld [vmem:[%s15535_s24 + $0x103] sm:$0xff] }
  0x77   : > { %13363 = vmatprep.subr.msk.bf16.mxu1 %vm15539_vm1, %v13361_v18  ;;  %11705 = vmatprep.mubr.msk.f32.mxu0 %vm382_vm0, %v315_v19  ;;  %v13391_v18 = vpack.c.bf16 %v1558_v13, %v1557_v12  ;;  %v1549_v12 = vld [vmem:[%s15535_s24 + $0x42] sm:$0xff]  ;;  %v1550_v13 = vld [vmem:[%s15535_s24 + $0x4a] sm:$0xff]  ;;  %v2170_v2 = vld [vmem:[%s15535_s24 + $0x93] sm:$0xff] }
  0x78   : > { %11753 = vmatprep.mubr.msk.f32.mxu1 %vm382_vm0, %v315_v19  ;;  %11706 = vmatmul.mubr.msk.f32.gmra.mrb[10].mxu0 %vm382_vm0, %v315_v19 }
  0x79   : > { %11754 = vmatmul.mubr.msk.f32.gmra.mrb[10].mxu1 %vm382_vm0, %v315_v19  ;;  %11707 = vmatprep.mubr.msk.f32.mxu0 %vm382_vm0, %v316_v20  ;;  %v13439_v19 = vpack.c.bf16 %v1590_v15, %v1589_v14  ;;  %v1581_v14 = vld [vmem:[%s15535_s24 + $0x142] sm:$0xff] }
  0x7a   : > { %11755 = vmatprep.mubr.msk.f32.mxu1 %vm382_vm0, %v316_v20  ;;  %v15986_v15 = vld [vmem:[%s18703_s1 + $0x80] sm:$0xff] }
  0x7c   : > { %11708 = vmatmul.mubr.msk.f32.gmra.mrb[12].mxu0 %vm382_vm0, %v316_v20 }
  0x7d   : > { %13318 = vmatpush3.bf16.xpose.msk.msra.mxu0 %vm15539_vm1, %v13316_v29  ;;  %11756 = vmatmul.mubr.msk.f32.gmra.mrb[12].mxu1 %vm382_vm0, %v316_v20  ;;  %v1541_v20 = vld [vmem:[%s15535_s24 + $0x2] sm:$0xff]  ;;  %v13442_v29 = vpack.c.bf16 %v1574_v23, %v1573_v22 }
  0x7e   : > { %13366 = vmatpush3.bf16.xpose.msk.msra.mxu1 %vm15539_vm1, %v13364_v30  ;;  %13321 = vmatprep.subr.msk.bf16.mxu0 %vm15539_vm1, %v13319_v31  ;;  %v13394_v28 = vpack.c.bf16 %v1542_v21, %v1541_v20  ;;  %v13397_v30 = vpack.c.bf16 %v1560_v25, %v1559_v24  ;;  %v13445_v31 = vpack.c.bf16 %v1592_v27, %v1591_v26  ;;  %v1600_v20 = vld [vmem:[%s15535_s24 + $0x1da] sm:$0xff]  ;;  %v1551_v25 = vld [vmem:[%s15535_s24 + $0x52] sm:$0xff] }
  0x7f   : > { %13369 = vmatprep.subr.msk.bf16.mxu1 %vm15539_vm1, %v13367_v32  ;;  %11709 = vmatprep.mubr.msk.f32.mxu0 %vm382_vm0, %v317_v33  ;;  %v10339_v32 = vld [vmem:[%s18703_s1 + $0x48] sm:$0xff]  ;;  %v13418_v21 = vpack.c.bf16 %v1550_v13, %v1549_v12  ;;  %v1552_v26 = vld [vmem:[%s15535_s24 + $0x5a] sm:$0xff]  ;;  %v1583_v27 = vld [vmem:[%s15535_s24 + $0x152] sm:$0xff] }
  0x80   : > { %11757 = vmatprep.mubr.msk.f32.mxu1 %vm382_vm0, %v317_v33  ;;  %11710 = vmatmul.mubr.msk.f32.gmra.mrb[14].mxu0 %vm382_vm0, %v317_v33  ;;  %v2155_v12 = vld [vmem:[%s15535_s24 + $0x1b] sm:$0xff]  ;;  %v2186_v13 = vld [vmem:[%s15535_s24 + $0x113] sm:$0xff] }
  0x81   : > { %11758 = vmatmul.mubr.msk.f32.gmra.mrb[14].mxu1 %vm382_vm0, %v317_v33  ;;  %11791 = vmatprep.mubr.msk.f32.mxu0 %vm382_vm0, %v15789_v34  ;;  %v1543_v33 = vld [vmem:[%s15535_s24 + $0x12] sm:$0xff] }
  0x82   : > { %11839 = vmatprep.mubr.msk.f32.mxu1 %vm382_vm0, %v15789_v34  ;;  %v13400_v42 = vpack.c.bf16 %v1544_v35, %v1543_v33  ;;  %v13424_v33 = vpack.c.bf16 %v1552_v26, %v1551_v25  ;;  %v2156_v25 = vld [vmem:[%s15535_s24 + $0x23] sm:$0xff]  ;;  %v2157_v26 = vld [vmem:[%s15535_s24 + $0x2b] sm:$0xff] }
  0x85   : > { %13324 = vmatpush3.bf16.xpose.msk.msra.mxu0 %vm15539_vm1, %v13322_v43 }
  0x86   : > { %13372 = vmatpush3.bf16.xpose.msk.msra.mxu1 %vm15539_vm1, %v13370_v44  ;;  %13327 = vmatprep.subr.msk.bf16.mxu0 %vm15539_vm1, %v13325_v45  ;;  %v13403_v44 = vpack.c.bf16 %v1562_v39, %v1561_v38  ;;  %v13451_v45 = vpack.c.bf16 %v1594_v41, %v1593_v40  ;;  %v1554_v38 = vld [vmem:[%s15535_s24 + $0x6a] sm:$0xff]  ;;  %v1585_v39 = vld [vmem:[%s15535_s24 + $0x162] sm:$0xff]  ;;  %v1571_v41 = vld [vmem:[%s15535_s24 + $0xf2] sm:$0xff] }
  0x87   : > { %13375 = vmatprep.subr.msk.bf16.mxu1 %vm15539_vm1, %v13373_v46  ;;  %v10341_v46 = vld [vmem:[%s18703_s1 + $0x58] sm:$0xff]  ;;  %v1586_v40 = vld [vmem:[%s15535_s24 + $0x16a] sm:$0xff] }
  0x8d   : > { %13330 = vmatpush3.bf16.xpose.msk.msra.mxu0 %vm15539_vm1, %v13328_v55  ;;  %v1596_v55 = vld [vmem:[%s15535_s24 + $0x1ba] sm:$0xff] }
  0x8e   : > { %13378 = vmatpush3.bf16.xpose.msk.msra.mxu1 %vm15539_vm1, %v13376_v56  ;;  %13333 = vmatprep.subr.msk.bf16.mxu0 %vm15539_vm1, %v13331_v57  ;;  %v13406_v56 = vpack.c.bf16 %v1546_v48, %v1545_v47  ;;  %v13454_v57 = vpack.c.bf16 %v1578_v51, %v1577_v49  ;;  %v13457_v0 = vpack.c.bf16 %v1596_v55, %v1595_v54  ;;  %v1555_v49 = vld [vmem:[%s15535_s24 + $0x72] sm:$0xff]  ;;  %v2200_v55 = vld [vmem:[%s15535_s24 + $0x183] sm:$0xff] }
  0x8f   : > { %13381 = vmatprep.subr.msk.bf16.mxu1 %vm15539_vm1, %v13379_v58  ;;  %v13409_v58 = vpack.c.bf16 %v1564_v53, %v1563_v52  ;;  %v1587_v51 = vld [vmem:[%s15535_s24 + $0x172] sm:$0xff]  ;;  %v1588_v52 = vld [vmem:[%s15535_s24 + $0x17a] sm:$0xff]  ;;  %v2168_v53 = vld [vmem:[%s15535_s24 + $0x83] sm:$0xff] }
  0x90   : > { %v2169_v54 = vld [vmem:[%s15535_s24 + $0x8b] sm:$0xff] }
  0x95   : > { %13336 = vmatpush3.bf16.xpose.msk.msra.mxu0 %vm15539_vm1, %v13334_v4  ;;  %v1566_v4 = vld [vmem:[%s15535_s24 + $0xca] sm:$0xff] }
  0x96   : > { %13384 = vmatpush3.bf16.xpose.msk.msra.mxu1 %vm15539_vm1, %v13382_v5  ;;  %13339 = vmatprep.subr.msk.bf16.mxu0 %vm15539_vm1, %v13337_v6  ;;  %v1597_v5 = vld [vmem:[%s15535_s24 + $0x1c2] sm:$0xff]  ;;  %v1598_v6 = vld [vmem:[%s15535_s24 + $0x1ca] sm:$0xff]  ;;  %v13415_v9 = vpack.c.bf16 %v1566_v4, %v1565_v3  ;;  %v2202_v4 = vld [vmem:[%s15535_s24 + $0x193] sm:$0xff] }
  0x97   : > { %13387 = vmatprep.subr.msk.bf16.mxu1 %vm15539_vm1, %v13385_v7  ;;  %v13412_v7 = vpack.c.bf16 %v1548_v61, %v1547_v60  ;;  %v13463_v10 = vpack.c.bf16 %v1598_v6, %v1597_v5  ;;  %v2152_v60 = vld [vmem:[%s15535_s24 + $0x3] sm:$0xff]  ;;  %v2153_v61 = vld [vmem:[%s15535_s24 + $0xb] sm:$0xff]  ;;  %v2171_v3 = vld [vmem:[%s15535_s24 + $0x9b] sm:$0xff] }
  0x98   : > { %v2203_v5 = vld [vmem:[%s15535_s24 + $0x19b] sm:$0xff]  ;;  %v13490_v6 = vpack.c.bf16 %v2153_v61, %v2152_v60 }
  0x99   : > { %v2211_v60 = vld [vmem:[%s15535_s24 + $0x1db] sm:$0xff] }
  0x9d   : > { %13342 = vmatpush3.bf16.xpose.msk.msra.mxu0 %vm15539_vm1, %v13340_v16  ;;  %v1582_v16 = vld [vmem:[%s15535_s24 + $0x14a] sm:$0xff] }
  0x9e   : > { %13390 = vmatpush3.bf16.xpose.msk.msra.mxu1 %vm15539_vm1, %v13388_v17  ;;  %13393 = vmatprep.subr.msk.bf16.mxu0 %vm15539_vm1, %v13391_v18  ;;  %v1567_v17 = vld [vmem:[%s15535_s24 + $0xd2] sm:$0xff]  ;;  %v1568_v18 = vld [vmem:[%s15535_s24 + $0xda] sm:$0xff]  ;;  %v13466_v22 = vpack.c.bf16 %v1582_v16, %v1581_v14  ;;  %v2172_v16 = vld [vmem:[%s15535_s24 + $0xa3] sm:$0xff] }
  0x9f   : > { %13441 = vmatprep.subr.msk.bf16.mxu1 %vm15539_vm1, %v13439_v19  ;;  %v1599_v19 = vld [vmem:[%s15535_s24 + $0x1d2] sm:$0xff]  ;;  %v13421_v23 = vpack.c.bf16 %v1568_v18, %v1567_v17  ;;  %v2204_v18 = vld [vmem:[%s15535_s24 + $0x1a3] sm:$0xff] }
  0xa0   : > { %v13469_v24 = vpack.c.bf16 %v1600_v20, %v1599_v19  ;;  %v10428_v14 = vld [vmem:[%s18703_s1 + $0x90] sm:$0xff] }
  0xa1   : > { %v2173_v17 = vld [vmem:[%s15535_s24 + $0xab] sm:$0xff] }
  0xa2   : > { %v2205_v19 = vld [vmem:[%s15535_s24 + $0x1ab] sm:$0xff] }
  0xa4   : > { %11792 = vmatmul.mubr.msk.f32.vlgmr.msra.gmra.mrb[0].mxu0 %vm382_vm0, %v15789_v34 }
  0xa5   : > { %11840 = vmatmul.mubr.msk.f32.vlgmr.msra.gmra.mrb[0].mxu1 %vm382_vm0, %v15789_v34  ;;  %13396 = vmatpush3.bf16.xpose.msk.msra.mxu0 %vm15539_vm1, %v13394_v28  ;;  %v1576_v34 = vld [vmem:[%s15535_s24 + $0x11a] sm:$0xff] }
  0xa6   : > { %13444 = vmatpush3.bf16.xpose.msk.msra.mxu1 %vm15539_vm1, %v13442_v29  ;;  %13399 = vmatprep.subr.msk.bf16.mxu0 %vm15539_vm1, %v13397_v30  ;;  %v13448_v43 = vpack.c.bf16 %v1576_v34, %v1575_v36  ;;  %v1584_v28 = vld [vmem:[%s15535_s24 + $0x15a] sm:$0xff]  ;;  %v1569_v29 = vld [vmem:[%s15535_s24 + $0xe2] sm:$0xff]  ;;  %v1570_v30 = vld [vmem:[%s15535_s24 + $0xea] sm:$0xff] }
  0xa7   : > { %13447 = vmatprep.subr.msk.bf16.mxu1 %vm15539_vm1, %v13445_v31  ;;  %11793 = vmatprep.mubr.msk.f32.mxu0 %vm382_vm0, %v10339_v32  ;;  %v1601_v31 = vld [vmem:[%s15535_s24 + $0x1e2] sm:$0xff]  ;;  %v13472_v35 = vpack.c.bf16 %v1584_v28, %v1583_v27  ;;  %v13427_v36 = vpack.c.bf16 %v1570_v30, %v1569_v29  ;;  %v2189_v29 = vld [vmem:[%s15535_s24 + $0x12b] sm:$0xff]  ;;  %v2174_v30 = vld [vmem:[%s15535_s24 + $0xb3] sm:$0xff] }
  0xa8   : > { %11841 = vmatprep.mubr.msk.f32.mxu1 %vm382_vm0, %v10339_v32  ;;  %11794 = vmatmul.mubr.msk.f32.gmra.mrb[2].mxu0 %vm382_vm0, %v10339_v32  ;;  %v1553_v34 = vld [vmem:[%s15535_s24 + $0x62] sm:$0xff] }
  0xa9   : > { %11842 = vmatmul.mubr.msk.f32.gmra.mrb[2].mxu1 %vm382_vm0, %v10339_v32  ;;  %11795 = vmatprep.mubr.msk.f32.mxu0 %vm382_vm0, %v10340_v37  ;;  %v1602_v32 = vld [vmem:[%s15535_s24 + $0x1ea] sm:$0xff]  ;;  %v10430_v28 = vld [vmem:[%s18703_s1 + $0xa0] sm:$0xff] }
  0xaa   : > { %11843 = vmatprep.mubr.msk.f32.mxu1 %vm382_vm0, %v10340_v37  ;;  %v2188_v27 = vld [vmem:[%s15535_s24 + $0x123] sm:$0xff] }
  0xac   : > { %11796 = vmatmul.mubr.msk.f32.gmra.mrb[4].mxu0 %vm382_vm0, %v10340_v37 }
  0xad   : > { %13402 = vmatpush3.bf16.xpose.msk.msra.mxu0 %vm15539_vm1, %v13400_v42  ;;  %11844 = vmatmul.mubr.msk.f32.gmra.mrb[4].mxu1 %vm382_vm0, %v10340_v37  ;;  %v13475_v37 = vpack.c.bf16 %v1602_v32, %v1601_v31  ;;  %v1572_v42 = vld [vmem:[%s15535_s24 + $0xfa] sm:$0xff] }
  0xae   : > { %13450 = vmatpush3.bf16.xpose.msk.msra.mxu1 %vm15539_vm1, %v13448_v43  ;;  %13405 = vmatprep.subr.msk.bf16.mxu0 %vm15539_vm1, %v13403_v44  ;;  %v1603_v43 = vld [vmem:[%s15535_s24 + $0x1f2] sm:$0xff]  ;;  %v1604_v44 = vld [vmem:[%s15535_s24 + $0x1fa] sm:$0xff]  ;;  %v13433_v47 = vpack.c.bf16 %v1572_v42, %v1571_v41 }
  0xaf   : > { %13453 = vmatprep.subr.msk.bf16.mxu1 %vm15539_vm1, %v13451_v45  ;;  %11797 = vmatprep.mubr.msk.f32.mxu0 %vm382_vm0, %v10341_v46  ;;  %v13430_v45 = vpack.c.bf16 %v1554_v38, %v1553_v34  ;;  %v13481_v48 = vpack.c.bf16 %v1604_v44, %v1603_v43  ;;  %v2175_v31 = vld [vmem:[%s15535_s24 + $0xbb] sm:$0xff]  ;;  %v2206_v32 = vld [vmem:[%s15535_s24 + $0x1b3] sm:$0xff]  ;;  %v10431_v38 = vld [vmem:[%s18703_s1 + $0xa8] sm:$0xff] }
  0xb0   : > { %11845 = vmatprep.mubr.msk.f32.mxu1 %vm382_vm0, %v10341_v46  ;;  %11798 = vmatmul.mubr.msk.f32.gmra.mrb[6].mxu0 %vm382_vm0, %v10341_v46  ;;  %v2190_v41 = vld [vmem:[%s15535_s24 + $0x133] sm:$0xff]  ;;  %v2191_v43 = vld [vmem:[%s15535_s24 + $0x13b] sm:$0xff]  ;;  %v2176_v44 = vld [vmem:[%s15535_s24 + $0xc3] sm:$0xff] }
  0xb1   : > { %11846 = vmatmul.mubr.msk.f32.gmra.mrb[6].mxu1 %vm382_vm0, %v10341_v46  ;;  %11799 = vmatprep.mubr.msk.f32.mxu0 %vm382_vm0, %v10342_v50  ;;  %v13478_v46 = vpack.c.bf16 %v1586_v40, %v1585_v39  ;;  %v2158_v39 = vld [vmem:[%s15535_s24 + $0x33] sm:$0xff]  ;;  %v2159_v40 = vld [vmem:[%s15535_s24 + $0x3b] sm:$0xff] }
  0xb2   : > { %11847 = vmatprep.mubr.msk.f32.mxu1 %vm382_vm0, %v10342_v50  ;;  %v10432_v42 = vld [vmem:[%s18703_s1 + $0xb0] sm:$0xff] }
  0xb4   : > { %11800 = vmatmul.mubr.msk.f32.gmra.mrb[8].mxu0 %vm382_vm0, %v10342_v50 }
  0xb5   : > { %13408 = vmatpush3.bf16.xpose.msk.msra.mxu0 %vm15539_vm1, %v13406_v56  ;;  %11848 = vmatmul.mubr.msk.f32.gmra.mrb[8].mxu1 %vm382_vm0, %v10342_v50  ;;  %v1556_v50 = vld [vmem:[%s15535_s24 + $0x7a] sm:$0xff]  ;;  %v2201_v56 = vld [vmem:[%s15535_s24 + $0x18b] sm:$0xff] }
  0xb6   : > { %13456 = vmatpush3.bf16.xpose.msk.msra.mxu1 %vm15539_vm1, %v13454_v57  ;;  %13411 = vmatprep.subr.msk.bf16.mxu0 %vm15539_vm1, %v13409_v58  ;;  %v13436_v57 = vpack.c.bf16 %v1556_v50, %v1555_v49  ;;  %v13484_v58 = vpack.c.bf16 %v1588_v52, %v1587_v51  ;;  %v13556_v49 = vpack.c.bf16 %v2191_v43, %v2190_v41  ;;  %v10433_v52 = vld [vmem:[%s18703_s1 + $0xb8] sm:$0xff]  ;;  %v2795_v41 = vld [vmem:[%s15535_s24 + $0x104] sm:$0xff] }
  0xb7   : > { %13459 = vmatprep.subr.msk.bf16.mxu1 %vm15539_vm1, %v13457_v0  ;;  %11801 = vmatprep.mubr.msk.f32.mxu0 %vm382_vm0, %v10343_v59  ;;  %v13487_v0 = vpack.c.bf16 %v2169_v54, %v2168_v53  ;;  %v2160_v53 = vld [vmem:[%s15535_s24 + $0x43] sm:$0xff]  ;;  %v2161_v54 = vld [vmem:[%s15535_s24 + $0x4b] sm:$0xff]  ;;  %v2781_v43 = vld [vmem:[%s15535_s24 + $0x94] sm:$0xff] }
  0xb8   : > { %11849 = vmatprep.mubr.msk.f32.mxu1 %vm382_vm0, %v10343_v59  ;;  %11802 = vmatmul.mubr.msk.f32.gmra.mrb[10].mxu0 %vm382_vm0, %v10343_v59  ;;  %v13514_v61 = vpack.c.bf16 %v2161_v54, %v2160_v53  ;;  %v2766_v53 = vld [vmem:[%s15535_s24 + $0x1c] sm:$0xff]  ;;  %v2797_v54 = vld [vmem:[%s15535_s24 + $0x114] sm:$0xff] }
  0xb9   : > { %11850 = vmatmul.mubr.msk.f32.gmra.mrb[10].mxu1 %vm382_vm0, %v10343_v59  ;;  %11803 = vmatprep.mubr.msk.f32.mxu0 %vm382_vm0, %v10344_v63  ;;  %v13535_v59 = vpack.c.bf16 %v2201_v56, %v2200_v55  ;;  %v2192_v55 = vld [vmem:[%s15535_s24 + $0x143] sm:$0xff] }
  0xba   : > { %11851 = vmatprep.mubr.msk.f32.mxu1 %vm382_vm0, %v10344_v63  ;;  %v16176_v56 = vld [vmem:[%s18703_s1 + $0xc0] sm:$0xff] }
  0xbc   : > { %11804 = vmatmul.mubr.msk.f32.gmra.mrb[12].mxu0 %vm382_vm0, %v10344_v63 }
  0xbd   : > { %13414 = vmatpush3.bf16.xpose.msk.msra.mxu0 %vm15539_vm1, %v13412_v7  ;;  %11852 = vmatmul.mubr.msk.f32.gmra.mrb[12].mxu1 %vm382_vm0, %v10344_v63  ;;  %v2185_v63 = vld [vmem:[%s15535_s24 + $0x10b] sm:$0xff] }
  0xbe   : > { %13462 = vmatpush3.bf16.xpose.msk.msra.mxu1 %vm15539_vm1, %v13460_v8  ;;  %13417 = vmatprep.subr.msk.bf16.mxu0 %vm15539_vm1, %v13415_v9  ;;  %v13538_v7 = vpack.c.bf16 %v2185_v63, %v2184_v62  ;;  %v13493_v8 = vpack.c.bf16 %v2171_v3, %v2170_v2  ;;  %v13541_v9 = vpack.c.bf16 %v2203_v5, %v2202_v4  ;;  %v2162_v3 = vld [vmem:[%s15535_s24 + $0x53] sm:$0xff]  ;;  %v2163_v4 = vld [vmem:[%s15535_s24 + $0x5b] sm:$0xff] }
  0xbf   : > { %13465 = vmatprep.subr.msk.bf16.mxu1 %vm15539_vm1, %v13463_v10  ;;  %11805 = vmatprep.mubr.msk.f32.mxu0 %vm382_vm0, %v10345_v11  ;;  %v10427_v10 = vld [vmem:[%s18703_s1 + $0x88] sm:$0xff]  ;;  %v2194_v5 = vld [vmem:[%s15535_s24 + $0x153] sm:$0xff] }
  0xc0   : > { %11853 = vmatprep.mubr.msk.f32.mxu1 %vm382_vm0, %v10345_v11  ;;  %11806 = vmatmul.mubr.msk.f32.gmra.mrb[14].mxu0 %vm382_vm0, %v10345_v11 }
  0xc1   : > { %11854 = vmatmul.mubr.msk.f32.gmra.mrb[14].mxu1 %vm382_vm0, %v10345_v11  ;;  %11887 = vmatprep.mubr.msk.f32.mxu0 %vm382_vm0, %v15986_v15  ;;  %v2154_v11 = vld [vmem:[%s15535_s24 + $0x13] sm:$0xff] }
  0xc2   : > { %11935 = vmatprep.mubr.msk.f32.mxu1 %vm382_vm0, %v15986_v15  ;;  %v13496_v20 = vpack.c.bf16 %v2155_v12, %v2154_v11  ;;  %v13520_v11 = vpack.c.bf16 %v2163_v4, %v2162_v3  ;;  %v2767_v3 = vld [vmem:[%s15535_s24 + $0x24] sm:$0xff]  ;;  %v2768_v4 = vld [vmem:[%s15535_s24 + $0x2c] sm:$0xff] }
  0xc5   : > { %13420 = vmatpush3.bf16.xpose.msk.msra.mxu0 %vm15539_vm1, %v13418_v21 }
  0xc6   : > { %13468 = vmatpush3.bf16.xpose.msk.msra.mxu1 %vm15539_vm1, %v13466_v22  ;;  %13423 = vmatprep.subr.msk.bf16.mxu0 %vm15539_vm1, %v13421_v23  ;;  %v13499_v22 = vpack.c.bf16 %v2173_v17, %v2172_v16  ;;  %v13547_v23 = vpack.c.bf16 %v2205_v19, %v2204_v18  ;;  %v2165_v16 = vld [vmem:[%s15535_s24 + $0x6b] sm:$0xff]  ;;  %v2196_v17 = vld [vmem:[%s15535_s24 + $0x163] sm:$0xff]  ;;  %v2182_v19 = vld [vmem:[%s15535_s24 + $0xf3] sm:$0xff] }
  0xc7   : > { %13471 = vmatprep.subr.msk.bf16.mxu1 %vm15539_vm1, %v13469_v24  ;;  %v10429_v24 = vld [vmem:[%s18703_s1 + $0x98] sm:$0xff]  ;;  %v2197_v18 = vld [vmem:[%s15535_s24 + $0x16b] sm:$0xff] }
  0xcd   : > { %13426 = vmatpush3.bf16.xpose.msk.msra.mxu0 %vm15539_vm1, %v13424_v33  ;;  %v2207_v33 = vld [vmem:[%s15535_s24 + $0x1bb] sm:$0xff] }
  0xce   : > { %13474 = vmatpush3.bf16.xpose.msk.msra.mxu1 %vm15539_vm1, %v13472_v35  ;;  %13429 = vmatprep.subr.msk.bf16.mxu0 %vm15539_vm1, %v13427_v36  ;;  %v13502_v35 = vpack.c.bf16 %v2157_v26, %v2156_v25  ;;  %v13550_v36 = vpack.c.bf16 %v2189_v29, %v2188_v27  ;;  %v13553_v34 = vpack.c.bf16 %v2207_v33, %v2206_v32  ;;  %v2166_v27 = vld [vmem:[%s15535_s24 + $0x73] sm:$0xff]  ;;  %v2811_v33 = vld [vmem:[%s15535_s24 + $0x184] sm:$0xff] }
  0xcf   : > { %13477 = vmatprep.subr.msk.bf16.mxu1 %vm15539_vm1, %v13475_v37  ;;  %v13505_v37 = vpack.c.bf16 %v2175_v31, %v2174_v30  ;;  %v2198_v29 = vld [vmem:[%s15535_s24 + $0x173] sm:$0xff]  ;;  %v2199_v30 = vld [vmem:[%s15535_s24 + $0x17b] sm:$0xff]  ;;  %v2779_v31 = vld [vmem:[%s15535_s24 + $0x84] sm:$0xff] }
  0xd0   : > { %v2780_v32 = vld [vmem:[%s15535_s24 + $0x8c] sm:$0xff] }
  0xd5   : > { %13432 = vmatpush3.bf16.xpose.msk.msra.mxu0 %vm15539_vm1, %v13430_v45  ;;  %v2177_v45 = vld [vmem:[%s15535_s24 + $0xcb] sm:$0xff] }
  0xd6   : > { %13480 = vmatpush3.bf16.xpose.msk.msra.mxu1 %vm15539_vm1, %v13478_v46  ;;  %13435 = vmatprep.subr.msk.bf16.mxu0 %vm15539_vm1, %v13433_v47  ;;  %v2208_v46 = vld [vmem:[%s15535_s24 + $0x1c3] sm:$0xff]  ;;  %v2209_v47 = vld [vmem:[%s15535_s24 + $0x1cb] sm:$0xff]  ;;  %v13511_v50 = vpack.c.bf16 %v2177_v45, %v2176_v44  ;;  %v2813_v45 = vld [vmem:[%s15535_s24 + $0x194] sm:$0xff] }
  0xd7   : > { %13483 = vmatprep.subr.msk.bf16.mxu1 %vm15539_vm1, %v13481_v48  ;;  %v13508_v48 = vpack.c.bf16 %v2159_v40, %v2158_v39  ;;  %v13559_v51 = vpack.c.bf16 %v2209_v47, %v2208_v46  ;;  %v2763_v39 = vld [vmem:[%s15535_s24 + $0x4] sm:$0xff]  ;;  %v2764_v40 = vld [vmem:[%s15535_s24 + $0xc] sm:$0xff]  ;;  %v2782_v44 = vld [vmem:[%s15535_s24 + $0x9c] sm:$0xff] }
  0xd8   : > { %v2814_v46 = vld [vmem:[%s15535_s24 + $0x19c] sm:$0xff]  ;;  %v13586_v47 = vpack.c.bf16 %v2764_v40, %v2763_v39 }
  0xd9   : > { %v2822_v39 = vld [vmem:[%s15535_s24 + $0x1dc] sm:$0xff] }
  0xdd   : > { %13438 = vmatpush3.bf16.xpose.msk.msra.mxu0 %vm15539_vm1, %v13436_v57  ;;  %v2193_v57 = vld [vmem:[%s15535_s24 + $0x14b] sm:$0xff] }
  0xde   : > { %13486 = vmatpush3.bf16.xpose.msk.msra.mxu1 %vm15539_vm1, %v13484_v58  ;;  %13489 = vmatprep.subr.msk.bf16.mxu0 %vm15539_vm1, %v13487_v0  ;;  %v2178_v58 = vld [vmem:[%s15535_s24 + $0xd3] sm:$0xff]  ;;  %v2179_v0 = vld [vmem:[%s15535_s24 + $0xdb] sm:$0xff]  ;;  %v13562_v62 = vpack.c.bf16 %v2193_v57, %v2192_v55  ;;  %v2783_v57 = vld [vmem:[%s15535_s24 + $0xa4] sm:$0xff] }
  0xdf   : > { %13537 = vmatprep.subr.msk.bf16.mxu1 %vm15539_vm1, %v13535_v59  ;;  %v2210_v59 = vld [vmem:[%s15535_s24 + $0x1d3] sm:$0xff]  ;;  %v13517_v63 = vpack.c.bf16 %v2179_v0, %v2178_v58  ;;  %v2815_v0 = vld [vmem:[%s15535_s24 + $0x1a4] sm:$0xff] }
  0xe0   : > { %v13565_v2 = vpack.c.bf16 %v2211_v60, %v2210_v59  ;;  %v10516_v55 = vld [vmem:[%s18703_s1 + $0xd0] sm:$0xff] }
  0xe1   : > { %v2784_v58 = vld [vmem:[%s15535_s24 + $0xac] sm:$0xff] }
  0xe2   : > { %v2816_v59 = vld [vmem:[%s15535_s24 + $0x1ac] sm:$0xff] }
  0xe4   : > { %11888 = vmatmul.mubr.msk.f32.vlgmr.msra.gmra.mrb[0].mxu0 %vm382_vm0, %v15986_v15 }
  0xe5   : > { %11936 = vmatmul.mubr.msk.f32.vlgmr.msra.gmra.mrb[0].mxu1 %vm382_vm0, %v15986_v15  ;;  %13492 = vmatpush3.bf16.xpose.msk.msra.mxu0 %vm15539_vm1, %v13490_v6  ;;  %v2187_v15 = vld [vmem:[%s15535_s24 + $0x11b] sm:$0xff] }
  0xe6   : > { %13540 = vmatpush3.bf16.xpose.msk.msra.mxu1 %vm15539_vm1, %v13538_v7  ;;  %13495 = vmatprep.subr.msk.bf16.mxu0 %vm15539_vm1, %v13493_v8  ;;  %v13544_v21 = vpack.c.bf16 %v2187_v15, %v2186_v13  ;;  %v2195_v6 = vld [vmem:[%s15535_s24 + $0x15b] sm:$0xff]  ;;  %v2180_v7 = vld [vmem:[%s15535_s24 + $0xe3] sm:$0xff]  ;;  %v2181_v8 = vld [vmem:[%s15535_s24 + $0xeb] sm:$0xff] }
  0xe7   : > { %13543 = vmatprep.subr.msk.bf16.mxu1 %vm15539_vm1, %v13541_v9  ;;  %11889 = vmatprep.mubr.msk.f32.mxu0 %vm382_vm0, %v10427_v10  ;;  %v2212_v9 = vld [vmem:[%s15535_s24 + $0x1e3] sm:$0xff]  ;;  %v13568_v12 = vpack.c.bf16 %v2195_v6, %v2194_v5  ;;  %v13523_v13 = vpack.c.bf16 %v2181_v8, %v2180_v7  ;;  %v2800_v7 = vld [vmem:[%s15535_s24 + $0x12c] sm:$0xff]  ;;  %v2785_v8 = vld [vmem:[%s15535_s24 + $0xb4] sm:$0xff] }
  0xe8   : > { %11937 = vmatprep.mubr.msk.f32.mxu1 %vm382_vm0, %v10427_v10  ;;  %11890 = vmatmul.mubr.msk.f32.gmra.mrb[2].mxu0 %vm382_vm0, %v10427_v10  ;;  %v2164_v15 = vld [vmem:[%s15535_s24 + $0x63] sm:$0xff] }
  0xe9   : > { %11938 = vmatmul.mubr.msk.f32.gmra.mrb[2].mxu1 %vm382_vm0, %v10427_v10  ;;  %11891 = vmatprep.mubr.msk.f32.mxu0 %vm382_vm0, %v10428_v14  ;;  %v2213_v10 = vld [vmem:[%s15535_s24 + $0x1eb] sm:$0xff]  ;;  %v10518_v6 = vld [vmem:[%s18703_s1 + $0xe0] sm:$0xff] }
  0xea   : > { %11939 = vmatprep.mubr.msk.f32.mxu1 %vm382_vm0, %v10428_v14  ;;  %v2799_v5 = vld [vmem:[%s15535_s24 + $0x124] sm:$0xff] }
  0xec   : > { %11892 = vmatmul.mubr.msk.f32.gmra.mrb[4].mxu0 %vm382_vm0, %v10428_v14 }
  0xed   : > { %13498 = vmatpush3.bf16.xpose.msk.msra.mxu0 %vm15539_vm1, %v13496_v20  ;;  %11940 = vmatmul.mubr.msk.f32.gmra.mrb[4].mxu1 %vm382_vm0, %v10428_v14  ;;  %v13571_v14 = vpack.c.bf16 %v2213_v10, %v2212_v9  ;;  %v2183_v20 = vld [vmem:[%s15535_s24 + $0xfb] sm:$0xff] }
  0xee   : > { %13546 = vmatpush3.bf16.xpose.msk.msra.mxu1 %vm15539_vm1, %v13544_v21  ;;  %13501 = vmatprep.subr.msk.bf16.mxu0 %vm15539_vm1, %v13499_v22  ;;  %v2214_v21 = vld [vmem:[%s15535_s24 + $0x1f3] sm:$0xff]  ;;  %v2215_v22 = vld [vmem:[%s15535_s24 + $0x1fb] sm:$0xff]  ;;  %v13529_v25 = vpack.c.bf16 %v2183_v20, %v2182_v19 }
  0xef   : > { %13549 = vmatprep.subr.msk.bf16.mxu1 %vm15539_vm1, %v13547_v23  ;;  %11893 = vmatprep.mubr.msk.f32.mxu0 %vm382_vm0, %v10429_v24  ;;  %v13526_v23 = vpack.c.bf16 %v2165_v16, %v2164_v15  ;;  %v13577_v26 = vpack.c.bf16 %v2215_v22, %v2214_v21  ;;  %v2786_v9 = vld [vmem:[%s15535_s24 + $0xbc] sm:$0xff]  ;;  %v2817_v10 = vld [vmem:[%s15535_s24 + $0x1b4] sm:$0xff]  ;;  %v10519_v16 = vld [vmem:[%s18703_s1 + $0xe8] sm:$0xff] }
  0xf0   : > { %11941 = vmatprep.mubr.msk.f32.mxu1 %vm382_vm0, %v10429_v24  ;;  %11894 = vmatmul.mubr.msk.f32.gmra.mrb[6].mxu0 %vm382_vm0, %v10429_v24  ;;  %v2801_v19 = vld [vmem:[%s15535_s24 + $0x134] sm:$0xff]  ;;  %v2802_v21 = vld [vmem:[%s15535_s24 + $0x13c] sm:$0xff]  ;;  %v2787_v22 = vld [vmem:[%s15535_s24 + $0xc4] sm:$0xff] }
  0xf1   : > { %11942 = vmatmul.mubr.msk.f32.gmra.mrb[6].mxu1 %vm382_vm0, %v10429_v24  ;;  %11895 = vmatprep.mubr.msk.f32.mxu0 %vm382_vm0, %v10430_v28  ;;  %v13574_v24 = vpack.c.bf16 %v2197_v18, %v2196_v17  ;;  %v2769_v17 = vld [vmem:[%s15535_s24 + $0x34] sm:$0xff]  ;;  %v2770_v18 = vld [vmem:[%s15535_s24 + $0x3c] sm:$0xff] }
  0xf2   : > { %11943 = vmatprep.mubr.msk.f32.mxu1 %vm382_vm0, %v10430_v28  ;;  %v10520_v20 = vld [vmem:[%s18703_s1 + $0xf0] sm:$0xff] }
  0xf4   : > { %11896 = vmatmul.mubr.msk.f32.gmra.mrb[8].mxu0 %vm382_vm0, %v10430_v28 }
  0xf5   : > { %13504 = vmatpush3.bf16.xpose.msk.msra.mxu0 %vm15539_vm1, %v13502_v35  ;;  %11944 = vmatmul.mubr.msk.f32.gmra.mrb[8].mxu1 %vm382_vm0, %v10430_v28  ;;  %v2167_v28 = vld [vmem:[%s15535_s24 + $0x7b] sm:$0xff]  ;;  %v2812_v35 = vld [vmem:[%s15535_s24 + $0x18c] sm:$0xff] }
  0xf6   : > { %13552 = vmatpush3.bf16.xpose.msk.msra.mxu1 %vm15539_vm1, %v13550_v36  ;;  %13507 = vmatprep.subr.msk.bf16.mxu0 %vm15539_vm1, %v13505_v37  ;;  %v13532_v36 = vpack.c.bf16 %v2167_v28, %v2166_v27  ;;  %v13580_v37 = vpack.c.bf16 %v2199_v30, %v2198_v29  ;;  %v13652_v27 = vpack.c.bf16 %v2802_v21, %v2801_v19  ;;  %v10521_v30 = vld [vmem:[%s18703_s1 + $0xf8] sm:$0xff]  ;;  %v3406_v19 = vld [vmem:[%s15535_s24 + $0x105] sm:$0xff] }
  0xf7   : > { %13555 = vmatprep.subr.msk.bf16.mxu1 %vm15539_vm1, %v13553_v34  ;;  %11897 = vmatprep.mubr.msk.f32.mxu0 %vm382_vm0, %v10431_v38  ;;  %v13583_v34 = vpack.c.bf16 %v2780_v32, %v2779_v31  ;;  %v2771_v31 = vld [vmem:[%s15535_s24 + $0x44] sm:$0xff]  ;;  %v2772_v32 = vld [vmem:[%s15535_s24 + $0x4c] sm:$0xff]  ;;  %v3392_v21 = vld [vmem:[%s15535_s24 + $0x95] sm:$0xff] }
  0xf8   : > { %11945 = vmatprep.mubr.msk.f32.mxu1 %vm382_vm0, %v10431_v38  ;;  %11898 = vmatmul.mubr.msk.f32.gmra.mrb[10].mxu0 %vm382_vm0, %v10431_v38  ;;  %v13610_v40 = vpack.c.bf16 %v2772_v32, %v2771_v31  ;;  %v3377_v31 = vld [vmem:[%s15535_s24 + $0x1d] sm:$0xff]  ;;  %v3408_v32 = vld [vmem:[%s15535_s24 + $0x115] sm:$0xff] }
  0xf9   : > { %11946 = vmatmul.mubr.msk.f32.gmra.mrb[10].mxu1 %vm382_vm0, %v10431_v38  ;;  %11899 = vmatprep.mubr.msk.f32.mxu0 %vm382_vm0, %v10432_v42  ;;  %v13631_v38 = vpack.c.bf16 %v2812_v35, %v2811_v33  ;;  %v2803_v33 = vld [vmem:[%s15535_s24 + $0x144] sm:$0xff] }
  0xfa   : > { %11947 = vmatprep.mubr.msk.f32.mxu1 %vm382_vm0, %v10432_v42  ;;  %v16366_v35 = vld [vmem:[%s18703_s1 + $0x100] sm:$0xff] }
  0xfc   : > { %11900 = vmatmul.mubr.msk.f32.gmra.mrb[12].mxu0 %vm382_vm0, %v10432_v42 }
  0xfd   : > { %13510 = vmatpush3.bf16.xpose.msk.msra.mxu0 %vm15539_vm1, %v13508_v48  ;;  %11948 = vmatmul.mubr.msk.f32.gmra.mrb[12].mxu1 %vm382_vm0, %v10432_v42  ;;  %v2796_v42 = vld [vmem:[%s15535_s24 + $0x10c] sm:$0xff] }
  0xfe   : > { %13558 = vmatpush3.bf16.xpose.msk.msra.mxu1 %vm15539_vm1, %v13556_v49  ;;  %13513 = vmatprep.subr.msk.bf16.mxu0 %vm15539_vm1, %v13511_v50  ;;  %v13634_v48 = vpack.c.bf16 %v2796_v42, %v2795_v41  ;;  %v13589_v49 = vpack.c.bf16 %v2782_v44, %v2781_v43  ;;  %v13637_v50 = vpack.c.bf16 %v2814_v46, %v2813_v45  ;;  %v2773_v44 = vld [vmem:[%s15535_s24 + $0x54] sm:$0xff]  ;;  %v2774_v45 = vld [vmem:[%s15535_s24 + $0x5c] sm:$0xff] }
  0xff   : > { %13561 = vmatprep.subr.msk.bf16.mxu1 %vm15539_vm1, %v13559_v51  ;;  %11901 = vmatprep.mubr.msk.f32.mxu0 %vm382_vm0, %v10433_v52  ;;  %v10515_v51 = vld [vmem:[%s18703_s1 + $0xc8] sm:$0xff]  ;;  %v2805_v46 = vld [vmem:[%s15535_s24 + $0x154] sm:$0xff] }
 0x100   : > { %11949 = vmatprep.mubr.msk.f32.mxu1 %vm382_vm0, %v10433_v52  ;;  %11902 = vmatmul.mubr.msk.f32.gmra.mrb[14].mxu0 %vm382_vm0, %v10433_v52 }
 0x101   : > { %11950 = vmatmul.mubr.msk.f32.gmra.mrb[14].mxu1 %vm382_vm0, %v10433_v52  ;;  %11983 = vmatprep.mubr.msk.f32.mxu0 %vm382_vm0, %v16176_v56  ;;  %v2765_v52 = vld [vmem:[%s15535_s24 + $0x14] sm:$0xff] }
 0x102   : > { %12031 = vmatprep.mubr.msk.f32.mxu1 %vm382_vm0, %v16176_v56  ;;  %v13592_v60 = vpack.c.bf16 %v2766_v53, %v2765_v52  ;;  %v13616_v52 = vpack.c.bf16 %v2774_v45, %v2773_v44  ;;  %v3378_v44 = vld [vmem:[%s15535_s24 + $0x25] sm:$0xff]  ;;  %v3379_v45 = vld [vmem:[%s15535_s24 + $0x2d] sm:$0xff] }
 0x105   : > { %13516 = vmatpush3.bf16.xpose.msk.msra.mxu0 %vm15539_vm1, %v13514_v61 }
 0x106   : > { %13564 = vmatpush3.bf16.xpose.msk.msra.mxu1 %vm15539_vm1, %v13562_v62  ;;  %13519 = vmatprep.subr.msk.bf16.mxu0 %vm15539_vm1, %v13517_v63  ;;  %v13595_v62 = vpack.c.bf16 %v2784_v58, %v2783_v57  ;;  %v13643_v63 = vpack.c.bf16 %v2816_v59, %v2815_v0  ;;  %v2776_v57 = vld [vmem:[%s15535_s24 + $0x6c] sm:$0xff]  ;;  %v2807_v58 = vld [vmem:[%s15535_s24 + $0x164] sm:$0xff]  ;;  %v2793_v59 = vld [vmem:[%s15535_s24 + $0xf4] sm:$0xff] }
 0x107   : > { %13567 = vmatprep.subr.msk.bf16.mxu1 %vm15539_vm1, %v13565_v2  ;;  %v10517_v2 = vld [vmem:[%s18703_s1 + $0xd8] sm:$0xff]  ;;  %v2808_v0 = vld [vmem:[%s15535_s24 + $0x16c] sm:$0xff] }
 0x10d   : > { %13522 = vmatpush3.bf16.xpose.msk.msra.mxu0 %vm15539_vm1, %v13520_v11  ;;  %v2818_v11 = vld [vmem:[%s15535_s24 + $0x1bc] sm:$0xff] }
 0x10e   : > { %13570 = vmatpush3.bf16.xpose.msk.msra.mxu1 %vm15539_vm1, %v13568_v12  ;;  %13525 = vmatprep.subr.msk.bf16.mxu0 %vm15539_vm1, %v13523_v13  ;;  %v13598_v12 = vpack.c.bf16 %v2768_v4, %v2767_v3  ;;  %v13646_v13 = vpack.c.bf16 %v2800_v7, %v2799_v5  ;;  %v13649_v15 = vpack.c.bf16 %v2818_v11, %v2817_v10  ;;  %v2777_v5 = vld [vmem:[%s15535_s24 + $0x74] sm:$0xff]  ;;  %v3422_v11 = vld [vmem:[%s15535_s24 + $0x185] sm:$0xff] }
 0x10f   : > { %13573 = vmatprep.subr.msk.bf16.mxu1 %vm15539_vm1, %v13571_v14  ;;  %v13601_v14 = vpack.c.bf16 %v2786_v9, %v2785_v8  ;;  %v2809_v7 = vld [vmem:[%s15535_s24 + $0x174] sm:$0xff]  ;;  %v2810_v8 = vld [vmem:[%s15535_s24 + $0x17c] sm:$0xff]  ;;  %v3390_v9 = vld [vmem:[%s15535_s24 + $0x85] sm:$0xff] }
 0x110   : > { %v3391_v10 = vld [vmem:[%s15535_s24 + $0x8d] sm:$0xff] }
 0x115   : > { %13528 = vmatpush3.bf16.xpose.msk.msra.mxu0 %vm15539_vm1, %v13526_v23  ;;  %v2788_v23 = vld [vmem:[%s15535_s24 + $0xcc] sm:$0xff] }
 0x116   : > { %13576 = vmatpush3.bf16.xpose.msk.msra.mxu1 %vm15539_vm1, %v13574_v24  ;;  %13531 = vmatprep.subr.msk.bf16.mxu0 %vm15539_vm1, %v13529_v25  ;;  %v2819_v24 = vld [vmem:[%s15535_s24 + $0x1c4] sm:$0xff]  ;;  %v2820_v25 = vld [vmem:[%s15535_s24 + $0x1cc] sm:$0xff]  ;;  %v13607_v28 = vpack.c.bf16 %v2788_v23, %v2787_v22  ;;  %v3424_v23 = vld [vmem:[%s15535_s24 + $0x195] sm:$0xff] }
 0x117   : > { %13579 = vmatprep.subr.msk.bf16.mxu1 %vm15539_vm1, %v13577_v26  ;;  %v13604_v26 = vpack.c.bf16 %v2770_v18, %v2769_v17  ;;  %v13655_v29 = vpack.c.bf16 %v2820_v25, %v2819_v24  ;;  %v3374_v17 = vld [vmem:[%s15535_s24 + $0x5] sm:$0xff]  ;;  %v3375_v18 = vld [vmem:[%s15535_s24 + $0xd] sm:$0xff]  ;;  %v3393_v22 = vld [vmem:[%s15535_s24 + $0x9d] sm:$0xff] }
 0x118   : > { %v3425_v24 = vld [vmem:[%s15535_s24 + $0x19d] sm:$0xff]  ;;  %v13682_v25 = vpack.c.bf16 %v3375_v18, %v3374_v17 }
 0x119   : > { %v3433_v17 = vld [vmem:[%s15535_s24 + $0x1dd] sm:$0xff] }
 0x11d   : > { %13534 = vmatpush3.bf16.xpose.msk.msra.mxu0 %vm15539_vm1, %v13532_v36  ;;  %v2804_v36 = vld [vmem:[%s15535_s24 + $0x14c] sm:$0xff] }
 0x11e   : > { %13582 = vmatpush3.bf16.xpose.msk.msra.mxu1 %vm15539_vm1, %v13580_v37  ;;  %13585 = vmatprep.subr.msk.bf16.mxu0 %vm15539_vm1, %v13583_v34  ;;  %v2789_v37 = vld [vmem:[%s15535_s24 + $0xd4] sm:$0xff]  ;;  %v2790_v34 = vld [vmem:[%s15535_s24 + $0xdc] sm:$0xff]  ;;  %v13658_v41 = vpack.c.bf16 %v2804_v36, %v2803_v33  ;;  %v3394_v36 = vld [vmem:[%s15535_s24 + $0xa5] sm:$0xff] }
 0x11f   : > { %13633 = vmatprep.subr.msk.bf16.mxu1 %vm15539_vm1, %v13631_v38  ;;  %v2821_v38 = vld [vmem:[%s15535_s24 + $0x1d4] sm:$0xff]  ;;  %v13613_v42 = vpack.c.bf16 %v2790_v34, %v2789_v37  ;;  %v3426_v34 = vld [vmem:[%s15535_s24 + $0x1a5] sm:$0xff] }
 0x120   : > { %v13661_v43 = vpack.c.bf16 %v2822_v39, %v2821_v38  ;;  %v10604_v33 = vld [vmem:[%s18703_s1 + $0x110] sm:$0xff] }
 0x121   : > { %v3395_v37 = vld [vmem:[%s15535_s24 + $0xad] sm:$0xff] }
 0x122   : > { %v3427_v38 = vld [vmem:[%s15535_s24 + $0x1ad] sm:$0xff] }
 0x124   : > { %11984 = vmatmul.mubr.msk.f32.vlgmr.msra.gmra.mrb[0].mxu0 %vm382_vm0, %v16176_v56 }
 0x125   : > { %12032 = vmatmul.mubr.msk.f32.vlgmr.msra.gmra.mrb[0].mxu1 %vm382_vm0, %v16176_v56  ;;  %13588 = vmatpush3.bf16.xpose.msk.msra.mxu0 %vm15539_vm1, %v13586_v47  ;;  %v2798_v56 = vld [vmem:[%s15535_s24 + $0x11c] sm:$0xff] }
 0x126   : > { %13636 = vmatpush3.bf16.xpose.msk.msra.mxu1 %vm15539_vm1, %v13634_v48  ;;  %13591 = vmatprep.subr.msk.bf16.mxu0 %vm15539_vm1, %v13589_v49  ;;  %v13640_v61 = vpack.c.bf16 %v2798_v56, %v2797_v54  ;;  %v2806_v47 = vld [vmem:[%s15535_s24 + $0x15c] sm:$0xff]  ;;  %v2791_v48 = vld [vmem:[%s15535_s24 + $0xe4] sm:$0xff]  ;;  %v2792_v49 = vld [vmem:[%s15535_s24 + $0xec] sm:$0xff] }
 0x127   : > { %13639 = vmatprep.subr.msk.bf16.mxu1 %vm15539_vm1, %v13637_v50  ;;  %11985 = vmatprep.mubr.msk.f32.mxu0 %vm382_vm0, %v10515_v51  ;;  %v2823_v50 = vld [vmem:[%s15535_s24 + $0x1e4] sm:$0xff]  ;;  %v13664_v53 = vpack.c.bf16 %v2806_v47, %v2805_v46  ;;  %v13619_v54 = vpack.c.bf16 %v2792_v49, %v2791_v48  ;;  %v3411_v48 = vld [vmem:[%s15535_s24 + $0x12d] sm:$0xff]  ;;  %v3396_v49 = vld [vmem:[%s15535_s24 + $0xb5] sm:$0xff] }
 0x128   : > { %12033 = vmatprep.mubr.msk.f32.mxu1 %vm382_vm0, %v10515_v51  ;;  %11986 = vmatmul.mubr.msk.f32.gmra.mrb[2].mxu0 %vm382_vm0, %v10515_v51  ;;  %v2775_v56 = vld [vmem:[%s15535_s24 + $0x64] sm:$0xff] }
 0x129   : > { %12034 = vmatmul.mubr.msk.f32.gmra.mrb[2].mxu1 %vm382_vm0, %v10515_v51  ;;  %11987 = vmatprep.mubr.msk.f32.mxu0 %vm382_vm0, %v10516_v55  ;;  %v2824_v51 = vld [vmem:[%s15535_s24 + $0x1ec] sm:$0xff]  ;;  %v10606_v47 = vld [vmem:[%s18703_s1 + $0x120] sm:$0xff] }
 0x12a   : > { %12035 = vmatprep.mubr.msk.f32.mxu1 %vm382_vm0, %v10516_v55  ;;  %v3410_v46 = vld [vmem:[%s15535_s24 + $0x125] sm:$0xff] }
 0x12c   : > { %11988 = vmatmul.mubr.msk.f32.gmra.mrb[4].mxu0 %vm382_vm0, %v10516_v55 }
 0x12d   : > { %13594 = vmatpush3.bf16.xpose.msk.msra.mxu0 %vm15539_vm1, %v13592_v60  ;;  %12036 = vmatmul.mubr.msk.f32.gmra.mrb[4].mxu1 %vm382_vm0, %v10516_v55  ;;  %v13667_v55 = vpack.c.bf16 %v2824_v51, %v2823_v50  ;;  %v2794_v60 = vld [vmem:[%s15535_s24 + $0xfc] sm:$0xff] }
 0x12e   : > { %13642 = vmatpush3.bf16.xpose.msk.msra.mxu1 %vm15539_vm1, %v13640_v61  ;;  %13597 = vmatprep.subr.msk.bf16.mxu0 %vm15539_vm1, %v13595_v62  ;;  %v2825_v61 = vld [vmem:[%s15535_s24 + $0x1f4] sm:$0xff]  ;;  %v2826_v62 = vld [vmem:[%s15535_s24 + $0x1fc] sm:$0xff]  ;;  %v13625_v3 = vpack.c.bf16 %v2794_v60, %v2793_v59 }
 0x12f   : > { %13645 = vmatprep.subr.msk.bf16.mxu1 %vm15539_vm1, %v13643_v63  ;;  %11989 = vmatprep.mubr.msk.f32.mxu0 %vm382_vm0, %v10517_v2  ;;  %v13622_v63 = vpack.c.bf16 %v2776_v57, %v2775_v56  ;;  %v13673_v4 = vpack.c.bf16 %v2826_v62, %v2825_v61  ;;  %v3397_v50 = vld [vmem:[%s15535_s24 + $0xbd] sm:$0xff]  ;;  %v3428_v51 = vld [vmem:[%s15535_s24 + $0x1b5] sm:$0xff]  ;;  %v10607_v57 = vld [vmem:[%s18703_s1 + $0x128] sm:$0xff] }
 0x130   : > { %12037 = vmatprep.mubr.msk.f32.mxu1 %vm382_vm0, %v10517_v2  ;;  %11990 = vmatmul.mubr.msk.f32.gmra.mrb[6].mxu0 %vm382_vm0, %v10517_v2  ;;  %v3412_v59 = vld [vmem:[%s15535_s24 + $0x135] sm:$0xff]  ;;  %v3413_v61 = vld [vmem:[%s15535_s24 + $0x13d] sm:$0xff]  ;;  %v3398_v62 = vld [vmem:[%s15535_s24 + $0xc5] sm:$0xff] }
 0x131   : > { %12038 = vmatmul.mubr.msk.f32.gmra.mrb[6].mxu1 %vm382_vm0, %v10517_v2  ;;  %11991 = vmatprep.mubr.msk.f32.mxu0 %vm382_vm0, %v10518_v6  ;;  %v13670_v2 = vpack.c.bf16 %v2808_v0, %v2807_v58  ;;  %v3380_v58 = vld [vmem:[%s15535_s24 + $0x35] sm:$0xff]  ;;  %v3381_v0 = vld [vmem:[%s15535_s24 + $0x3d] sm:$0xff] }
 0x132   : > { %12039 = vmatprep.mubr.msk.f32.mxu1 %vm382_vm0, %v10518_v6  ;;  %v10608_v60 = vld [vmem:[%s18703_s1 + $0x130] sm:$0xff] }
 0x134   : > { %11992 = vmatmul.mubr.msk.f32.gmra.mrb[8].mxu0 %vm382_vm0, %v10518_v6 }
 0x135   : > { %13600 = vmatpush3.bf16.xpose.msk.msra.mxu0 %vm15539_vm1, %v13598_v12  ;;  %12040 = vmatmul.mubr.msk.f32.gmra.mrb[8].mxu1 %vm382_vm0, %v10518_v6  ;;  %v2778_v6 = vld [vmem:[%s15535_s24 + $0x7c] sm:$0xff]  ;;  %v3423_v12 = vld [vmem:[%s15535_s24 + $0x18d] sm:$0xff] }
 0x136   : > { %13648 = vmatpush3.bf16.xpose.msk.msra.mxu1 %vm15539_vm1, %v13646_v13  ;;  %13603 = vmatprep.subr.msk.bf16.mxu0 %vm15539_vm1, %v13601_v14  ;;  %v13628_v13 = vpack.c.bf16 %v2778_v6, %v2777_v5  ;;  %v13676_v14 = vpack.c.bf16 %v2810_v8, %v2809_v7  ;;  %v13748_v5 = vpack.c.bf16 %v3413_v61, %v3412_v59  ;;  %v10609_v8 = vld [vmem:[%s18703_s1 + $0x138] sm:$0xff]  ;;  %v4017_v59 = vld [vmem:[%s15535_s24 + $0x106] sm:$0xff] }
 0x137   : > { %13651 = vmatprep.subr.msk.bf16.mxu1 %vm15539_vm1, %v13649_v15  ;;  %11993 = vmatprep.mubr.msk.f32.mxu0 %vm382_vm0, %v10519_v16  ;;  %v13679_v15 = vpack.c.bf16 %v3391_v10, %v3390_v9  ;;  %v3382_v9 = vld [vmem:[%s15535_s24 + $0x45] sm:$0xff]  ;;  %v3383_v10 = vld [vmem:[%s15535_s24 + $0x4d] sm:$0xff]  ;;  %v4003_v61 = vld [vmem:[%s15535_s24 + $0x96] sm:$0xff] }
 0x138   : > { %12041 = vmatprep.mubr.msk.f32.mxu1 %vm382_vm0, %v10519_v16  ;;  %11994 = vmatmul.mubr.msk.f32.gmra.mrb[10].mxu0 %vm382_vm0, %v10519_v16  ;;  %v13706_v18 = vpack.c.bf16 %v3383_v10, %v3382_v9  ;;  %v3988_v9 = vld [vmem:[%s15535_s24 + $0x1e] sm:$0xff]  ;;  %v4019_v10 = vld [vmem:[%s15535_s24 + $0x116] sm:$0xff] }
 0x139   : > { %12042 = vmatmul.mubr.msk.f32.gmra.mrb[10].mxu1 %vm382_vm0, %v10519_v16  ;;  %11995 = vmatprep.mubr.msk.f32.mxu0 %vm382_vm0, %v10520_v20  ;;  %v13727_v16 = vpack.c.bf16 %v3423_v12, %v3422_v11  ;;  %v3414_v11 = vld [vmem:[%s15535_s24 + $0x145] sm:$0xff] }
 0x13a   : > { %12043 = vmatprep.mubr.msk.f32.mxu1 %vm382_vm0, %v10520_v20  ;;  %v16556_v12 = vld [vmem:[%s18703_s1 + $0x140] sm:$0xff] }
 0x13c   : > { %11996 = vmatmul.mubr.msk.f32.gmra.mrb[12].mxu0 %vm382_vm0, %v10520_v20 }
 0x13d   : > { %13606 = vmatpush3.bf16.xpose.msk.msra.mxu0 %vm15539_vm1, %v13604_v26  ;;  %12044 = vmatmul.mubr.msk.f32.gmra.mrb[12].mxu1 %vm382_vm0, %v10520_v20  ;;  %v3407_v20 = vld [vmem:[%s15535_s24 + $0x10d] sm:$0xff] }
 0x13e   : > { %13654 = vmatpush3.bf16.xpose.msk.msra.mxu1 %vm15539_vm1, %v13652_v27  ;;  %13609 = vmatprep.subr.msk.bf16.mxu0 %vm15539_vm1, %v13607_v28  ;;  %v13730_v26 = vpack.c.bf16 %v3407_v20, %v3406_v19  ;;  %v13685_v27 = vpack.c.bf16 %v3393_v22, %v3392_v21  ;;  %v13733_v28 = vpack.c.bf16 %v3425_v24, %v3424_v23  ;;  %v3384_v22 = vld [vmem:[%s15535_s24 + $0x55] sm:$0xff]  ;;  %v3385_v23 = vld [vmem:[%s15535_s24 + $0x5d] sm:$0xff] }
 0x13f   : > { %13657 = vmatprep.subr.msk.bf16.mxu1 %vm15539_vm1, %v13655_v29  ;;  %11997 = vmatprep.mubr.msk.f32.mxu0 %vm382_vm0, %v10521_v30  ;;  %v10603_v29 = vld [vmem:[%s18703_s1 + $0x108] sm:$0xff]  ;;  %v3416_v24 = vld [vmem:[%s15535_s24 + $0x155] sm:$0xff] }
 0x140   : > { %12045 = vmatprep.mubr.msk.f32.mxu1 %vm382_vm0, %v10521_v30  ;;  %11998 = vmatmul.mubr.msk.f32.gmra.mrb[14].mxu0 %vm382_vm0, %v10521_v30 }
 0x141   : > { %12046 = vmatmul.mubr.msk.f32.gmra.mrb[14].mxu1 %vm382_vm0, %v10521_v30  ;;  %12079 = vmatprep.mubr.msk.f32.mxu0 %vm382_vm0, %v16366_v35  ;;  %v3376_v30 = vld [vmem:[%s15535_s24 + $0x15] sm:$0xff] }
 0x142   : > { %12127 = vmatprep.mubr.msk.f32.mxu1 %vm382_vm0, %v16366_v35  ;;  %v13688_v39 = vpack.c.bf16 %v3377_v31, %v3376_v30  ;;  %v13712_v30 = vpack.c.bf16 %v3385_v23, %v3384_v22  ;;  %v3989_v22 = vld [vmem:[%s15535_s24 + $0x26] sm:$0xff]  ;;  %v3990_v23 = vld [vmem:[%s15535_s24 + $0x2e] sm:$0xff] }
 0x145   : > { %13612 = vmatpush3.bf16.xpose.msk.msra.mxu0 %vm15539_vm1, %v13610_v40 }
 0x146   : > { %13660 = vmatpush3.bf16.xpose.msk.msra.mxu1 %vm15539_vm1, %v13658_v41  ;;  %13615 = vmatprep.subr.msk.bf16.mxu0 %vm15539_vm1, %v13613_v42  ;;  %v13691_v41 = vpack.c.bf16 %v3395_v37, %v3394_v36  ;;  %v13739_v42 = vpack.c.bf16 %v3427_v38, %v3426_v34  ;;  %v3387_v36 = vld [vmem:[%s15535_s24 + $0x6d] sm:$0xff]  ;;  %v3418_v37 = vld [vmem:[%s15535_s24 + $0x165] sm:$0xff]  ;;  %v3404_v38 = vld [vmem:[%s15535_s24 + $0xf5] sm:$0xff] }
 0x147   : > { %13663 = vmatprep.subr.msk.bf16.mxu1 %vm15539_vm1, %v13661_v43  ;;  %v10605_v43 = vld [vmem:[%s18703_s1 + $0x118] sm:$0xff]  ;;  %v3419_v34 = vld [vmem:[%s15535_s24 + $0x16d] sm:$0xff] }
 0x14d   : > { %13618 = vmatpush3.bf16.xpose.msk.msra.mxu0 %vm15539_vm1, %v13616_v52  ;;  %v3429_v52 = vld [vmem:[%s15535_s24 + $0x1bd] sm:$0xff] }
 0x14e   : > { %13666 = vmatpush3.bf16.xpose.msk.msra.mxu1 %vm15539_vm1, %v13664_v53  ;;  %13621 = vmatprep.subr.msk.bf16.mxu0 %vm15539_vm1, %v13619_v54  ;;  %v13694_v53 = vpack.c.bf16 %v3379_v45, %v3378_v44  ;;  %v13742_v54 = vpack.c.bf16 %v3411_v48, %v3410_v46  ;;  %v13745_v56 = vpack.c.bf16 %v3429_v52, %v3428_v51  ;;  %v3388_v46 = vld [vmem:[%s15535_s24 + $0x75] sm:$0xff]  ;;  %v4033_v52 = vld [vmem:[%s15535_s24 + $0x186] sm:$0xff] }
 0x14f   : > { %13669 = vmatprep.subr.msk.bf16.mxu1 %vm15539_vm1, %v13667_v55  ;;  %v13697_v55 = vpack.c.bf16 %v3397_v50, %v3396_v49  ;;  %v3420_v48 = vld [vmem:[%s15535_s24 + $0x175] sm:$0xff]  ;;  %v3421_v49 = vld [vmem:[%s15535_s24 + $0x17d] sm:$0xff]  ;;  %v4001_v50 = vld [vmem:[%s15535_s24 + $0x86] sm:$0xff] }
 0x150   : > { %v4002_v51 = vld [vmem:[%s15535_s24 + $0x8e] sm:$0xff] }
 0x155   : > { %13624 = vmatpush3.bf16.xpose.msk.msra.mxu0 %vm15539_vm1, %v13622_v63  ;;  %v3399_v63 = vld [vmem:[%s15535_s24 + $0xcd] sm:$0xff] }
 0x156   : > { %13672 = vmatpush3.bf16.xpose.msk.msra.mxu1 %vm15539_vm1, %v13670_v2  ;;  %13627 = vmatprep.subr.msk.bf16.mxu0 %vm15539_vm1, %v13625_v3  ;;  %v3430_v2 = vld [vmem:[%s15535_s24 + $0x1c5] sm:$0xff]  ;;  %v3431_v3 = vld [vmem:[%s15535_s24 + $0x1cd] sm:$0xff]  ;;  %v13703_v6 = vpack.c.bf16 %v3399_v63, %v3398_v62  ;;  %v4035_v63 = vld [vmem:[%s15535_s24 + $0x196] sm:$0xff] }
 0x157   : > { %13675 = vmatprep.subr.msk.bf16.mxu1 %vm15539_vm1, %v13673_v4  ;;  %v13700_v4 = vpack.c.bf16 %v3381_v0, %v3380_v58  ;;  %v13751_v7 = vpack.c.bf16 %v3431_v3, %v3430_v2  ;;  %v3985_v58 = vld [vmem:[%s15535_s24 + $0x6] sm:$0xff]  ;;  %v3986_v0 = vld [vmem:[%s15535_s24 + $0xe] sm:$0xff]  ;;  %v4004_v62 = vld [vmem:[%s15535_s24 + $0x9e] sm:$0xff] }
 0x158   : > { %v4036_v2 = vld [vmem:[%s15535_s24 + $0x19e] sm:$0xff]  ;;  %v13778_v3 = vpack.c.bf16 %v3986_v0, %v3985_v58 }
 0x159   : > { %v4044_v58 = vld [vmem:[%s15535_s24 + $0x1de] sm:$0xff] }
 0x15d   : > { %13630 = vmatpush3.bf16.xpose.msk.msra.mxu0 %vm15539_vm1, %v13628_v13  ;;  %v3415_v13 = vld [vmem:[%s15535_s24 + $0x14d] sm:$0xff] }
 0x15e   : > { %13678 = vmatpush3.bf16.xpose.msk.msra.mxu1 %vm15539_vm1, %v13676_v14  ;;  %13681 = vmatprep.subr.msk.bf16.mxu0 %vm15539_vm1, %v13679_v15  ;;  %v3400_v14 = vld [vmem:[%s15535_s24 + $0xd5] sm:$0xff]  ;;  %v3401_v15 = vld [vmem:[%s15535_s24 + $0xdd] sm:$0xff]  ;;  %v13754_v19 = vpack.c.bf16 %v3415_v13, %v3414_v11  ;;  %v4005_v13 = vld [vmem:[%s15535_s24 + $0xa6] sm:$0xff] }
 0x15f   : > { %13729 = vmatprep.subr.msk.bf16.mxu1 %vm15539_vm1, %v13727_v16  ;;  %v3432_v16 = vld [vmem:[%s15535_s24 + $0x1d5] sm:$0xff]  ;;  %v13709_v20 = vpack.c.bf16 %v3401_v15, %v3400_v14  ;;  %v4037_v15 = vld [vmem:[%s15535_s24 + $0x1a6] sm:$0xff] }
 0x160   : > { %v13757_v21 = vpack.c.bf16 %v3433_v17, %v3432_v16  ;;  %v10692_v11 = vld [vmem:[%s18703_s1 + $0x150] sm:$0xff] }
 0x161   : > { %v4006_v14 = vld [vmem:[%s15535_s24 + $0xae] sm:$0xff] }
 0x162   : > { %v4038_v16 = vld [vmem:[%s15535_s24 + $0x1ae] sm:$0xff] }
 0x164   : > { %12080 = vmatmul.mubr.msk.f32.vlgmr.msra.gmra.mrb[0].mxu0 %vm382_vm0, %v16366_v35 }
 0x165   : > { %12128 = vmatmul.mubr.msk.f32.vlgmr.msra.gmra.mrb[0].mxu1 %vm382_vm0, %v16366_v35  ;;  %13684 = vmatpush3.bf16.xpose.msk.msra.mxu0 %vm15539_vm1, %v13682_v25  ;;  %v3409_v35 = vld [vmem:[%s15535_s24 + $0x11d] sm:$0xff] }
 0x166   : > { %13732 = vmatpush3.bf16.xpose.msk.msra.mxu1 %vm15539_vm1, %v13730_v26  ;;  %13687 = vmatprep.subr.msk.bf16.mxu0 %vm15539_vm1, %v13685_v27  ;;  %v13736_v40 = vpack.c.bf16 %v3409_v35, %v3408_v32  ;;  %v3417_v25 = vld [vmem:[%s15535_s24 + $0x15d] sm:$0xff]  ;;  %v3402_v26 = vld [vmem:[%s15535_s24 + $0xe5] sm:$0xff]  ;;  %v3403_v27 = vld [vmem:[%s15535_s24 + $0xed] sm:$0xff] }
 0x167   : > { %13735 = vmatprep.subr.msk.bf16.mxu1 %vm15539_vm1, %v13733_v28  ;;  %12081 = vmatprep.mubr.msk.f32.mxu0 %vm382_vm0, %v10603_v29  ;;  %v3434_v28 = vld [vmem:[%s15535_s24 + $0x1e5] sm:$0xff]  ;;  %v13760_v31 = vpack.c.bf16 %v3417_v25, %v3416_v24  ;;  %v13715_v32 = vpack.c.bf16 %v3403_v27, %v3402_v26  ;;  %v4022_v26 = vld [vmem:[%s15535_s24 + $0x12e] sm:$0xff]  ;;  %v4007_v27 = vld [vmem:[%s15535_s24 + $0xb6] sm:$0xff] }
 0x168   : > { %12129 = vmatprep.mubr.msk.f32.mxu1 %vm382_vm0, %v10603_v29  ;;  %12082 = vmatmul.mubr.msk.f32.gmra.mrb[2].mxu0 %vm382_vm0, %v10603_v29  ;;  %v3386_v35 = vld [vmem:[%s15535_s24 + $0x65] sm:$0xff] }
 0x169   : > { %12130 = vmatmul.mubr.msk.f32.gmra.mrb[2].mxu1 %vm382_vm0, %v10603_v29  ;;  %12083 = vmatprep.mubr.msk.f32.mxu0 %vm382_vm0, %v10604_v33  ;;  %v3435_v29 = vld [vmem:[%s15535_s24 + $0x1ed] sm:$0xff]  ;;  %v10694_v25 = vld [vmem:[%s18703_s1 + $0x160] sm:$0xff] }
 0x16a   : > { %12131 = vmatprep.mubr.msk.f32.mxu1 %vm382_vm0, %v10604_v33  ;;  %v4021_v24 = vld [vmem:[%s15535_s24 + $0x126] sm:$0xff] }
 0x16c   : > { %12084 = vmatmul.mubr.msk.f32.gmra.mrb[4].mxu0 %vm382_vm0, %v10604_v33 }
 0x16d   : > { %13690 = vmatpush3.bf16.xpose.msk.msra.mxu0 %vm15539_vm1, %v13688_v39  ;;  %12132 = vmatmul.mubr.msk.f32.gmra.mrb[4].mxu1 %vm382_vm0, %v10604_v33  ;;  %v13763_v33 = vpack.c.bf16 %v3435_v29, %v3434_v28  ;;  %v3405_v39 = vld [vmem:[%s15535_s24 + $0xfd] sm:$0xff] }
 0x16e   : > { %13738 = vmatpush3.bf16.xpose.msk.msra.mxu1 %vm15539_vm1, %v13736_v40  ;;  %13693 = vmatprep.subr.msk.bf16.mxu0 %vm15539_vm1, %v13691_v41  ;;  %v3436_v40 = vld [vmem:[%s15535_s24 + $0x1f5] sm:$0xff]  ;;  %v3437_v41 = vld [vmem:[%s15535_s24 + $0x1fd] sm:$0xff]  ;;  %v13721_v44 = vpack.c.bf16 %v3405_v39, %v3404_v38 }
 0x16f   : > { %13741 = vmatprep.subr.msk.bf16.mxu1 %vm15539_vm1, %v13739_v42  ;;  %12085 = vmatprep.mubr.msk.f32.mxu0 %vm382_vm0, %v10605_v43  ;;  %v13718_v42 = vpack.c.bf16 %v3387_v36, %v3386_v35  ;;  %v13769_v45 = vpack.c.bf16 %v3437_v41, %v3436_v40  ;;  %v4008_v28 = vld [vmem:[%s15535_s24 + $0xbe] sm:$0xff]  ;;  %v4039_v29 = vld [vmem:[%s15535_s24 + $0x1b6] sm:$0xff]  ;;  %v10695_v36 = vld [vmem:[%s18703_s1 + $0x168] sm:$0xff] }
 0x170   : > { %12133 = vmatprep.mubr.msk.f32.mxu1 %vm382_vm0, %v10605_v43  ;;  %12086 = vmatmul.mubr.msk.f32.gmra.mrb[6].mxu0 %vm382_vm0, %v10605_v43  ;;  %v4023_v38 = vld [vmem:[%s15535_s24 + $0x136] sm:$0xff]  ;;  %v4024_v40 = vld [vmem:[%s15535_s24 + $0x13e] sm:$0xff]  ;;  %v4009_v41 = vld [vmem:[%s15535_s24 + $0xc6] sm:$0xff] }
 0x171   : > { %12134 = vmatmul.mubr.msk.f32.gmra.mrb[6].mxu1 %vm382_vm0, %v10605_v43  ;;  %12087 = vmatprep.mubr.msk.f32.mxu0 %vm382_vm0, %v10606_v47  ;;  %v13766_v43 = vpack.c.bf16 %v3419_v34, %v3418_v37  ;;  %v3991_v37 = vld [vmem:[%s15535_s24 + $0x36] sm:$0xff]  ;;  %v3992_v34 = vld [vmem:[%s15535_s24 + $0x3e] sm:$0xff] }
 0x172   : > { %12135 = vmatprep.mubr.msk.f32.mxu1 %vm382_vm0, %v10606_v47  ;;  %v10696_v39 = vld [vmem:[%s18703_s1 + $0x170] sm:$0xff] }
 0x174   : > { %12088 = vmatmul.mubr.msk.f32.gmra.mrb[8].mxu0 %vm382_vm0, %v10606_v47 }
 0x175   : > { %13696 = vmatpush3.bf16.xpose.msk.msra.mxu0 %vm15539_vm1, %v13694_v53  ;;  %12136 = vmatmul.mubr.msk.f32.gmra.mrb[8].mxu1 %vm382_vm0, %v10606_v47  ;;  %v3389_v47 = vld [vmem:[%s15535_s24 + $0x7d] sm:$0xff]  ;;  %v4034_v53 = vld [vmem:[%s15535_s24 + $0x18e] sm:$0xff] }
 0x176   : > { %13744 = vmatpush3.bf16.xpose.msk.msra.mxu1 %vm15539_vm1, %v13742_v54  ;;  %13699 = vmatprep.subr.msk.bf16.mxu0 %vm15539_vm1, %v13697_v55  ;;  %v13724_v54 = vpack.c.bf16 %v3389_v47, %v3388_v46  ;;  %v13772_v55 = vpack.c.bf16 %v3421_v49, %v3420_v48  ;;  %v13844_v46 = vpack.c.bf16 %v4024_v40, %v4023_v38  ;;  %v10697_v49 = vld [vmem:[%s18703_s1 + $0x178] sm:$0xff]  ;;  %v4628_v38 = vld [vmem:[%s15535_s24 + $0x107] sm:$0xff] }
 0x177   : > { %13747 = vmatprep.subr.msk.bf16.mxu1 %vm15539_vm1, %v13745_v56  ;;  %12089 = vmatprep.mubr.msk.f32.mxu0 %vm382_vm0, %v10607_v57  ;;  %v13775_v56 = vpack.c.bf16 %v4002_v51, %v4001_v50  ;;  %v3993_v50 = vld [vmem:[%s15535_s24 + $0x46] sm:$0xff]  ;;  %v3994_v51 = vld [vmem:[%s15535_s24 + $0x4e] sm:$0xff]  ;;  %v4614_v40 = vld [vmem:[%s15535_s24 + $0x97] sm:$0xff] }
 0x178   : > { %12137 = vmatprep.mubr.msk.f32.mxu1 %vm382_vm0, %v10607_v57  ;;  %12090 = vmatmul.mubr.msk.f32.gmra.mrb[10].mxu0 %vm382_vm0, %v10607_v57  ;;  %v13802_v0 = vpack.c.bf16 %v3994_v51, %v3993_v50  ;;  %v4599_v50 = vld [vmem:[%s15535_s24 + $0x1f] sm:$0xff]  ;;  %v4630_v51 = vld [vmem:[%s15535_s24 + $0x117] sm:$0xff] }
 0x179   : > { %12138 = vmatmul.mubr.msk.f32.gmra.mrb[10].mxu1 %vm382_vm0, %v10607_v57  ;;  %12091 = vmatprep.mubr.msk.f32.mxu0 %vm382_vm0, %v10608_v60  ;;  %v13823_v57 = vpack.c.bf16 %v4034_v53, %v4033_v52  ;;  %v4025_v52 = vld [vmem:[%s15535_s24 + $0x146] sm:$0xff] }
 0x17a   : > { %12139 = vmatprep.mubr.msk.f32.mxu1 %vm382_vm0, %v10608_v60  ;;  %v16746_v53 = vld [vmem:[%s18703_s1 + $0x180] sm:$0xff] }
 0x17c   : > { %12092 = vmatmul.mubr.msk.f32.gmra.mrb[12].mxu0 %vm382_vm0, %v10608_v60 }
 0x17d   : > { %13702 = vmatpush3.bf16.xpose.msk.msra.mxu0 %vm15539_vm1, %v13700_v4  ;;  %12140 = vmatmul.mubr.msk.f32.gmra.mrb[12].mxu1 %vm382_vm0, %v10608_v60  ;;  %v4018_v60 = vld [vmem:[%s15535_s24 + $0x10e] sm:$0xff] }
 0x17e   : > { %13750 = vmatpush3.bf16.xpose.msk.msra.mxu1 %vm15539_vm1, %v13748_v5  ;;  %13705 = vmatprep.subr.msk.bf16.mxu0 %vm15539_vm1, %v13703_v6  ;;  %v13826_v4 = vpack.c.bf16 %v4018_v60, %v4017_v59  ;;  %v13781_v5 = vpack.c.bf16 %v4004_v62, %v4003_v61  ;;  %v13829_v6 = vpack.c.bf16 %v4036_v2, %v4035_v63  ;;  %v3995_v62 = vld [vmem:[%s15535_s24 + $0x56] sm:$0xff]  ;;  %v3996_v63 = vld [vmem:[%s15535_s24 + $0x5e] sm:$0xff] }
 0x17f   : > { %13753 = vmatprep.subr.msk.bf16.mxu1 %vm15539_vm1, %v13751_v7  ;;  %12093 = vmatprep.mubr.msk.f32.mxu0 %vm382_vm0, %v10609_v8  ;;  %v10691_v7 = vld [vmem:[%s18703_s1 + $0x148] sm:$0xff]  ;;  %v4027_v2 = vld [vmem:[%s15535_s24 + $0x156] sm:$0xff] }
 0x180   : > { %12141 = vmatprep.mubr.msk.f32.mxu1 %vm382_vm0, %v10609_v8  ;;  %12094 = vmatmul.mubr.msk.f32.gmra.mrb[14].mxu0 %vm382_vm0, %v10609_v8 }
 0x181   : > { %12142 = vmatmul.mubr.msk.f32.gmra.mrb[14].mxu1 %vm382_vm0, %v10609_v8  ;;  %12175 = vmatprep.mubr.msk.f32.mxu0 %vm382_vm0, %v16556_v12  ;;  %v3987_v8 = vld [vmem:[%s15535_s24 + $0x16] sm:$0xff] }
 0x182   : > { %12223 = vmatprep.mubr.msk.f32.mxu1 %vm382_vm0, %v16556_v12  ;;  %v13784_v17 = vpack.c.bf16 %v3988_v9, %v3987_v8  ;;  %v13808_v8 = vpack.c.bf16 %v3996_v63, %v3995_v62  ;;  %v4600_v62 = vld [vmem:[%s15535_s24 + $0x27] sm:$0xff]  ;;  %v4601_v63 = vld [vmem:[%s15535_s24 + $0x2f] sm:$0xff] }
 0x185   : > { %13708 = vmatpush3.bf16.xpose.msk.msra.mxu0 %vm15539_vm1, %v13706_v18 }
 0x186   : > { %13756 = vmatpush3.bf16.xpose.msk.msra.mxu1 %vm15539_vm1, %v13754_v19  ;;  %13711 = vmatprep.subr.msk.bf16.mxu0 %vm15539_vm1, %v13709_v20  ;;  %v13787_v19 = vpack.c.bf16 %v4006_v14, %v4005_v13  ;;  %v13835_v20 = vpack.c.bf16 %v4038_v16, %v4037_v15  ;;  %v3998_v13 = vld [vmem:[%s15535_s24 + $0x6e] sm:$0xff]  ;;  %v4029_v14 = vld [vmem:[%s15535_s24 + $0x166] sm:$0xff]  ;;  %v4015_v16 = vld [vmem:[%s15535_s24 + $0xf6] sm:$0xff] }
 0x187   : > { %13759 = vmatprep.subr.msk.bf16.mxu1 %vm15539_vm1, %v13757_v21  ;;  %v10693_v21 = vld [vmem:[%s18703_s1 + $0x158] sm:$0xff]  ;;  %v4030_v15 = vld [vmem:[%s15535_s24 + $0x16e] sm:$0xff] }
 0x18d   : > { %13714 = vmatpush3.bf16.xpose.msk.msra.mxu0 %vm15539_vm1, %v13712_v30  ;;  %v4040_v30 = vld [vmem:[%s15535_s24 + $0x1be] sm:$0xff] }
 0x18e   : > { %13762 = vmatpush3.bf16.xpose.msk.msra.mxu1 %vm15539_vm1, %v13760_v31  ;;  %13717 = vmatprep.subr.msk.bf16.mxu0 %vm15539_vm1, %v13715_v32  ;;  %v13790_v31 = vpack.c.bf16 %v3990_v23, %v3989_v22  ;;  %v13838_v32 = vpack.c.bf16 %v4022_v26, %v4021_v24  ;;  %v13841_v35 = vpack.c.bf16 %v4040_v30, %v4039_v29  ;;  %v3999_v24 = vld [vmem:[%s15535_s24 + $0x76] sm:$0xff]  ;;  %v4644_v30 = vld [vmem:[%s15535_s24 + $0x187] sm:$0xff] }
 0x18f   : > { %13765 = vmatprep.subr.msk.bf16.mxu1 %vm15539_vm1, %v13763_v33  ;;  %v13793_v33 = vpack.c.bf16 %v4008_v28, %v4007_v27  ;;  %v4031_v26 = vld [vmem:[%s15535_s24 + $0x176] sm:$0xff]  ;;  %v4032_v27 = vld [vmem:[%s15535_s24 + $0x17e] sm:$0xff]  ;;  %v4612_v28 = vld [vmem:[%s15535_s24 + $0x87] sm:$0xff] }
 0x190   : > { %v4613_v29 = vld [vmem:[%s15535_s24 + $0x8f] sm:$0xff] }
 0x195   : > { %13720 = vmatpush3.bf16.xpose.msk.msra.mxu0 %vm15539_vm1, %v13718_v42  ;;  %v4010_v42 = vld [vmem:[%s15535_s24 + $0xce] sm:$0xff] }
 0x196   : > { %13768 = vmatpush3.bf16.xpose.msk.msra.mxu1 %vm15539_vm1, %v13766_v43  ;;  %13723 = vmatprep.subr.msk.bf16.mxu0 %vm15539_vm1, %v13721_v44  ;;  %v4041_v43 = vld [vmem:[%s15535_s24 + $0x1c6] sm:$0xff]  ;;  %v4042_v44 = vld [vmem:[%s15535_s24 + $0x1ce] sm:$0xff]  ;;  %v13799_v47 = vpack.c.bf16 %v4010_v42, %v4009_v41  ;;  %v4646_v42 = vld [vmem:[%s15535_s24 + $0x197] sm:$0xff] }
 0x197   : > { %13771 = vmatprep.subr.msk.bf16.mxu1 %vm15539_vm1, %v13769_v45  ;;  %v13796_v45 = vpack.c.bf16 %v3992_v34, %v3991_v37  ;;  %v13847_v48 = vpack.c.bf16 %v4042_v44, %v4041_v43  ;;  %v4596_v37 = vld [vmem:[%s15535_s24 + $0x7] sm:$0xff]  ;;  %v4597_v34 = vld [vmem:[%s15535_s24 + $0xf] sm:$0xff]  ;;  %v4615_v41 = vld [vmem:[%s15535_s24 + $0x9f] sm:$0xff] }
 0x198   : > { %v4647_v43 = vld [vmem:[%s15535_s24 + $0x19f] sm:$0xff]  ;;  %v13874_v44 = vpack.c.bf16 %v4597_v34, %v4596_v37 }
 0x199   : > { %v4655_v37 = vld [vmem:[%s15535_s24 + $0x1df] sm:$0xff] }
 0x19d   : > { %13726 = vmatpush3.bf16.xpose.msk.msra.mxu0 %vm15539_vm1, %v13724_v54  ;;  %v4026_v54 = vld [vmem:[%s15535_s24 + $0x14e] sm:$0xff] }
 0x19e   : > { %13774 = vmatpush3.bf16.xpose.msk.msra.mxu1 %vm15539_vm1, %v13772_v55  ;;  %13777 = vmatprep.subr.msk.bf16.mxu0 %vm15539_vm1, %v13775_v56  ;;  %v4011_v55 = vld [vmem:[%s15535_s24 + $0xd6] sm:$0xff]  ;;  %v4012_v56 = vld [vmem:[%s15535_s24 + $0xde] sm:$0xff]  ;;  %v13850_v59 = vpack.c.bf16 %v4026_v54, %v4025_v52  ;;  %v4616_v54 = vld [vmem:[%s15535_s24 + $0xa7] sm:$0xff] }
 0x19f   : > { %13825 = vmatprep.subr.msk.bf16.mxu1 %vm15539_vm1, %v13823_v57  ;;  %v4043_v57 = vld [vmem:[%s15535_s24 + $0x1d6] sm:$0xff]  ;;  %v13805_v60 = vpack.c.bf16 %v4012_v56, %v4011_v55  ;;  %v4648_v56 = vld [vmem:[%s15535_s24 + $0x1a7] sm:$0xff] }
 0x1a0   : > { %v13853_v61 = vpack.c.bf16 %v4044_v58, %v4043_v57  ;;  %v10780_v52 = vld [vmem:[%s18703_s1 + $0x190] sm:$0xff] }
 0x1a1   : > { %v4617_v55 = vld [vmem:[%s15535_s24 + $0xaf] sm:$0xff] }
 0x1a2   : > { %v4649_v57 = vld [vmem:[%s15535_s24 + $0x1af] sm:$0xff] }
 0x1a4   : > { %12176 = vmatmul.mubr.msk.f32.vlgmr.msra.gmra.mrb[0].mxu0 %vm382_vm0, %v16556_v12 }
 0x1a5   : > { %12224 = vmatmul.mubr.msk.f32.vlgmr.msra.gmra.mrb[0].mxu1 %vm382_vm0, %v16556_v12  ;;  %13780 = vmatpush3.bf16.xpose.msk.msra.mxu0 %vm15539_vm1, %v13778_v3  ;;  %v4020_v12 = vld [vmem:[%s15535_s24 + $0x11e] sm:$0xff] }
 0x1a6   : > { %13828 = vmatpush3.bf16.xpose.msk.msra.mxu1 %vm15539_vm1, %v13826_v4  ;;  %13783 = vmatprep.subr.msk.bf16.mxu0 %vm15539_vm1, %v13781_v5  ;;  %v13832_v18 = vpack.c.bf16 %v4020_v12, %v4019_v10  ;;  %v4028_v3 = vld [vmem:[%s15535_s24 + $0x15e] sm:$0xff]  ;;  %v4013_v4 = vld [vmem:[%s15535_s24 + $0xe6] sm:$0xff]  ;;  %v4014_v5 = vld [vmem:[%s15535_s24 + $0xee] sm:$0xff] }
 0x1a7   : > { %13831 = vmatprep.subr.msk.bf16.mxu1 %vm15539_vm1, %v13829_v6  ;;  %12177 = vmatprep.mubr.msk.f32.mxu0 %vm382_vm0, %v10691_v7  ;;  %v4045_v6 = vld [vmem:[%s15535_s24 + $0x1e6] sm:$0xff]  ;;  %v13856_v9 = vpack.c.bf16 %v4028_v3, %v4027_v2  ;;  %v13811_v10 = vpack.c.bf16 %v4014_v5, %v4013_v4  ;;  %v4633_v4 = vld [vmem:[%s15535_s24 + $0x12f] sm:$0xff]  ;;  %v4618_v5 = vld [vmem:[%s15535_s24 + $0xb7] sm:$0xff] }
 0x1a8   : > { %12225 = vmatprep.mubr.msk.f32.mxu1 %vm382_vm0, %v10691_v7  ;;  %12178 = vmatmul.mubr.msk.f32.gmra.mrb[2].mxu0 %vm382_vm0, %v10691_v7  ;;  %v3997_v12 = vld [vmem:[%s15535_s24 + $0x66] sm:$0xff] }
 0x1a9   : > { %12226 = vmatmul.mubr.msk.f32.gmra.mrb[2].mxu1 %vm382_vm0, %v10691_v7  ;;  %12179 = vmatprep.mubr.msk.f32.mxu0 %vm382_vm0, %v10692_v11  ;;  %v4046_v7 = vld [vmem:[%s15535_s24 + $0x1ee] sm:$0xff]  ;;  %v10782_v3 = vld [vmem:[%s18703_s1 + $0x1a0] sm:$0xff] }
 0x1aa   : > { %12227 = vmatprep.mubr.msk.f32.mxu1 %vm382_vm0, %v10692_v11  ;;  %v4632_v2 = vld [vmem:[%s15535_s24 + $0x127] sm:$0xff] }
 0x1ac   : > { %12180 = vmatmul.mubr.msk.f32.gmra.mrb[4].mxu0 %vm382_vm0, %v10692_v11 }
 0x1ad   : > { %13786 = vmatpush3.bf16.xpose.msk.msra.mxu0 %vm15539_vm1, %v13784_v17  ;;  %12228 = vmatmul.mubr.msk.f32.gmra.mrb[4].mxu1 %vm382_vm0, %v10692_v11  ;;  %v13859_v11 = vpack.c.bf16 %v4046_v7, %v4045_v6  ;;  %v4016_v17 = vld [vmem:[%s15535_s24 + $0xfe] sm:$0xff] }
 0x1ae   : > { %13834 = vmatpush3.bf16.xpose.msk.msra.mxu1 %vm15539_vm1, %v13832_v18  ;;  %13789 = vmatprep.subr.msk.bf16.mxu0 %vm15539_vm1, %v13787_v19  ;;  %v4047_v18 = vld [vmem:[%s15535_s24 + $0x1f6] sm:$0xff]  ;;  %v4048_v19 = vld [vmem:[%s15535_s24 + $0x1fe] sm:$0xff]  ;;  %v13817_v22 = vpack.c.bf16 %v4016_v17, %v4015_v16 }
 0x1af   : > { %13837 = vmatprep.subr.msk.bf16.mxu1 %vm15539_vm1, %v13835_v20  ;;  %12181 = vmatprep.mubr.msk.f32.mxu0 %vm382_vm0, %v10693_v21  ;;  %v13814_v20 = vpack.c.bf16 %v3998_v13, %v3997_v12  ;;  %v13865_v23 = vpack.c.bf16 %v4048_v19, %v4047_v18  ;;  %v4619_v6 = vld [vmem:[%s15535_s24 + $0xbf] sm:$0xff]  ;;  %v4650_v7 = vld [vmem:[%s15535_s24 + $0x1b7] sm:$0xff]  ;;  %v10783_v13 = vld [vmem:[%s18703_s1 + $0x1a8] sm:$0xff] }
 0x1b0   : > { %12229 = vmatprep.mubr.msk.f32.mxu1 %vm382_vm0, %v10693_v21  ;;  %12182 = vmatmul.mubr.msk.f32.gmra.mrb[6].mxu0 %vm382_vm0, %v10693_v21  ;;  %v4634_v16 = vld [vmem:[%s15535_s24 + $0x137] sm:$0xff]  ;;  %v4635_v18 = vld [vmem:[%s15535_s24 + $0x13f] sm:$0xff]  ;;  %v4620_v19 = vld [vmem:[%s15535_s24 + $0xc7] sm:$0xff] }
 0x1b1   : > { %12230 = vmatmul.mubr.msk.f32.gmra.mrb[6].mxu1 %vm382_vm0, %v10693_v21  ;;  %12183 = vmatprep.mubr.msk.f32.mxu0 %vm382_vm0, %v10694_v25  ;;  %v13862_v21 = vpack.c.bf16 %v4030_v15, %v4029_v14  ;;  %v4602_v14 = vld [vmem:[%s15535_s24 + $0x37] sm:$0xff]  ;;  %v4603_v15 = vld [vmem:[%s15535_s24 + $0x3f] sm:$0xff] }
 0x1b2   : > { %12231 = vmatprep.mubr.msk.f32.mxu1 %vm382_vm0, %v10694_v25  ;;  %v10784_v17 = vld [vmem:[%s18703_s1 + $0x1b0] sm:$0xff] }
 0x1b4   : > { %12184 = vmatmul.mubr.msk.f32.gmra.mrb[8].mxu0 %vm382_vm0, %v10694_v25 }
 0x1b5   : > { %13792 = vmatpush3.bf16.xpose.msk.msra.mxu0 %vm15539_vm1, %v13790_v31  ;;  %12232 = vmatmul.mubr.msk.f32.gmra.mrb[8].mxu1 %vm382_vm0, %v10694_v25  ;;  %v4000_v25 = vld [vmem:[%s15535_s24 + $0x7e] sm:$0xff]  ;;  %v4645_v31 = vld [vmem:[%s15535_s24 + $0x18f] sm:$0xff] }
 0x1b6   : > { %13840 = vmatpush3.bf16.xpose.msk.msra.mxu1 %vm15539_vm1, %v13838_v32  ;;  %13795 = vmatprep.subr.msk.bf16.mxu0 %vm15539_vm1, %v13793_v33  ;;  %v13820_v32 = vpack.c.bf16 %v4000_v25, %v3999_v24  ;;  %v13868_v33 = vpack.c.bf16 %v4032_v27, %v4031_v26  ;;  %v13940_v24 = vpack.c.bf16 %v4635_v18, %v4634_v16  ;;  %v10785_v27 = vld [vmem:[%s18703_s1 + $0x1b8] sm:$0xff]  ;;  %v5239_v16 = vld [vmem:[%s15535_s24 + $0x108] sm:$0xff] }
 0x1b7   : > { %13843 = vmatprep.subr.msk.bf16.mxu1 %vm15539_vm1, %v13841_v35  ;;  %12185 = vmatprep.mubr.msk.f32.mxu0 %vm382_vm0, %v10695_v36  ;;  %v13871_v35 = vpack.c.bf16 %v4613_v29, %v4612_v28  ;;  %v4604_v28 = vld [vmem:[%s15535_s24 + $0x47] sm:$0xff]  ;;  %v4605_v29 = vld [vmem:[%s15535_s24 + $0x4f] sm:$0xff]  ;;  %v5225_v18 = vld [vmem:[%s15535_s24 + $0x98] sm:$0xff] }
 0x1b8   : > { %12233 = vmatprep.mubr.msk.f32.mxu1 %vm382_vm0, %v10695_v36  ;;  %12186 = vmatmul.mubr.msk.f32.gmra.mrb[10].mxu0 %vm382_vm0, %v10695_v36  ;;  %v13898_v34 = vpack.c.bf16 %v4605_v29, %v4604_v28  ;;  %v5210_v28 = vld [vmem:[%s15535_s24 + $0x20] sm:$0xff]  ;;  %v5241_v29 = vld [vmem:[%s15535_s24 + $0x118] sm:$0xff] }
 0x1b9   : > { %12234 = vmatmul.mubr.msk.f32.gmra.mrb[10].mxu1 %vm382_vm0, %v10695_v36  ;;  %12187 = vmatprep.mubr.msk.f32.mxu0 %vm382_vm0, %v10696_v39  ;;  %v13919_v36 = vpack.c.bf16 %v4645_v31, %v4644_v30  ;;  %v4636_v30 = vld [vmem:[%s15535_s24 + $0x147] sm:$0xff] }
 0x1ba   : > { %12235 = vmatprep.mubr.msk.f32.mxu1 %vm382_vm0, %v10696_v39  ;;  %v16936_v31 = vld [vmem:[%s18703_s1 + $0x1c0] sm:$0xff] }
 0x1bc   : > { %12188 = vmatmul.mubr.msk.f32.gmra.mrb[12].mxu0 %vm382_vm0, %v10696_v39 }
 0x1bd   : > { %13798 = vmatpush3.bf16.xpose.msk.msra.mxu0 %vm15539_vm1, %v13796_v45  ;;  %12236 = vmatmul.mubr.msk.f32.gmra.mrb[12].mxu1 %vm382_vm0, %v10696_v39  ;;  %v4629_v39 = vld [vmem:[%s15535_s24 + $0x10f] sm:$0xff] }
 0x1be   : > { %13846 = vmatpush3.bf16.xpose.msk.msra.mxu1 %vm15539_vm1, %v13844_v46  ;;  %13801 = vmatprep.subr.msk.bf16.mxu0 %vm15539_vm1, %v13799_v47  ;;  %v13922_v45 = vpack.c.bf16 %v4629_v39, %v4628_v38  ;;  %v13877_v46 = vpack.c.bf16 %v4615_v41, %v4614_v40  ;;  %v13925_v47 = vpack.c.bf16 %v4647_v43, %v4646_v42  ;;  %v4606_v41 = vld [vmem:[%s15535_s24 + $0x57] sm:$0xff]  ;;  %v4607_v42 = vld [vmem:[%s15535_s24 + $0x5f] sm:$0xff] }
 0x1bf   : > { %13849 = vmatprep.subr.msk.bf16.mxu1 %vm15539_vm1, %v13847_v48  ;;  %12189 = vmatprep.mubr.msk.f32.mxu0 %vm382_vm0, %v10697_v49  ;;  %v10779_v48 = vld [vmem:[%s18703_s1 + $0x188] sm:$0xff]  ;;  %v4638_v43 = vld [vmem:[%s15535_s24 + $0x157] sm:$0xff] }
 0x1c0   : > { %12237 = vmatprep.mubr.msk.f32.mxu1 %vm382_vm0, %v10697_v49  ;;  %12190 = vmatmul.mubr.msk.f32.gmra.mrb[14].mxu0 %vm382_vm0, %v10697_v49 }
 0x1c1   : > { %12238 = vmatmul.mubr.msk.f32.gmra.mrb[14].mxu1 %vm382_vm0, %v10697_v49  ;;  %12271 = vmatprep.mubr.msk.f32.mxu0 %vm382_vm0, %v16746_v53  ;;  %v4598_v49 = vld [vmem:[%s15535_s24 + $0x17] sm:$0xff] }
 0x1c2   : > { %12319 = vmatprep.mubr.msk.f32.mxu1 %vm382_vm0, %v16746_v53  ;;  %v13880_v58 = vpack.c.bf16 %v4599_v50, %v4598_v49  ;;  %v13904_v49 = vpack.c.bf16 %v4607_v42, %v4606_v41  ;;  %v5211_v41 = vld [vmem:[%s15535_s24 + $0x28] sm:$0xff]  ;;  %v5212_v42 = vld [vmem:[%s15535_s24 + $0x30] sm:$0xff] }
 0x1c5   : > { %13804 = vmatpush3.bf16.xpose.msk.msra.mxu0 %vm15539_vm1, %v13802_v0 }
 0x1c6   : > { %13852 = vmatpush3.bf16.xpose.msk.msra.mxu1 %vm15539_vm1, %v13850_v59  ;;  %13807 = vmatprep.subr.msk.bf16.mxu0 %vm15539_vm1, %v13805_v60  ;;  %v13883_v59 = vpack.c.bf16 %v4617_v55, %v4616_v54  ;;  %v13931_v60 = vpack.c.bf16 %v4649_v57, %v4648_v56  ;;  %v4609_v54 = vld [vmem:[%s15535_s24 + $0x6f] sm:$0xff]  ;;  %v4640_v55 = vld [vmem:[%s15535_s24 + $0x167] sm:$0xff]  ;;  %v4626_v57 = vld [vmem:[%s15535_s24 + $0xf7] sm:$0xff] }
 0x1c7   : > { %13855 = vmatprep.subr.msk.bf16.mxu1 %vm15539_vm1, %v13853_v61  ;;  %v10781_v61 = vld [vmem:[%s18703_s1 + $0x198] sm:$0xff]  ;;  %v4641_v56 = vld [vmem:[%s15535_s24 + $0x16f] sm:$0xff] }
 0x1cd   : > { %13810 = vmatpush3.bf16.xpose.msk.msra.mxu0 %vm15539_vm1, %v13808_v8  ;;  %v4651_v8 = vld [vmem:[%s15535_s24 + $0x1bf] sm:$0xff] }
 0x1ce   : > { %13858 = vmatpush3.bf16.xpose.msk.msra.mxu1 %vm15539_vm1, %v13856_v9  ;;  %13813 = vmatprep.subr.msk.bf16.mxu0 %vm15539_vm1, %v13811_v10  ;;  %v13886_v9 = vpack.c.bf16 %v4601_v63, %v4600_v62  ;;  %v13934_v10 = vpack.c.bf16 %v4633_v4, %v4632_v2  ;;  %v13937_v12 = vpack.c.bf16 %v4651_v8, %v4650_v7  ;;  %v4610_v2 = vld [vmem:[%s15535_s24 + $0x77] sm:$0xff]  ;;  %v5255_v8 = vld [vmem:[%s15535_s24 + $0x188] sm:$0xff] }
 0x1cf   : > { %13861 = vmatprep.subr.msk.bf16.mxu1 %vm15539_vm1, %v13859_v11  ;;  %v13889_v11 = vpack.c.bf16 %v4619_v6, %v4618_v5  ;;  %v4642_v4 = vld [vmem:[%s15535_s24 + $0x177] sm:$0xff]  ;;  %v4643_v5 = vld [vmem:[%s15535_s24 + $0x17f] sm:$0xff]  ;;  %v5223_v6 = vld [vmem:[%s15535_s24 + $0x88] sm:$0xff] }
 0x1d0   : > { %v5224_v7 = vld [vmem:[%s15535_s24 + $0x90] sm:$0xff] }
 0x1d5   : > { %13816 = vmatpush3.bf16.xpose.msk.msra.mxu0 %vm15539_vm1, %v13814_v20  ;;  %v4621_v20 = vld [vmem:[%s15535_s24 + $0xcf] sm:$0xff] }
 0x1d6   : > { %13864 = vmatpush3.bf16.xpose.msk.msra.mxu1 %vm15539_vm1, %v13862_v21  ;;  %13819 = vmatprep.subr.msk.bf16.mxu0 %vm15539_vm1, %v13817_v22  ;;  %v4652_v21 = vld [vmem:[%s15535_s24 + $0x1c7] sm:$0xff]  ;;  %v4653_v22 = vld [vmem:[%s15535_s24 + $0x1cf] sm:$0xff]  ;;  %v13895_v25 = vpack.c.bf16 %v4621_v20, %v4620_v19  ;;  %v5257_v20 = vld [vmem:[%s15535_s24 + $0x198] sm:$0xff] }
 0x1d7   : > { %13867 = vmatprep.subr.msk.bf16.mxu1 %vm15539_vm1, %v13865_v23  ;;  %v13892_v23 = vpack.c.bf16 %v4603_v15, %v4602_v14  ;;  %v13943_v26 = vpack.c.bf16 %v4653_v22, %v4652_v21  ;;  %v5207_v14 = vld [vmem:[%s15535_s24 + $0x8] sm:$0xff]  ;;  %v5208_v15 = vld [vmem:[%s15535_s24 + $0x10] sm:$0xff]  ;;  %v5226_v19 = vld [vmem:[%s15535_s24 + $0xa0] sm:$0xff] }
 0x1d8   : > { %v5258_v21 = vld [vmem:[%s15535_s24 + $0x1a0] sm:$0xff]  ;;  %v13970_v22 = vpack.c.bf16 %v5208_v15, %v5207_v14 }
 0x1d9   : > { %v5266_v14 = vld [vmem:[%s15535_s24 + $0x1e0] sm:$0xff] }
 0x1dd   : > { %13822 = vmatpush3.bf16.xpose.msk.msra.mxu0 %vm15539_vm1, %v13820_v32  ;;  %v4637_v32 = vld [vmem:[%s15535_s24 + $0x14f] sm:$0xff] }
 0x1de   : > { %13870 = vmatpush3.bf16.xpose.msk.msra.mxu1 %vm15539_vm1, %v13868_v33  ;;  %13873 = vmatprep.subr.msk.bf16.mxu0 %vm15539_vm1, %v13871_v35  ;;  %v4622_v33 = vld [vmem:[%s15535_s24 + $0xd7] sm:$0xff]  ;;  %v4623_v35 = vld [vmem:[%s15535_s24 + $0xdf] sm:$0xff]  ;;  %v13946_v38 = vpack.c.bf16 %v4637_v32, %v4636_v30  ;;  %v5227_v32 = vld [vmem:[%s15535_s24 + $0xa8] sm:$0xff] }
 0x1df   : > { %13921 = vmatprep.subr.msk.bf16.mxu1 %vm15539_vm1, %v13919_v36  ;;  %v4654_v36 = vld [vmem:[%s15535_s24 + $0x1d7] sm:$0xff]  ;;  %v13901_v39 = vpack.c.bf16 %v4623_v35, %v4622_v33  ;;  %v5259_v35 = vld [vmem:[%s15535_s24 + $0x1a8] sm:$0xff] }
 0x1e0   : > { %v13949_v40 = vpack.c.bf16 %v4655_v37, %v4654_v36  ;;  %v10868_v30 = vld [vmem:[%s18703_s1 + $0x1d0] sm:$0xff] }
 0x1e1   : > { %v5228_v33 = vld [vmem:[%s15535_s24 + $0xb0] sm:$0xff] }
 0x1e2   : > { %v5260_v36 = vld [vmem:[%s15535_s24 + $0x1b0] sm:$0xff] }
 0x1e4   : > { %12272 = vmatmul.mubr.msk.f32.vlgmr.msra.gmra.mrb[0].mxu0 %vm382_vm0, %v16746_v53 }
 0x1e5   : > { %12320 = vmatmul.mubr.msk.f32.vlgmr.msra.gmra.mrb[0].mxu1 %vm382_vm0, %v16746_v53  ;;  %13876 = vmatpush3.bf16.xpose.msk.msra.mxu0 %vm15539_vm1, %v13874_v44  ;;  %v4631_v53 = vld [vmem:[%s15535_s24 + $0x11f] sm:$0xff] }
 0x1e6   : > { %13924 = vmatpush3.bf16.xpose.msk.msra.mxu1 %vm15539_vm1, %v13922_v45  ;;  %13879 = vmatprep.subr.msk.bf16.mxu0 %vm15539_vm1, %v13877_v46  ;;  %v13928_v0 = vpack.c.bf16 %v4631_v53, %v4630_v51  ;;  %v4639_v44 = vld [vmem:[%s15535_s24 + $0x15f] sm:$0xff]  ;;  %v4624_v45 = vld [vmem:[%s15535_s24 + $0xe7] sm:$0xff]  ;;  %v4625_v46 = vld [vmem:[%s15535_s24 + $0xef] sm:$0xff] }
 0x1e7   : > { %13927 = vmatprep.subr.msk.bf16.mxu1 %vm15539_vm1, %v13925_v47  ;;  %12273 = vmatprep.mubr.msk.f32.mxu0 %vm382_vm0, %v10779_v48  ;;  %v4656_v47 = vld [vmem:[%s15535_s24 + $0x1e7] sm:$0xff]  ;;  %v13952_v50 = vpack.c.bf16 %v4639_v44, %v4638_v43  ;;  %v13907_v51 = vpack.c.bf16 %v4625_v46, %v4624_v45  ;;  %v5244_v45 = vld [vmem:[%s15535_s24 + $0x130] sm:$0xff]  ;;  %v5229_v46 = vld [vmem:[%s15535_s24 + $0xb8] sm:$0xff] }
 0x1e8   : > { %12321 = vmatprep.mubr.msk.f32.mxu1 %vm382_vm0, %v10779_v48  ;;  %12274 = vmatmul.mubr.msk.f32.gmra.mrb[2].mxu0 %vm382_vm0, %v10779_v48  ;;  %v4608_v53 = vld [vmem:[%s15535_s24 + $0x67] sm:$0xff] }
 0x1e9   : > { %12322 = vmatmul.mubr.msk.f32.gmra.mrb[2].mxu1 %vm382_vm0, %v10779_v48  ;;  %12275 = vmatprep.mubr.msk.f32.mxu0 %vm382_vm0, %v10780_v52  ;;  %v4657_v48 = vld [vmem:[%s15535_s24 + $0x1ef] sm:$0xff]  ;;  %v10870_v44 = vld [vmem:[%s18703_s1 + $0x1e0] sm:$0xff] }
 0x1ea   : > { %12323 = vmatprep.mubr.msk.f32.mxu1 %vm382_vm0, %v10780_v52  ;;  %v5243_v43 = vld [vmem:[%s15535_s24 + $0x128] sm:$0xff] }
 0x1ec   : > { %12276 = vmatmul.mubr.msk.f32.gmra.mrb[4].mxu0 %vm382_vm0, %v10780_v52 }
 0x1ed   : > { %13882 = vmatpush3.bf16.xpose.msk.msra.mxu0 %vm15539_vm1, %v13880_v58  ;;  %12324 = vmatmul.mubr.msk.f32.gmra.mrb[4].mxu1 %vm382_vm0, %v10780_v52  ;;  %v13955_v52 = vpack.c.bf16 %v4657_v48, %v4656_v47  ;;  %v4627_v58 = vld [vmem:[%s15535_s24 + $0xff] sm:$0xff] }
 0x1ee   : > { %13930 = vmatpush3.bf16.xpose.msk.msra.mxu1 %vm15539_vm1, %v13928_v0  ;;  %13885 = vmatprep.subr.msk.bf16.mxu0 %vm15539_vm1, %v13883_v59  ;;  %v4658_v0 = vld [vmem:[%s15535_s24 + $0x1f7] sm:$0xff]  ;;  %v4659_v59 = vld [vmem:[%s15535_s24 + $0x1ff] sm:$0xff]  ;;  %v13913_v62 = vpack.c.bf16 %v4627_v58, %v4626_v57 }
 0x1ef   : > { %13933 = vmatprep.subr.msk.bf16.mxu1 %vm15539_vm1, %v13931_v60  ;;  %12277 = vmatprep.mubr.msk.f32.mxu0 %vm382_vm0, %v10781_v61  ;;  %v13910_v60 = vpack.c.bf16 %v4609_v54, %v4608_v53  ;;  %v13961_v63 = vpack.c.bf16 %v4659_v59, %v4658_v0  ;;  %v5230_v47 = vld [vmem:[%s15535_s24 + $0xc0] sm:$0xff]  ;;  %v5261_v48 = vld [vmem:[%s15535_s24 + $0x1b8] sm:$0xff]  ;;  %v10871_v54 = vld [vmem:[%s18703_s1 + $0x1e8] sm:$0xff] }
 0x1f0   : > { %12325 = vmatprep.mubr.msk.f32.mxu1 %vm382_vm0, %v10781_v61  ;;  %12278 = vmatmul.mubr.msk.f32.gmra.mrb[6].mxu0 %vm382_vm0, %v10781_v61  ;;  %v5245_v57 = vld [vmem:[%s15535_s24 + $0x138] sm:$0xff]  ;;  %v10872_v58 = vld [vmem:[%s18703_s1 + $0x1f0] sm:$0xff]  ;;  %v5246_v0 = vld [vmem:[%s15535_s24 + $0x140] sm:$0xff] }
 0x1f1   : > { %12326 = vmatmul.mubr.msk.f32.gmra.mrb[6].mxu1 %vm382_vm0, %v10781_v61  ;;  %12279 = vmatprep.mubr.msk.f32.mxu0 %vm382_vm0, %v10782_v3  ;;  %v13958_v61 = vpack.c.bf16 %v4641_v56, %v4640_v55  ;;  %v5213_v55 = vld [vmem:[%s15535_s24 + $0x38] sm:$0xff]  ;;  %v5214_v56 = vld [vmem:[%s15535_s24 + $0x40] sm:$0xff]  ;;  %v5231_v59 = vld [vmem:[%s15535_s24 + $0xc8] sm:$0xff] }
 0x1f2   : > { %12327 = vmatprep.mubr.msk.f32.mxu1 %vm382_vm0, %v10782_v3 }
 0x1f4   : > { %12280 = vmatmul.mubr.msk.f32.gmra.mrb[8].mxu0 %vm382_vm0, %v10782_v3 }
 0x1f5   : > { %13888 = vmatpush3.bf16.xpose.msk.msra.mxu0 %vm15539_vm1, %v13886_v9  ;;  %12328 = vmatmul.mubr.msk.f32.gmra.mrb[8].mxu1 %vm382_vm0, %v10782_v3  ;;  %v4611_v3 = vld [vmem:[%s15535_s24 + $0x7f] sm:$0xff]  ;;  %v5256_v9 = vld [vmem:[%s15535_s24 + $0x190] sm:$0xff] }
 0x1f6   : > { %13936 = vmatpush3.bf16.xpose.msk.msra.mxu1 %vm15539_vm1, %v13934_v10  ;;  %13891 = vmatprep.subr.msk.bf16.mxu0 %vm15539_vm1, %v13889_v11  ;;  %v13916_v10 = vpack.c.bf16 %v4611_v3, %v4610_v2  ;;  %v13964_v11 = vpack.c.bf16 %v4643_v5, %v4642_v4  ;;  %v14036_v2 = vpack.c.bf16 %v5246_v0, %v5245_v57  ;;  %v10873_v5 = vld [vmem:[%s18703_s1 + $0x1f8] sm:$0xff]  ;;  %v5850_v57 = vld [vmem:[%s15535_s24 + $0x109] sm:$0xff] }
 0x1f7   : > { %13939 = vmatprep.subr.msk.bf16.mxu1 %vm15539_vm1, %v13937_v12  ;;  %12281 = vmatprep.mubr.msk.f32.mxu0 %vm382_vm0, %v10783_v13  ;;  %v13967_v12 = vpack.c.bf16 %v5224_v7, %v5223_v6  ;;  %v5215_v6 = vld [vmem:[%s15535_s24 + $0x48] sm:$0xff]  ;;  %v5216_v7 = vld [vmem:[%s15535_s24 + $0x50] sm:$0xff]  ;;  %v5836_v0 = vld [vmem:[%s15535_s24 + $0x99] sm:$0xff] }
 0x1f8   : > { %12329 = vmatprep.mubr.msk.f32.mxu1 %vm382_vm0, %v10783_v13  ;;  %12282 = vmatmul.mubr.msk.f32.gmra.mrb[10].mxu0 %vm382_vm0, %v10783_v13  ;;  %v13994_v15 = vpack.c.bf16 %v5216_v7, %v5215_v6  ;;  %v5821_v6 = vld [vmem:[%s15535_s24 + $0x21] sm:$0xff]  ;;  %v5852_v7 = vld [vmem:[%s15535_s24 + $0x119] sm:$0xff] }
 0x1f9   : > { %12330 = vmatmul.mubr.msk.f32.gmra.mrb[10].mxu1 %vm382_vm0, %v10783_v13  ;;  %12283 = vmatprep.mubr.msk.f32.mxu0 %vm382_vm0, %v10784_v17  ;;  %v14015_v13 = vpack.c.bf16 %v5256_v9, %v5255_v8  ;;  %v5247_v8 = vld [vmem:[%s15535_s24 + $0x148] sm:$0xff]  ;;  %v17126_v9 = vld [vmem:[%s18703_s1 + $0x200] sm:$0xff] }
 0x1fa   : > { %12331 = vmatprep.mubr.msk.f32.mxu1 %vm382_vm0, %v10784_v17 }
 0x1fc   : > { %12284 = vmatmul.mubr.msk.f32.gmra.mrb[12].mxu0 %vm382_vm0, %v10784_v17 }
 0x1fd   : > { %13894 = vmatpush3.bf16.xpose.msk.msra.mxu0 %vm15539_vm1, %v13892_v23  ;;  %12332 = vmatmul.mubr.msk.f32.gmra.mrb[12].mxu1 %vm382_vm0, %v10784_v17  ;;  %v5240_v17 = vld [vmem:[%s15535_s24 + $0x110] sm:$0xff] }
 0x1fe   : > { %13942 = vmatpush3.bf16.xpose.msk.msra.mxu1 %vm15539_vm1, %v13940_v24  ;;  %13897 = vmatprep.subr.msk.bf16.mxu0 %vm15539_vm1, %v13895_v25  ;;  %v14018_v23 = vpack.c.bf16 %v5240_v17, %v5239_v16  ;;  %v13973_v24 = vpack.c.bf16 %v5226_v19, %v5225_v18  ;;  %v14021_v25 = vpack.c.bf16 %v5258_v21, %v5257_v20  ;;  %v5217_v19 = vld [vmem:[%s15535_s24 + $0x58] sm:$0xff]  ;;  %v5218_v20 = vld [vmem:[%s15535_s24 + $0x60] sm:$0xff] }
 0x1ff   : > { %13945 = vmatprep.subr.msk.bf16.mxu1 %vm15539_vm1, %v13943_v26  ;;  %12285 = vmatprep.mubr.msk.f32.mxu0 %vm382_vm0, %v10785_v27  ;;  %v10867_v26 = vld [vmem:[%s18703_s1 + $0x1c8] sm:$0xff]  ;;  %v5249_v21 = vld [vmem:[%s15535_s24 + $0x158] sm:$0xff] }
 0x200   : > { %12333 = vmatprep.mubr.msk.f32.mxu1 %vm382_vm0, %v10785_v27  ;;  %12286 = vmatmul.mubr.msk.f32.gmra.mrb[14].mxu0 %vm382_vm0, %v10785_v27 }
 0x201   : > { %12334 = vmatmul.mubr.msk.f32.gmra.mrb[14].mxu1 %vm382_vm0, %v10785_v27  ;;  %12367 = vmatprep.mubr.msk.f32.mxu0 %vm382_vm0, %v16936_v31  ;;  %v5209_v27 = vld [vmem:[%s15535_s24 + $0x18] sm:$0xff] }
 0x202   : > { %12415 = vmatprep.mubr.msk.f32.mxu1 %vm382_vm0, %v16936_v31  ;;  %v13976_v37 = vpack.c.bf16 %v5210_v28, %v5209_v27  ;;  %v14000_v27 = vpack.c.bf16 %v5218_v20, %v5217_v19  ;;  %v5822_v19 = vld [vmem:[%s15535_s24 + $0x29] sm:$0xff]  ;;  %v5823_v20 = vld [vmem:[%s15535_s24 + $0x31] sm:$0xff] }
 0x205   : > { %13900 = vmatpush3.bf16.xpose.msk.msra.mxu0 %vm15539_vm1, %v13898_v34 }
 0x206   : > { %13948 = vmatpush3.bf16.xpose.msk.msra.mxu1 %vm15539_vm1, %v13946_v38  ;;  %13903 = vmatprep.subr.msk.bf16.mxu0 %vm15539_vm1, %v13901_v39  ;;  %v13979_v38 = vpack.c.bf16 %v5228_v33, %v5227_v32  ;;  %v14027_v39 = vpack.c.bf16 %v5260_v36, %v5259_v35  ;;  %v5220_v32 = vld [vmem:[%s15535_s24 + $0x70] sm:$0xff]  ;;  %v5251_v33 = vld [vmem:[%s15535_s24 + $0x168] sm:$0xff]  ;;  %v5237_v36 = vld [vmem:[%s15535_s24 + $0xf8] sm:$0xff] }
 0x207   : > { %13951 = vmatprep.subr.msk.bf16.mxu1 %vm15539_vm1, %v13949_v40  ;;  %v10869_v40 = vld [vmem:[%s18703_s1 + $0x1d8] sm:$0xff]  ;;  %v5252_v35 = vld [vmem:[%s15535_s24 + $0x170] sm:$0xff] }
 0x20d   : > { %13906 = vmatpush3.bf16.xpose.msk.msra.mxu0 %vm15539_vm1, %v13904_v49  ;;  %v5262_v49 = vld [vmem:[%s15535_s24 + $0x1c0] sm:$0xff] }
 0x20e   : > { %13954 = vmatpush3.bf16.xpose.msk.msra.mxu1 %vm15539_vm1, %v13952_v50  ;;  %13909 = vmatprep.subr.msk.bf16.mxu0 %vm15539_vm1, %v13907_v51  ;;  %v13982_v50 = vpack.c.bf16 %v5212_v42, %v5211_v41  ;;  %v14030_v51 = vpack.c.bf16 %v5244_v45, %v5243_v43  ;;  %v14033_v53 = vpack.c.bf16 %v5262_v49, %v5261_v48  ;;  %v5221_v43 = vld [vmem:[%s15535_s24 + $0x78] sm:$0xff]  ;;  %v5866_v49 = vld [vmem:[%s15535_s24 + $0x189] sm:$0xff] }
 0x20f   : > { %13957 = vmatprep.subr.msk.bf16.mxu1 %vm15539_vm1, %v13955_v52  ;;  %v13985_v52 = vpack.c.bf16 %v5230_v47, %v5229_v46  ;;  %v5253_v45 = vld [vmem:[%s15535_s24 + $0x178] sm:$0xff]  ;;  %v5254_v46 = vld [vmem:[%s15535_s24 + $0x180] sm:$0xff]  ;;  %v5834_v47 = vld [vmem:[%s15535_s24 + $0x89] sm:$0xff] }
 0x210   : > { %v5835_v48 = vld [vmem:[%s15535_s24 + $0x91] sm:$0xff] }
 0x215   : > { %13912 = vmatpush3.bf16.xpose.msk.msra.mxu0 %vm15539_vm1, %v13910_v60  ;;  %v5232_v60 = vld [vmem:[%s15535_s24 + $0xd0] sm:$0xff] }
 0x216   : > { %13960 = vmatpush3.bf16.xpose.msk.msra.mxu1 %vm15539_vm1, %v13958_v61  ;;  %13915 = vmatprep.subr.msk.bf16.mxu0 %vm15539_vm1, %v13913_v62  ;;  %v5263_v61 = vld [vmem:[%s15535_s24 + $0x1c8] sm:$0xff]  ;;  %v5264_v62 = vld [vmem:[%s15535_s24 + $0x1d0] sm:$0xff]  ;;  %v13991_v3 = vpack.c.bf16 %v5232_v60, %v5231_v59  ;;  %v5868_v60 = vld [vmem:[%s15535_s24 + $0x199] sm:$0xff] }
 0x217   : > { %13963 = vmatprep.subr.msk.bf16.mxu1 %vm15539_vm1, %v13961_v63  ;;  %v13988_v63 = vpack.c.bf16 %v5214_v56, %v5213_v55  ;;  %v14039_v4 = vpack.c.bf16 %v5264_v62, %v5263_v61  ;;  %v5818_v55 = vld [vmem:[%s15535_s24 + $0x9] sm:$0xff]  ;;  %v5819_v56 = vld [vmem:[%s15535_s24 + $0x11] sm:$0xff]  ;;  %v5837_v59 = vld [vmem:[%s15535_s24 + $0xa1] sm:$0xff] }
 0x218   : > { %v5869_v61 = vld [vmem:[%s15535_s24 + $0x1a1] sm:$0xff]  ;;  %v14066_v62 = vpack.c.bf16 %v5819_v56, %v5818_v55 }
 0x219   : > { %v5877_v55 = vld [vmem:[%s15535_s24 + $0x1e1] sm:$0xff] }
 0x21d   : > { %13918 = vmatpush3.bf16.xpose.msk.msra.mxu0 %vm15539_vm1, %v13916_v10  ;;  %v5248_v10 = vld [vmem:[%s15535_s24 + $0x150] sm:$0xff] }
 0x21e   : > { %13966 = vmatpush3.bf16.xpose.msk.msra.mxu1 %vm15539_vm1, %v13964_v11  ;;  %13969 = vmatprep.subr.msk.bf16.mxu0 %vm15539_vm1, %v13967_v12  ;;  %v5233_v11 = vld [vmem:[%s15535_s24 + $0xd8] sm:$0xff]  ;;  %v5234_v12 = vld [vmem:[%s15535_s24 + $0xe0] sm:$0xff]  ;;  %v14042_v16 = vpack.c.bf16 %v5248_v10, %v5247_v8  ;;  %v10956_v8 = vld [vmem:[%s18703_s1 + $0x210] sm:$0xff] }
 0x21f   : > { %14017 = vmatprep.subr.msk.bf16.mxu1 %vm15539_vm1, %v14015_v13  ;;  %v5265_v13 = vld [vmem:[%s15535_s24 + $0x1d8] sm:$0xff]  ;;  %v13997_v17 = vpack.c.bf16 %v5234_v12, %v5233_v11  ;;  %v5838_v10 = vld [vmem:[%s15535_s24 + $0xa9] sm:$0xff] }
 0x220   : > { %v14045_v18 = vpack.c.bf16 %v5266_v14, %v5265_v13  ;;  %v5839_v11 = vld [vmem:[%s15535_s24 + $0xb1] sm:$0xff]  ;;  %v5870_v12 = vld [vmem:[%s15535_s24 + $0x1a9] sm:$0xff] }
 0x221   : > { %v5871_v13 = vld [vmem:[%s15535_s24 + $0x1b1] sm:$0xff] }
 0x224   : > { %12368 = vmatmul.mubr.msk.f32.vlgmr.msra.gmra.mrb[0].mxu0 %vm382_vm0, %v16936_v31 }
 0x225   : > { %12416 = vmatmul.mubr.msk.f32.vlgmr.msra.gmra.mrb[0].mxu1 %vm382_vm0, %v16936_v31  ;;  %13972 = vmatpush3.bf16.xpose.msk.msra.mxu0 %vm15539_vm1, %v13970_v22  ;;  %v5242_v31 = vld [vmem:[%s15535_s24 + $0x120] sm:$0xff] }
 0x226   : > { %14020 = vmatpush3.bf16.xpose.msk.msra.mxu1 %vm15539_vm1, %v14018_v23  ;;  %13975 = vmatprep.subr.msk.bf16.mxu0 %vm15539_vm1, %v13973_v24  ;;  %v14024_v34 = vpack.c.bf16 %v5242_v31, %v5241_v29  ;;  %v5250_v22 = vld [vmem:[%s15535_s24 + $0x160] sm:$0xff]  ;;  %v5235_v23 = vld [vmem:[%s15535_s24 + $0xe8] sm:$0xff]  ;;  %v5236_v24 = vld [vmem:[%s15535_s24 + $0xf0] sm:$0xff] }
 0x227   : > { %14023 = vmatprep.subr.msk.bf16.mxu1 %vm15539_vm1, %v14021_v25  ;;  %12369 = vmatprep.mubr.msk.f32.mxu0 %vm382_vm0, %v10867_v26  ;;  %v5267_v25 = vld [vmem:[%s15535_s24 + $0x1e8] sm:$0xff]  ;;  %v14048_v28 = vpack.c.bf16 %v5250_v22, %v5249_v21  ;;  %v14003_v29 = vpack.c.bf16 %v5236_v24, %v5235_v23  ;;  %v10958_v22 = vld [vmem:[%s18703_s1 + $0x220] sm:$0xff]  ;;  %v5855_v23 = vld [vmem:[%s15535_s24 + $0x131] sm:$0xff] }
 0x228   : > { %12417 = vmatprep.mubr.msk.f32.mxu1 %vm382_vm0, %v10867_v26  ;;  %12370 = vmatmul.mubr.msk.f32.gmra.mrb[2].mxu0 %vm382_vm0, %v10867_v26  ;;  %v5219_v31 = vld [vmem:[%s15535_s24 + $0x68] sm:$0xff]  ;;  %v5840_v24 = vld [vmem:[%s15535_s24 + $0xb9] sm:$0xff] }
 0x229   : > { %12418 = vmatmul.mubr.msk.f32.gmra.mrb[2].mxu1 %vm382_vm0, %v10867_v26  ;;  %12371 = vmatprep.mubr.msk.f32.mxu0 %vm382_vm0, %v10868_v30  ;;  %v5268_v26 = vld [vmem:[%s15535_s24 + $0x1f0] sm:$0xff] }
 0x22a   : > { %12419 = vmatprep.mubr.msk.f32.mxu1 %vm382_vm0, %v10868_v30  ;;  %v5854_v21 = vld [vmem:[%s15535_s24 + $0x129] sm:$0xff] }
 0x22c   : > { %12372 = vmatmul.mubr.msk.f32.gmra.mrb[4].mxu0 %vm382_vm0, %v10868_v30 }
 0x22d   : > { %13978 = vmatpush3.bf16.xpose.msk.msra.mxu0 %vm15539_vm1, %v13976_v37  ;;  %12420 = vmatmul.mubr.msk.f32.gmra.mrb[4].mxu1 %vm382_vm0, %v10868_v30  ;;  %v14051_v30 = vpack.c.bf16 %v5268_v26, %v5267_v25  ;;  %v5238_v37 = vld [vmem:[%s15535_s24 + $0x100] sm:$0xff] }
 0x22e   : > { %14026 = vmatpush3.bf16.xpose.msk.msra.mxu1 %vm15539_vm1, %v14024_v34  ;;  %13981 = vmatprep.subr.msk.bf16.mxu0 %vm15539_vm1, %v13979_v38  ;;  %v5269_v34 = vld [vmem:[%s15535_s24 + $0x1f8] sm:$0xff]  ;;  %v5270_v38 = vld [vmem:[%s15535_s24 + $0x200] sm:$0xff]  ;;  %v14009_v41 = vpack.c.bf16 %v5238_v37, %v5237_v36  ;;  %v10960_v37 = vld [vmem:[%s18703_s1 + $0x230] sm:$0xff] }
 0x22f   : > { %14029 = vmatprep.subr.msk.bf16.mxu1 %vm15539_vm1, %v14027_v39  ;;  %12373 = vmatprep.mubr.msk.f32.mxu0 %vm382_vm0, %v10869_v40  ;;  %v14006_v39 = vpack.c.bf16 %v5220_v32, %v5219_v31  ;;  %v14057_v42 = vpack.c.bf16 %v5270_v38, %v5269_v34  ;;  %v5841_v25 = vld [vmem:[%s15535_s24 + $0xc1] sm:$0xff]  ;;  %v5872_v26 = vld [vmem:[%s15535_s24 + $0x1b9] sm:$0xff]  ;;  %v5842_v38 = vld [vmem:[%s15535_s24 + $0xc9] sm:$0xff] }
 0x230   : > { %12421 = vmatprep.mubr.msk.f32.mxu1 %vm382_vm0, %v10869_v40  ;;  %12374 = vmatmul.mubr.msk.f32.gmra.mrb[6].mxu0 %vm382_vm0, %v10869_v40  ;;  %v10959_v32 = vld [vmem:[%s18703_s1 + $0x228] sm:$0xff]  ;;  %v5856_v36 = vld [vmem:[%s15535_s24 + $0x139] sm:$0xff] }
 0x231   : > { %12422 = vmatmul.mubr.msk.f32.gmra.mrb[6].mxu1 %vm382_vm0, %v10869_v40  ;;  %12375 = vmatprep.mubr.msk.f32.mxu0 %vm382_vm0, %v10870_v44  ;;  %v14054_v40 = vpack.c.bf16 %v5252_v35, %v5251_v33  ;;  %v5824_v33 = vld [vmem:[%s15535_s24 + $0x39] sm:$0xff]  ;;  %v5825_v35 = vld [vmem:[%s15535_s24 + $0x41] sm:$0xff] }
 0x232   : > { %12423 = vmatprep.mubr.msk.f32.mxu1 %vm382_vm0, %v10870_v44  ;;  %v5857_v34 = vld [vmem:[%s15535_s24 + $0x141] sm:$0xff] }
 0x234   : > { %12376 = vmatmul.mubr.msk.f32.gmra.mrb[8].mxu0 %vm382_vm0, %v10870_v44 }
 0x235   : > { %13984 = vmatpush3.bf16.xpose.msk.msra.mxu0 %vm15539_vm1, %v13982_v50  ;;  %12424 = vmatmul.mubr.msk.f32.gmra.mrb[8].mxu1 %vm382_vm0, %v10870_v44  ;;  %v5222_v44 = vld [vmem:[%s15535_s24 + $0x80] sm:$0xff]  ;;  %v5867_v50 = vld [vmem:[%s15535_s24 + $0x191] sm:$0xff] }
 0x236   : > { %14032 = vmatpush3.bf16.xpose.msk.msra.mxu1 %vm15539_vm1, %v14030_v51  ;;  %13987 = vmatprep.subr.msk.bf16.mxu0 %vm15539_vm1, %v13985_v52  ;;  %v14012_v51 = vpack.c.bf16 %v5222_v44, %v5221_v43  ;;  %v14060_v52 = vpack.c.bf16 %v5254_v46, %v5253_v45  ;;  %v14132_v43 = vpack.c.bf16 %v5857_v34, %v5856_v36  ;;  %v10961_v46 = vld [vmem:[%s18703_s1 + $0x238] sm:$0xff]  ;;  %v6461_v36 = vld [vmem:[%s15535_s24 + $0x10a] sm:$0xff] }
 0x237   : > { %14035 = vmatprep.subr.msk.bf16.mxu1 %vm15539_vm1, %v14033_v53  ;;  %12377 = vmatprep.mubr.msk.f32.mxu0 %vm382_vm0, %v10871_v54  ;;  %v14063_v53 = vpack.c.bf16 %v5835_v48, %v5834_v47  ;;  %v5826_v47 = vld [vmem:[%s15535_s24 + $0x49] sm:$0xff]  ;;  %v5827_v48 = vld [vmem:[%s15535_s24 + $0x51] sm:$0xff]  ;;  %v6447_v34 = vld [vmem:[%s15535_s24 + $0x9a] sm:$0xff] }
 0x238   : > { %12425 = vmatprep.mubr.msk.f32.mxu1 %vm382_vm0, %v10871_v54  ;;  %12378 = vmatmul.mubr.msk.f32.gmra.mrb[10].mxu0 %vm382_vm0, %v10871_v54  ;;  %v14090_v56 = vpack.c.bf16 %v5827_v48, %v5826_v47  ;;  %v6432_v47 = vld [vmem:[%s15535_s24 + $0x22] sm:$0xff]  ;;  %v6463_v48 = vld [vmem:[%s15535_s24 + $0x11a] sm:$0xff] }
 0x239   : > { %12426 = vmatmul.mubr.msk.f32.gmra.mrb[10].mxu1 %vm382_vm0, %v10871_v54  ;;  %12379 = vmatprep.mubr.msk.f32.mxu0 %vm382_vm0, %v10872_v58  ;;  %v14111_v54 = vpack.c.bf16 %v5867_v50, %v5866_v49  ;;  %v5858_v49 = vld [vmem:[%s15535_s24 + $0x149] sm:$0xff]  ;;  %v17316_v50 = vld [vmem:[%s18703_s1 + $0x240] sm:$0xff] }
 0x23a   : > { %12427 = vmatprep.mubr.msk.f32.mxu1 %vm382_vm0, %v10872_v58 }
 0x23c   : > { %12380 = vmatmul.mubr.msk.f32.gmra.mrb[12].mxu0 %vm382_vm0, %v10872_v58 }
 0x23d   : > { %13990 = vmatpush3.bf16.xpose.msk.msra.mxu0 %vm15539_vm1, %v13988_v63  ;;  %12428 = vmatmul.mubr.msk.f32.gmra.mrb[12].mxu1 %vm382_vm0, %v10872_v58  ;;  %v5851_v58 = vld [vmem:[%s15535_s24 + $0x111] sm:$0xff] }
 0x23e   : > { %14038 = vmatpush3.bf16.xpose.msk.msra.mxu1 %vm15539_vm1, %v14036_v2  ;;  %13993 = vmatprep.subr.msk.bf16.mxu0 %vm15539_vm1, %v13991_v3  ;;  %v14114_v63 = vpack.c.bf16 %v5851_v58, %v5850_v57  ;;  %v14069_v2 = vpack.c.bf16 %v5837_v59, %v5836_v0  ;;  %v14117_v3 = vpack.c.bf16 %v5869_v61, %v5868_v60  ;;  %v5828_v59 = vld [vmem:[%s15535_s24 + $0x59] sm:$0xff]  ;;  %v5829_v60 = vld [vmem:[%s15535_s24 + $0x61] sm:$0xff] }
 0x23f   : > { %14041 = vmatprep.subr.msk.bf16.mxu1 %vm15539_vm1, %v14039_v4  ;;  %12381 = vmatprep.mubr.msk.f32.mxu0 %vm382_vm0, %v10873_v5  ;;  %v10955_v4 = vld [vmem:[%s18703_s1 + $0x208] sm:$0xff]  ;;  %v5860_v61 = vld [vmem:[%s15535_s24 + $0x159] sm:$0xff] }
 0x240   : > { %12429 = vmatprep.mubr.msk.f32.mxu1 %vm382_vm0, %v10873_v5  ;;  %12382 = vmatmul.mubr.msk.f32.gmra.mrb[14].mxu0 %vm382_vm0, %v10873_v5 }
 0x241   : > { %12430 = vmatmul.mubr.msk.f32.gmra.mrb[14].mxu1 %vm382_vm0, %v10873_v5  ;;  %12463 = vmatprep.mubr.msk.f32.mxu0 %vm382_vm0, %v17126_v9  ;;  %v5820_v5 = vld [vmem:[%s15535_s24 + $0x19] sm:$0xff] }
 0x242   : > { %12511 = vmatprep.mubr.msk.f32.mxu1 %vm382_vm0, %v17126_v9  ;;  %v14072_v14 = vpack.c.bf16 %v5821_v6, %v5820_v5  ;;  %v14096_v5 = vpack.c.bf16 %v5829_v60, %v5828_v59  ;;  %v6433_v59 = vld [vmem:[%s15535_s24 + $0x2a] sm:$0xff]  ;;  %v6434_v60 = vld [vmem:[%s15535_s24 + $0x32] sm:$0xff] }
 0x245   : > { %13996 = vmatpush3.bf16.xpose.msk.msra.mxu0 %vm15539_vm1, %v13994_v15 }
 0x246   : > { %14044 = vmatpush3.bf16.xpose.msk.msra.mxu1 %vm15539_vm1, %v14042_v16  ;;  %13999 = vmatprep.subr.msk.bf16.mxu0 %vm15539_vm1, %v13997_v17  ;;  %v14075_v16 = vpack.c.bf16 %v5839_v11, %v5838_v10  ;;  %v14123_v17 = vpack.c.bf16 %v5871_v13, %v5870_v12  ;;  %v5831_v10 = vld [vmem:[%s15535_s24 + $0x71] sm:$0xff]  ;;  %v5862_v11 = vld [vmem:[%s15535_s24 + $0x169] sm:$0xff]  ;;  %v5848_v13 = vld [vmem:[%s15535_s24 + $0xf9] sm:$0xff] }
 0x247   : > { %14047 = vmatprep.subr.msk.bf16.mxu1 %vm15539_vm1, %v14045_v18  ;;  %v10957_v18 = vld [vmem:[%s18703_s1 + $0x218] sm:$0xff] }
 0x248   : > { %v5863_v12 = vld [vmem:[%s15535_s24 + $0x171] sm:$0xff] }
 0x24d   : > { %14002 = vmatpush3.bf16.xpose.msk.msra.mxu0 %vm15539_vm1, %v14000_v27  ;;  %v5873_v27 = vld [vmem:[%s15535_s24 + $0x1c1] sm:$0xff] }
 0x24e   : > { %14050 = vmatpush3.bf16.xpose.msk.msra.mxu1 %vm15539_vm1, %v14048_v28  ;;  %14005 = vmatprep.subr.msk.bf16.mxu0 %vm15539_vm1, %v14003_v29  ;;  %v14078_v28 = vpack.c.bf16 %v5823_v20, %v5822_v19  ;;  %v14126_v29 = vpack.c.bf16 %v5855_v23, %v5854_v21  ;;  %v14129_v31 = vpack.c.bf16 %v5873_v27, %v5872_v26  ;;  %v5832_v21 = vld [vmem:[%s15535_s24 + $0x79] sm:$0xff]  ;;  %v6477_v27 = vld [vmem:[%s15535_s24 + $0x18a] sm:$0xff] }
 0x24f   : > { %14053 = vmatprep.subr.msk.bf16.mxu1 %vm15539_vm1, %v14051_v30  ;;  %v14081_v30 = vpack.c.bf16 %v5841_v25, %v5840_v24  ;;  %v5864_v23 = vld [vmem:[%s15535_s24 + $0x179] sm:$0xff]  ;;  %v5865_v24 = vld [vmem:[%s15535_s24 + $0x181] sm:$0xff]  ;;  %v6445_v25 = vld [vmem:[%s15535_s24 + $0x8a] sm:$0xff] }
 0x250   : > { %v6446_v26 = vld [vmem:[%s15535_s24 + $0x92] sm:$0xff] }
 0x255   : > { %14008 = vmatpush3.bf16.xpose.msk.msra.mxu0 %vm15539_vm1, %v14006_v39  ;;  %v5843_v39 = vld [vmem:[%s15535_s24 + $0xd1] sm:$0xff] }
 0x256   : > { %14056 = vmatpush3.bf16.xpose.msk.msra.mxu1 %vm15539_vm1, %v14054_v40  ;;  %14011 = vmatprep.subr.msk.bf16.mxu0 %vm15539_vm1, %v14009_v41  ;;  %v5874_v40 = vld [vmem:[%s15535_s24 + $0x1c9] sm:$0xff]  ;;  %v5875_v41 = vld [vmem:[%s15535_s24 + $0x1d1] sm:$0xff]  ;;  %v14087_v44 = vpack.c.bf16 %v5843_v39, %v5842_v38  ;;  %v6479_v39 = vld [vmem:[%s15535_s24 + $0x19a] sm:$0xff] }
 0x257   : > { %14059 = vmatprep.subr.msk.bf16.mxu1 %vm15539_vm1, %v14057_v42  ;;  %v14084_v42 = vpack.c.bf16 %v5825_v35, %v5824_v33  ;;  %v14135_v45 = vpack.c.bf16 %v5875_v41, %v5874_v40  ;;  %v6429_v33 = vld [vmem:[%s15535_s24 + $0xa] sm:$0xff]  ;;  %v6430_v35 = vld [vmem:[%s15535_s24 + $0x12] sm:$0xff]  ;;  %v6448_v38 = vld [vmem:[%s15535_s24 + $0xa2] sm:$0xff] }
 0x258   : > { %v6480_v40 = vld [vmem:[%s15535_s24 + $0x1a2] sm:$0xff]  ;;  %v14162_v41 = vpack.c.bf16 %v6430_v35, %v6429_v33 }
 0x259   : > { %v6488_v33 = vld [vmem:[%s15535_s24 + $0x1e2] sm:$0xff] }
 0x25d   : > { %14014 = vmatpush3.bf16.xpose.msk.msra.mxu0 %vm15539_vm1, %v14012_v51  ;;  %v5859_v51 = vld [vmem:[%s15535_s24 + $0x151] sm:$0xff] }
 0x25e   : > { %14062 = vmatpush3.bf16.xpose.msk.msra.mxu1 %vm15539_vm1, %v14060_v52  ;;  %14065 = vmatprep.subr.msk.bf16.mxu0 %vm15539_vm1, %v14063_v53  ;;  %v5844_v52 = vld [vmem:[%s15535_s24 + $0xd9] sm:$0xff]  ;;  %v5845_v53 = vld [vmem:[%s15535_s24 + $0xe1] sm:$0xff]  ;;  %v14138_v57 = vpack.c.bf16 %v5859_v51, %v5858_v49  ;;  %v11044_v49 = vld [vmem:[%s18703_s1 + $0x250] sm:$0xff] }
 0x25f   : > { %14113 = vmatprep.subr.msk.bf16.mxu1 %vm15539_vm1, %v14111_v54  ;;  %v5876_v54 = vld [vmem:[%s15535_s24 + $0x1d9] sm:$0xff]  ;;  %v14093_v58 = vpack.c.bf16 %v5845_v53, %v5844_v52  ;;  %v6449_v51 = vld [vmem:[%s15535_s24 + $0xaa] sm:$0xff] }
 0x260   : > { %v14141_v0 = vpack.c.bf16 %v5877_v55, %v5876_v54  ;;  %v6450_v52 = vld [vmem:[%s15535_s24 + $0xb2] sm:$0xff]  ;;  %v6481_v53 = vld [vmem:[%s15535_s24 + $0x1aa] sm:$0xff] }
 0x261   : > { %v6482_v54 = vld [vmem:[%s15535_s24 + $0x1b2] sm:$0xff] }
 0x264   : > { %12464 = vmatmul.mubr.msk.f32.vlgmr.msra.gmra.mrb[0].mxu0 %vm382_vm0, %v17126_v9 }
 0x265   : > { %12512 = vmatmul.mubr.msk.f32.vlgmr.msra.gmra.mrb[0].mxu1 %vm382_vm0, %v17126_v9  ;;  %14068 = vmatpush3.bf16.xpose.msk.msra.mxu0 %vm15539_vm1, %v14066_v62  ;;  %v5853_v9 = vld [vmem:[%s15535_s24 + $0x121] sm:$0xff] }
 0x266   : > { %14116 = vmatpush3.bf16.xpose.msk.msra.mxu1 %vm15539_vm1, %v14114_v63  ;;  %14071 = vmatprep.subr.msk.bf16.mxu0 %vm15539_vm1, %v14069_v2  ;;  %v14120_v15 = vpack.c.bf16 %v5853_v9, %v5852_v7  ;;  %v5861_v62 = vld [vmem:[%s15535_s24 + $0x161] sm:$0xff]  ;;  %v5846_v63 = vld [vmem:[%s15535_s24 + $0xe9] sm:$0xff]  ;;  %v5847_v2 = vld [vmem:[%s15535_s24 + $0xf1] sm:$0xff] }
 0x267   : > { %14119 = vmatprep.subr.msk.bf16.mxu1 %vm15539_vm1, %v14117_v3  ;;  %12465 = vmatprep.mubr.msk.f32.mxu0 %vm382_vm0, %v10955_v4  ;;  %v5878_v3 = vld [vmem:[%s15535_s24 + $0x1e9] sm:$0xff]  ;;  %v14144_v6 = vpack.c.bf16 %v5861_v62, %v5860_v61  ;;  %v14099_v7 = vpack.c.bf16 %v5847_v2, %v5846_v63  ;;  %v11046_v62 = vld [vmem:[%s18703_s1 + $0x260] sm:$0xff]  ;;  %v6466_v63 = vld [vmem:[%s15535_s24 + $0x132] sm:$0xff] }
 0x268   : > { %12513 = vmatprep.mubr.msk.f32.mxu1 %vm382_vm0, %v10955_v4  ;;  %12466 = vmatmul.mubr.msk.f32.gmra.mrb[2].mxu0 %vm382_vm0, %v10955_v4  ;;  %v5830_v9 = vld [vmem:[%s15535_s24 + $0x69] sm:$0xff]  ;;  %v6451_v2 = vld [vmem:[%s15535_s24 + $0xba] sm:$0xff] }
 0x269   : > { %12514 = vmatmul.mubr.msk.f32.gmra.mrb[2].mxu1 %vm382_vm0, %v10955_v4  ;;  %12467 = vmatprep.mubr.msk.f32.mxu0 %vm382_vm0, %v10956_v8  ;;  %v5879_v4 = vld [vmem:[%s15535_s24 + $0x1f1] sm:$0xff] }
 0x26a   : > { %12515 = vmatprep.mubr.msk.f32.mxu1 %vm382_vm0, %v10956_v8  ;;  %v6465_v61 = vld [vmem:[%s15535_s24 + $0x12a] sm:$0xff] }
 0x26c   : > { %12468 = vmatmul.mubr.msk.f32.gmra.mrb[4].mxu0 %vm382_vm0, %v10956_v8 }
 0x26d   : > { %14074 = vmatpush3.bf16.xpose.msk.msra.mxu0 %vm15539_vm1, %v14072_v14  ;;  %12516 = vmatmul.mubr.msk.f32.gmra.mrb[4].mxu1 %vm382_vm0, %v10956_v8  ;;  %v14147_v8 = vpack.c.bf16 %v5879_v4, %v5878_v3  ;;  %v5849_v14 = vld [vmem:[%s15535_s24 + $0x101] sm:$0xff] }
 0x26e   : > { %14122 = vmatpush3.bf16.xpose.msk.msra.mxu1 %vm15539_vm1, %v14120_v15  ;;  %14077 = vmatprep.subr.msk.bf16.mxu0 %vm15539_vm1, %v14075_v16  ;;  %v5880_v15 = vld [vmem:[%s15535_s24 + $0x1f9] sm:$0xff]  ;;  %v5881_v16 = vld [vmem:[%s15535_s24 + $0x201] sm:$0xff]  ;;  %v14105_v19 = vpack.c.bf16 %v5849_v14, %v5848_v13  ;;  %v11048_v14 = vld [vmem:[%s18703_s1 + $0x270] sm:$0xff] }
 0x26f   : > { %14125 = vmatprep.subr.msk.bf16.mxu1 %vm15539_vm1, %v14123_v17  ;;  %12469 = vmatprep.mubr.msk.f32.mxu0 %vm382_vm0, %v10957_v18  ;;  %v14102_v17 = vpack.c.bf16 %v5831_v10, %v5830_v9  ;;  %v14153_v20 = vpack.c.bf16 %v5881_v16, %v5880_v15  ;;  %v6452_v3 = vld [vmem:[%s15535_s24 + $0xc2] sm:$0xff]  ;;  %v6483_v4 = vld [vmem:[%s15535_s24 + $0x1ba] sm:$0xff]  ;;  %v6453_v16 = vld [vmem:[%s15535_s24 + $0xca] sm:$0xff] }
 0x270   : > { %12517 = vmatprep.mubr.msk.f32.mxu1 %vm382_vm0, %v10957_v18  ;;  %12470 = vmatmul.mubr.msk.f32.gmra.mrb[6].mxu0 %vm382_vm0, %v10957_v18  ;;  %v11047_v10 = vld [vmem:[%s18703_s1 + $0x268] sm:$0xff]  ;;  %v6467_v13 = vld [vmem:[%s15535_s24 + $0x13a] sm:$0xff] }
 0x271   : > { %12518 = vmatmul.mubr.msk.f32.gmra.mrb[6].mxu1 %vm382_vm0, %v10957_v18  ;;  %12471 = vmatprep.mubr.msk.f32.mxu0 %vm382_vm0, %v10958_v22  ;;  %v14150_v18 = vpack.c.bf16 %v5863_v12, %v5862_v11  ;;  %v6435_v11 = vld [vmem:[%s15535_s24 + $0x3a] sm:$0xff]  ;;  %v6436_v12 = vld [vmem:[%s15535_s24 + $0x42] sm:$0xff] }
 0x272   : > { %12519 = vmatprep.mubr.msk.f32.mxu1 %vm382_vm0, %v10958_v22  ;;  %v6468_v15 = vld [vmem:[%s15535_s24 + $0x142] sm:$0xff] }
 0x274   : > { %12472 = vmatmul.mubr.msk.f32.gmra.mrb[8].mxu0 %vm382_vm0, %v10958_v22 }
 0x275   : > { %14080 = vmatpush3.bf16.xpose.msk.msra.mxu0 %vm15539_vm1, %v14078_v28  ;;  %12520 = vmatmul.mubr.msk.f32.gmra.mrb[8].mxu1 %vm382_vm0, %v10958_v22  ;;  %v5833_v22 = vld [vmem:[%s15535_s24 + $0x81] sm:$0xff]  ;;  %v6478_v28 = vld [vmem:[%s15535_s24 + $0x192] sm:$0xff] }
 0x276   : > { %14128 = vmatpush3.bf16.xpose.msk.msra.mxu1 %vm15539_vm1, %v14126_v29  ;;  %14083 = vmatprep.subr.msk.bf16.mxu0 %vm15539_vm1, %v14081_v30  ;;  %v14108_v29 = vpack.c.bf16 %v5833_v22, %v5832_v21  ;;  %v14156_v30 = vpack.c.bf16 %v5865_v24, %v5864_v23  ;;  %v14228_v21 = vpack.c.bf16 %v6468_v15, %v6467_v13  ;;  %v11049_v24 = vld [vmem:[%s18703_s1 + $0x278] sm:$0xff]  ;;  %v7072_v13 = vld [vmem:[%s15535_s24 + $0x10b] sm:$0xff] }
 0x277   : > { %14131 = vmatprep.subr.msk.bf16.mxu1 %vm15539_vm1, %v14129_v31  ;;  %12473 = vmatprep.mubr.msk.f32.mxu0 %vm382_vm0, %v10959_v32  ;;  %v14159_v31 = vpack.c.bf16 %v6446_v26, %v6445_v25  ;;  %v6437_v25 = vld [vmem:[%s15535_s24 + $0x4a] sm:$0xff]  ;;  %v6438_v26 = vld [vmem:[%s15535_s24 + $0x52] sm:$0xff]  ;;  %v7058_v15 = vld [vmem:[%s15535_s24 + $0x9b] sm:$0xff] }
 0x278   : > { %12521 = vmatprep.mubr.msk.f32.mxu1 %vm382_vm0, %v10959_v32  ;;  %12474 = vmatmul.mubr.msk.f32.gmra.mrb[10].mxu0 %vm382_vm0, %v10959_v32  ;;  %v14186_v35 = vpack.c.bf16 %v6438_v26, %v6437_v25  ;;  %v7043_v25 = vld [vmem:[%s15535_s24 + $0x23] sm:$0xff]  ;;  %v7074_v26 = vld [vmem:[%s15535_s24 + $0x11b] sm:$0xff] }
 0x279   : > { %12522 = vmatmul.mubr.msk.f32.gmra.mrb[10].mxu1 %vm382_vm0, %v10959_v32  ;;  %12475 = vmatprep.mubr.msk.f32.mxu0 %vm382_vm0, %v10960_v37  ;;  %v14207_v32 = vpack.c.bf16 %v6478_v28, %v6477_v27  ;;  %v6469_v27 = vld [vmem:[%s15535_s24 + $0x14a] sm:$0xff]  ;;  %v17506_v28 = vld [vmem:[%s18703_s1 + $0x280] sm:$0xff] }
 0x27a   : > { %12523 = vmatprep.mubr.msk.f32.mxu1 %vm382_vm0, %v10960_v37 }
 0x27c   : > { %12476 = vmatmul.mubr.msk.f32.gmra.mrb[12].mxu0 %vm382_vm0, %v10960_v37 }
 0x27d   : > { %14086 = vmatpush3.bf16.xpose.msk.msra.mxu0 %vm15539_vm1, %v14084_v42  ;;  %12524 = vmatmul.mubr.msk.f32.gmra.mrb[12].mxu1 %vm382_vm0, %v10960_v37  ;;  %v6462_v37 = vld [vmem:[%s15535_s24 + $0x112] sm:$0xff] }
 0x27e   : > { %14134 = vmatpush3.bf16.xpose.msk.msra.mxu1 %vm15539_vm1, %v14132_v43  ;;  %14089 = vmatprep.subr.msk.bf16.mxu0 %vm15539_vm1, %v14087_v44  ;;  %v14210_v42 = vpack.c.bf16 %v6462_v37, %v6461_v36  ;;  %v14165_v43 = vpack.c.bf16 %v6448_v38, %v6447_v34  ;;  %v14213_v44 = vpack.c.bf16 %v6480_v40, %v6479_v39  ;;  %v6439_v38 = vld [vmem:[%s15535_s24 + $0x5a] sm:$0xff]  ;;  %v6440_v39 = vld [vmem:[%s15535_s24 + $0x62] sm:$0xff] }
 0x27f   : > { %14137 = vmatprep.subr.msk.bf16.mxu1 %vm15539_vm1, %v14135_v45  ;;  %12477 = vmatprep.mubr.msk.f32.mxu0 %vm382_vm0, %v10961_v46  ;;  %v11043_v45 = vld [vmem:[%s18703_s1 + $0x248] sm:$0xff]  ;;  %v6471_v40 = vld [vmem:[%s15535_s24 + $0x15a] sm:$0xff] }
 0x280   : > { %12525 = vmatprep.mubr.msk.f32.mxu1 %vm382_vm0, %v10961_v46  ;;  %12478 = vmatmul.mubr.msk.f32.gmra.mrb[14].mxu0 %vm382_vm0, %v10961_v46 }
 0x281   : > { %12526 = vmatmul.mubr.msk.f32.gmra.mrb[14].mxu1 %vm382_vm0, %v10961_v46  ;;  %12559 = vmatprep.mubr.msk.f32.mxu0 %vm382_vm0, %v17316_v50  ;;  %v6431_v46 = vld [vmem:[%s15535_s24 + $0x1a] sm:$0xff] }
 0x282   : > { %12607 = vmatprep.mubr.msk.f32.mxu1 %vm382_vm0, %v17316_v50  ;;  %v14168_v55 = vpack.c.bf16 %v6432_v47, %v6431_v46  ;;  %v14192_v46 = vpack.c.bf16 %v6440_v39, %v6439_v38  ;;  %v7044_v38 = vld [vmem:[%s15535_s24 + $0x2b] sm:$0xff]  ;;  %v7045_v39 = vld [vmem:[%s15535_s24 + $0x33] sm:$0xff] }
 0x285   : > { %14092 = vmatpush3.bf16.xpose.msk.msra.mxu0 %vm15539_vm1, %v14090_v56 }
 0x286   : > { %14140 = vmatpush3.bf16.xpose.msk.msra.mxu1 %vm15539_vm1, %v14138_v57  ;;  %14095 = vmatprep.subr.msk.bf16.mxu0 %vm15539_vm1, %v14093_v58  ;;  %v14171_v57 = vpack.c.bf16 %v6450_v52, %v6449_v51  ;;  %v14219_v58 = vpack.c.bf16 %v6482_v54, %v6481_v53  ;;  %v6442_v51 = vld [vmem:[%s15535_s24 + $0x72] sm:$0xff]  ;;  %v6473_v52 = vld [vmem:[%s15535_s24 + $0x16a] sm:$0xff]  ;;  %v6459_v54 = vld [vmem:[%s15535_s24 + $0xfa] sm:$0xff] }
 0x287   : > { %14143 = vmatprep.subr.msk.bf16.mxu1 %vm15539_vm1, %v14141_v0  ;;  %v11045_v0 = vld [vmem:[%s18703_s1 + $0x258] sm:$0xff] }
 0x288   : > { %v6474_v53 = vld [vmem:[%s15535_s24 + $0x172] sm:$0xff] }
 0x28d   : > { %14098 = vmatpush3.bf16.xpose.msk.msra.mxu0 %vm15539_vm1, %v14096_v5  ;;  %v6484_v5 = vld [vmem:[%s15535_s24 + $0x1c2] sm:$0xff] }
 0x28e   : > { %14146 = vmatpush3.bf16.xpose.msk.msra.mxu1 %vm15539_vm1, %v14144_v6  ;;  %14101 = vmatprep.subr.msk.bf16.mxu0 %vm15539_vm1, %v14099_v7  ;;  %v14174_v6 = vpack.c.bf16 %v6434_v60, %v6433_v59  ;;  %v14222_v7 = vpack.c.bf16 %v6466_v63, %v6465_v61  ;;  %v14225_v9 = vpack.c.bf16 %v6484_v5, %v6483_v4  ;;  %v6443_v61 = vld [vmem:[%s15535_s24 + $0x7a] sm:$0xff]  ;;  %v7088_v5 = vld [vmem:[%s15535_s24 + $0x18b] sm:$0xff] }
 0x28f   : > { %14149 = vmatprep.subr.msk.bf16.mxu1 %vm15539_vm1, %v14147_v8  ;;  %v14177_v8 = vpack.c.bf16 %v6452_v3, %v6451_v2  ;;  %v6475_v63 = vld [vmem:[%s15535_s24 + $0x17a] sm:$0xff]  ;;  %v6476_v2 = vld [vmem:[%s15535_s24 + $0x182] sm:$0xff]  ;;  %v7056_v3 = vld [vmem:[%s15535_s24 + $0x8b] sm:$0xff] }
 0x290   : > { %v7057_v4 = vld [vmem:[%s15535_s24 + $0x93] sm:$0xff] }
 0x295   : > { %14104 = vmatpush3.bf16.xpose.msk.msra.mxu0 %vm15539_vm1, %v14102_v17  ;;  %v6454_v17 = vld [vmem:[%s15535_s24 + $0xd2] sm:$0xff] }
 0x296   : > { %14152 = vmatpush3.bf16.xpose.msk.msra.mxu1 %vm15539_vm1, %v14150_v18  ;;  %14107 = vmatprep.subr.msk.bf16.mxu0 %vm15539_vm1, %v14105_v19  ;;  %v6485_v18 = vld [vmem:[%s15535_s24 + $0x1ca] sm:$0xff]  ;;  %v6486_v19 = vld [vmem:[%s15535_s24 + $0x1d2] sm:$0xff]  ;;  %v14183_v22 = vpack.c.bf16 %v6454_v17, %v6453_v16  ;;  %v7090_v17 = vld [vmem:[%s15535_s24 + $0x19b] sm:$0xff] }
 0x297   : > { %14155 = vmatprep.subr.msk.bf16.mxu1 %vm15539_vm1, %v14153_v20  ;;  %v14180_v20 = vpack.c.bf16 %v6436_v12, %v6435_v11  ;;  %v14231_v23 = vpack.c.bf16 %v6486_v19, %v6485_v18  ;;  %v7040_v11 = vld [vmem:[%s15535_s24 + $0xb] sm:$0xff]  ;;  %v7041_v12 = vld [vmem:[%s15535_s24 + $0x13] sm:$0xff]  ;;  %v7059_v16 = vld [vmem:[%s15535_s24 + $0xa3] sm:$0xff] }
 0x298   : > { %v7091_v18 = vld [vmem:[%s15535_s24 + $0x1a3] sm:$0xff]  ;;  %v14258_v19 = vpack.c.bf16 %v7041_v12, %v7040_v11 }
 0x299   : > { %v7099_v11 = vld [vmem:[%s15535_s24 + $0x1e3] sm:$0xff] }
 0x29d   : > { %14110 = vmatpush3.bf16.xpose.msk.msra.mxu0 %vm15539_vm1, %v14108_v29  ;;  %v6470_v29 = vld [vmem:[%s15535_s24 + $0x152] sm:$0xff] }
 0x29e   : > { %14158 = vmatpush3.bf16.xpose.msk.msra.mxu1 %vm15539_vm1, %v14156_v30  ;;  %14161 = vmatprep.subr.msk.bf16.mxu0 %vm15539_vm1, %v14159_v31  ;;  %v6455_v30 = vld [vmem:[%s15535_s24 + $0xda] sm:$0xff]  ;;  %v6456_v31 = vld [vmem:[%s15535_s24 + $0xe2] sm:$0xff]  ;;  %v14234_v36 = vpack.c.bf16 %v6470_v29, %v6469_v27  ;;  %v11132_v27 = vld [vmem:[%s18703_s1 + $0x290] sm:$0xff] }
 0x29f   : > { %14209 = vmatprep.subr.msk.bf16.mxu1 %vm15539_vm1, %v14207_v32  ;;  %v6487_v32 = vld [vmem:[%s15535_s24 + $0x1da] sm:$0xff]  ;;  %v14189_v37 = vpack.c.bf16 %v6456_v31, %v6455_v30  ;;  %v7060_v29 = vld [vmem:[%s15535_s24 + $0xab] sm:$0xff] }
 0x2a0   : > { %v14237_v34 = vpack.c.bf16 %v6488_v33, %v6487_v32  ;;  %v7061_v30 = vld [vmem:[%s15535_s24 + $0xb3] sm:$0xff]  ;;  %v7092_v31 = vld [vmem:[%s15535_s24 + $0x1ab] sm:$0xff] }
 0x2a1   : > { %v7093_v32 = vld [vmem:[%s15535_s24 + $0x1b3] sm:$0xff] }
 0x2a4   : > { %12560 = vmatmul.mubr.msk.f32.vlgmr.msra.gmra.mrb[0].mxu0 %vm382_vm0, %v17316_v50 }
 0x2a5   : > { %12608 = vmatmul.mubr.msk.f32.vlgmr.msra.gmra.mrb[0].mxu1 %vm382_vm0, %v17316_v50  ;;  %14164 = vmatpush3.bf16.xpose.msk.msra.mxu0 %vm15539_vm1, %v14162_v41  ;;  %v6464_v50 = vld [vmem:[%s15535_s24 + $0x122] sm:$0xff] }
 0x2a6   : > { %14212 = vmatpush3.bf16.xpose.msk.msra.mxu1 %vm15539_vm1, %v14210_v42  ;;  %14167 = vmatprep.subr.msk.bf16.mxu0 %vm15539_vm1, %v14165_v43  ;;  %v14216_v56 = vpack.c.bf16 %v6464_v50, %v6463_v48  ;;  %v6472_v41 = vld [vmem:[%s15535_s24 + $0x162] sm:$0xff]  ;;  %v6457_v42 = vld [vmem:[%s15535_s24 + $0xea] sm:$0xff]  ;;  %v6458_v43 = vld [vmem:[%s15535_s24 + $0xf2] sm:$0xff] }
 0x2a7   : > { %14215 = vmatprep.subr.msk.bf16.mxu1 %vm15539_vm1, %v14213_v44  ;;  %12561 = vmatprep.mubr.msk.f32.mxu0 %vm382_vm0, %v11043_v45  ;;  %v6489_v44 = vld [vmem:[%s15535_s24 + $0x1ea] sm:$0xff]  ;;  %v14240_v47 = vpack.c.bf16 %v6472_v41, %v6471_v40  ;;  %v14195_v48 = vpack.c.bf16 %v6458_v43, %v6457_v42  ;;  %v11134_v41 = vld [vmem:[%s18703_s1 + $0x2a0] sm:$0xff]  ;;  %v7077_v42 = vld [vmem:[%s15535_s24 + $0x133] sm:$0xff] }
 0x2a8   : > { %12609 = vmatprep.mubr.msk.f32.mxu1 %vm382_vm0, %v11043_v45  ;;  %12562 = vmatmul.mubr.msk.f32.gmra.mrb[2].mxu0 %vm382_vm0, %v11043_v45  ;;  %v6441_v50 = vld [vmem:[%s15535_s24 + $0x6a] sm:$0xff]  ;;  %v7062_v43 = vld [vmem:[%s15535_s24 + $0xbb] sm:$0xff] }
 0x2a9   : > { %12610 = vmatmul.mubr.msk.f32.gmra.mrb[2].mxu1 %vm382_vm0, %v11043_v45  ;;  %12563 = vmatprep.mubr.msk.f32.mxu0 %vm382_vm0, %v11044_v49  ;;  %v6490_v45 = vld [vmem:[%s15535_s24 + $0x1f2] sm:$0xff] }
 0x2aa   : > { %12611 = vmatprep.mubr.msk.f32.mxu1 %vm382_vm0, %v11044_v49  ;;  %v7076_v40 = vld [vmem:[%s15535_s24 + $0x12b] sm:$0xff] }
 0x2ac   : > { %12564 = vmatmul.mubr.msk.f32.gmra.mrb[4].mxu0 %vm382_vm0, %v11044_v49 }
 0x2ad   : > { %14170 = vmatpush3.bf16.xpose.msk.msra.mxu0 %vm15539_vm1, %v14168_v55  ;;  %12612 = vmatmul.mubr.msk.f32.gmra.mrb[4].mxu1 %vm382_vm0, %v11044_v49  ;;  %v14243_v49 = vpack.c.bf16 %v6490_v45, %v6489_v44  ;;  %v6460_v55 = vld [vmem:[%s15535_s24 + $0x102] sm:$0xff] }
 0x2ae   : > { %14218 = vmatpush3.bf16.xpose.msk.msra.mxu1 %vm15539_vm1, %v14216_v56  ;;  %14173 = vmatprep.subr.msk.bf16.mxu0 %vm15539_vm1, %v14171_v57  ;;  %v6491_v56 = vld [vmem:[%s15535_s24 + $0x1fa] sm:$0xff]  ;;  %v6492_v57 = vld [vmem:[%s15535_s24 + $0x202] sm:$0xff]  ;;  %v14201_v59 = vpack.c.bf16 %v6460_v55, %v6459_v54  ;;  %v11136_v55 = vld [vmem:[%s18703_s1 + $0x2b0] sm:$0xff] }
 0x2af   : > { %14221 = vmatprep.subr.msk.bf16.mxu1 %vm15539_vm1, %v14219_v58  ;;  %12565 = vmatprep.mubr.msk.f32.mxu0 %vm382_vm0, %v11045_v0  ;;  %v14198_v58 = vpack.c.bf16 %v6442_v51, %v6441_v50  ;;  %v14249_v60 = vpack.c.bf16 %v6492_v57, %v6491_v56  ;;  %v7063_v44 = vld [vmem:[%s15535_s24 + $0xc3] sm:$0xff]  ;;  %v7094_v45 = vld [vmem:[%s15535_s24 + $0x1bb] sm:$0xff]  ;;  %v7064_v57 = vld [vmem:[%s15535_s24 + $0xcb] sm:$0xff] }
 0x2b0   : > { %12613 = vmatprep.mubr.msk.f32.mxu1 %vm382_vm0, %v11045_v0  ;;  %12566 = vmatmul.mubr.msk.f32.gmra.mrb[6].mxu0 %vm382_vm0, %v11045_v0  ;;  %v11135_v51 = vld [vmem:[%s18703_s1 + $0x2a8] sm:$0xff]  ;;  %v7078_v54 = vld [vmem:[%s15535_s24 + $0x13b] sm:$0xff] }
 0x2b1   : > { %12614 = vmatmul.mubr.msk.f32.gmra.mrb[6].mxu1 %vm382_vm0, %v11045_v0  ;;  %12567 = vmatprep.mubr.msk.f32.mxu0 %vm382_vm0, %v11046_v62  ;;  %v14246_v0 = vpack.c.bf16 %v6474_v53, %v6473_v52  ;;  %v7046_v52 = vld [vmem:[%s15535_s24 + $0x3b] sm:$0xff]  ;;  %v7047_v53 = vld [vmem:[%s15535_s24 + $0x43] sm:$0xff] }
 0x2b2   : > { %12615 = vmatprep.mubr.msk.f32.mxu1 %vm382_vm0, %v11046_v62  ;;  %v7079_v56 = vld [vmem:[%s15535_s24 + $0x143] sm:$0xff] }
 0x2b4   : > { %12568 = vmatmul.mubr.msk.f32.gmra.mrb[8].mxu0 %vm382_vm0, %v11046_v62 }
 0x2b5   : > { %14176 = vmatpush3.bf16.xpose.msk.msra.mxu0 %vm15539_vm1, %v14174_v6  ;;  %12616 = vmatmul.mubr.msk.f32.gmra.mrb[8].mxu1 %vm382_vm0, %v11046_v62  ;;  %v6444_v62 = vld [vmem:[%s15535_s24 + $0x82] sm:$0xff]  ;;  %v7089_v6 = vld [vmem:[%s15535_s24 + $0x193] sm:$0xff] }
 0x2b6   : > { %14224 = vmatpush3.bf16.xpose.msk.msra.mxu1 %vm15539_vm1, %v14222_v7  ;;  %14179 = vmatprep.subr.msk.bf16.mxu0 %vm15539_vm1, %v14177_v8  ;;  %v14204_v7 = vpack.c.bf16 %v6444_v62, %v6443_v61  ;;  %v14252_v8 = vpack.c.bf16 %v6476_v2, %v6475_v63  ;;  %v14324_v61 = vpack.c.bf16 %v7079_v56, %v7078_v54  ;;  %v11137_v2 = vld [vmem:[%s18703_s1 + $0x2b8] sm:$0xff]  ;;  %v7683_v54 = vld [vmem:[%s15535_s24 + $0x10c] sm:$0xff] }
 0x2b7   : > { %14227 = vmatprep.subr.msk.bf16.mxu1 %vm15539_vm1, %v14225_v9  ;;  %12569 = vmatprep.mubr.msk.f32.mxu0 %vm382_vm0, %v11047_v10  ;;  %v14255_v9 = vpack.c.bf16 %v7057_v4, %v7056_v3  ;;  %v7048_v3 = vld [vmem:[%s15535_s24 + $0x4b] sm:$0xff]  ;;  %v7049_v4 = vld [vmem:[%s15535_s24 + $0x53] sm:$0xff]  ;;  %v7669_v56 = vld [vmem:[%s15535_s24 + $0x9c] sm:$0xff] }
 0x2b8   : > { %12617 = vmatprep.mubr.msk.f32.mxu1 %vm382_vm0, %v11047_v10  ;;  %12570 = vmatmul.mubr.msk.f32.gmra.mrb[10].mxu0 %vm382_vm0, %v11047_v10  ;;  %v14282_v12 = vpack.c.bf16 %v7049_v4, %v7048_v3  ;;  %v7654_v3 = vld [vmem:[%s15535_s24 + $0x24] sm:$0xff]  ;;  %v7685_v4 = vld [vmem:[%s15535_s24 + $0x11c] sm:$0xff] }
 0x2b9   : > { %12618 = vmatmul.mubr.msk.f32.gmra.mrb[10].mxu1 %vm382_vm0, %v11047_v10  ;;  %12571 = vmatprep.mubr.msk.f32.mxu0 %vm382_vm0, %v11048_v14  ;;  %v14303_v10 = vpack.c.bf16 %v7089_v6, %v7088_v5  ;;  %v7080_v5 = vld [vmem:[%s15535_s24 + $0x14b] sm:$0xff]  ;;  %v17696_v6 = vld [vmem:[%s18703_s1 + $0x2c0] sm:$0xff] }
 0x2ba   : > { %12619 = vmatprep.mubr.msk.f32.mxu1 %vm382_vm0, %v11048_v14 }
 0x2bc   : > { %12572 = vmatmul.mubr.msk.f32.gmra.mrb[12].mxu0 %vm382_vm0, %v11048_v14 }
 0x2bd   : > { %14182 = vmatpush3.bf16.xpose.msk.msra.mxu0 %vm15539_vm1, %v14180_v20  ;;  %12620 = vmatmul.mubr.msk.f32.gmra.mrb[12].mxu1 %vm382_vm0, %v11048_v14  ;;  %v7073_v14 = vld [vmem:[%s15535_s24 + $0x113] sm:$0xff] }
 0x2be   : > { %14230 = vmatpush3.bf16.xpose.msk.msra.mxu1 %vm15539_vm1, %v14228_v21  ;;  %14185 = vmatprep.subr.msk.bf16.mxu0 %vm15539_vm1, %v14183_v22  ;;  %v14306_v20 = vpack.c.bf16 %v7073_v14, %v7072_v13  ;;  %v14261_v21 = vpack.c.bf16 %v7059_v16, %v7058_v15  ;;  %v14309_v22 = vpack.c.bf16 %v7091_v18, %v7090_v17  ;;  %v7050_v16 = vld [vmem:[%s15535_s24 + $0x5b] sm:$0xff]  ;;  %v7051_v17 = vld [vmem:[%s15535_s24 + $0x63] sm:$0xff] }
 0x2bf   : > { %14233 = vmatprep.subr.msk.bf16.mxu1 %vm15539_vm1, %v14231_v23  ;;  %12573 = vmatprep.mubr.msk.f32.mxu0 %vm382_vm0, %v11049_v24  ;;  %v11131_v23 = vld [vmem:[%s18703_s1 + $0x288] sm:$0xff]  ;;  %v7082_v18 = vld [vmem:[%s15535_s24 + $0x15b] sm:$0xff] }
 0x2c0   : > { %12621 = vmatprep.mubr.msk.f32.mxu1 %vm382_vm0, %v11049_v24  ;;  %12574 = vmatmul.mubr.msk.f32.gmra.mrb[14].mxu0 %vm382_vm0, %v11049_v24 }
 0x2c1   : > { %12622 = vmatmul.mubr.msk.f32.gmra.mrb[14].mxu1 %vm382_vm0, %v11049_v24  ;;  %12655 = vmatprep.mubr.msk.f32.mxu0 %vm382_vm0, %v17506_v28  ;;  %v7042_v24 = vld [vmem:[%s15535_s24 + $0x1b] sm:$0xff] }
 0x2c2   : > { %12703 = vmatprep.mubr.msk.f32.mxu1 %vm382_vm0, %v17506_v28  ;;  %v14264_v33 = vpack.c.bf16 %v7043_v25, %v7042_v24  ;;  %v14288_v24 = vpack.c.bf16 %v7051_v17, %v7050_v16  ;;  %v7655_v16 = vld [vmem:[%s15535_s24 + $0x2c] sm:$0xff]  ;;  %v7656_v17 = vld [vmem:[%s15535_s24 + $0x34] sm:$0xff] }
 0x2c5   : > { %14188 = vmatpush3.bf16.xpose.msk.msra.mxu0 %vm15539_vm1, %v14186_v35 }
 0x2c6   : > { %14236 = vmatpush3.bf16.xpose.msk.msra.mxu1 %vm15539_vm1, %v14234_v36  ;;  %14191 = vmatprep.subr.msk.bf16.mxu0 %vm15539_vm1, %v14189_v37  ;;  %v14267_v36 = vpack.c.bf16 %v7061_v30, %v7060_v29  ;;  %v14315_v37 = vpack.c.bf16 %v7093_v32, %v7092_v31  ;;  %v7053_v29 = vld [vmem:[%s15535_s24 + $0x73] sm:$0xff]  ;;  %v7084_v30 = vld [vmem:[%s15535_s24 + $0x16b] sm:$0xff]  ;;  %v7070_v32 = vld [vmem:[%s15535_s24 + $0xfb] sm:$0xff] }
 0x2c7   : > { %14239 = vmatprep.subr.msk.bf16.mxu1 %vm15539_vm1, %v14237_v34  ;;  %v11133_v34 = vld [vmem:[%s18703_s1 + $0x298] sm:$0xff] }
 0x2c8   : > { %v7085_v31 = vld [vmem:[%s15535_s24 + $0x173] sm:$0xff] }
 0x2cd   : > { %14194 = vmatpush3.bf16.xpose.msk.msra.mxu0 %vm15539_vm1, %v14192_v46  ;;  %v7095_v46 = vld [vmem:[%s15535_s24 + $0x1c3] sm:$0xff] }
 0x2ce   : > { %14242 = vmatpush3.bf16.xpose.msk.msra.mxu1 %vm15539_vm1, %v14240_v47  ;;  %14197 = vmatprep.subr.msk.bf16.mxu0 %vm15539_vm1, %v14195_v48  ;;  %v14270_v47 = vpack.c.bf16 %v7045_v39, %v7044_v38  ;;  %v14318_v48 = vpack.c.bf16 %v7077_v42, %v7076_v40  ;;  %v14321_v50 = vpack.c.bf16 %v7095_v46, %v7094_v45  ;;  %v7054_v40 = vld [vmem:[%s15535_s24 + $0x7b] sm:$0xff]  ;;  %v7699_v46 = vld [vmem:[%s15535_s24 + $0x18c] sm:$0xff] }
 0x2cf   : > { %14245 = vmatprep.subr.msk.bf16.mxu1 %vm15539_vm1, %v14243_v49  ;;  %v14273_v49 = vpack.c.bf16 %v7063_v44, %v7062_v43  ;;  %v7086_v42 = vld [vmem:[%s15535_s24 + $0x17b] sm:$0xff]  ;;  %v7087_v43 = vld [vmem:[%s15535_s24 + $0x183] sm:$0xff]  ;;  %v7667_v44 = vld [vmem:[%s15535_s24 + $0x8c] sm:$0xff] }
 0x2d0   : > { %v7668_v45 = vld [vmem:[%s15535_s24 + $0x94] sm:$0xff] }
 0x2d5   : > { %14200 = vmatpush3.bf16.xpose.msk.msra.mxu0 %vm15539_vm1, %v14198_v58  ;;  %v7065_v58 = vld [vmem:[%s15535_s24 + $0xd3] sm:$0xff] }
 0x2d6   : > { %14248 = vmatpush3.bf16.xpose.msk.msra.mxu1 %vm15539_vm1, %v14246_v0  ;;  %14203 = vmatprep.subr.msk.bf16.mxu0 %vm15539_vm1, %v14201_v59  ;;  %v7096_v0 = vld [vmem:[%s15535_s24 + $0x1cb] sm:$0xff]  ;;  %v7097_v59 = vld [vmem:[%s15535_s24 + $0x1d3] sm:$0xff]  ;;  %v14279_v62 = vpack.c.bf16 %v7065_v58, %v7064_v57  ;;  %v7701_v58 = vld [vmem:[%s15535_s24 + $0x19c] sm:$0xff] }
 0x2d7   : > { %14251 = vmatprep.subr.msk.bf16.mxu1 %vm15539_vm1, %v14249_v60  ;;  %v14276_v60 = vpack.c.bf16 %v7047_v53, %v7046_v52  ;;  %v14327_v63 = vpack.c.bf16 %v7097_v59, %v7096_v0  ;;  %v7651_v52 = vld [vmem:[%s15535_s24 + $0xc] sm:$0xff]  ;;  %v7652_v53 = vld [vmem:[%s15535_s24 + $0x14] sm:$0xff]  ;;  %v7670_v57 = vld [vmem:[%s15535_s24 + $0xa4] sm:$0xff] }
 0x2d8   : > { %v7702_v0 = vld [vmem:[%s15535_s24 + $0x1a4] sm:$0xff]  ;;  %v14354_v59 = vpack.c.bf16 %v7652_v53, %v7651_v52 }
 0x2d9   : > { %v7710_v52 = vld [vmem:[%s15535_s24 + $0x1e4] sm:$0xff] }
 0x2dd   : > { %14206 = vmatpush3.bf16.xpose.msk.msra.mxu0 %vm15539_vm1, %v14204_v7  ;;  %v7081_v7 = vld [vmem:[%s15535_s24 + $0x153] sm:$0xff] }
 0x2de   : > { %14254 = vmatpush3.bf16.xpose.msk.msra.mxu1 %vm15539_vm1, %v14252_v8  ;;  %14257 = vmatprep.subr.msk.bf16.mxu0 %vm15539_vm1, %v14255_v9  ;;  %v7066_v8 = vld [vmem:[%s15535_s24 + $0xdb] sm:$0xff]  ;;  %v7067_v9 = vld [vmem:[%s15535_s24 + $0xe3] sm:$0xff]  ;;  %v14330_v13 = vpack.c.bf16 %v7081_v7, %v7080_v5  ;;  %v11220_v5 = vld [vmem:[%s18703_s1 + $0x2d0] sm:$0xff] }
 0x2df   : > { %14305 = vmatprep.subr.msk.bf16.mxu1 %vm15539_vm1, %v14303_v10  ;;  %v7098_v10 = vld [vmem:[%s15535_s24 + $0x1db] sm:$0xff]  ;;  %v14285_v14 = vpack.c.bf16 %v7067_v9, %v7066_v8  ;;  %v7671_v7 = vld [vmem:[%s15535_s24 + $0xac] sm:$0xff] }
 0x2e0   : > { %v14333_v15 = vpack.c.bf16 %v7099_v11, %v7098_v10  ;;  %v7672_v8 = vld [vmem:[%s15535_s24 + $0xb4] sm:$0xff]  ;;  %v7703_v9 = vld [vmem:[%s15535_s24 + $0x1ac] sm:$0xff] }
 0x2e1   : > { %v7704_v10 = vld [vmem:[%s15535_s24 + $0x1b4] sm:$0xff] }
 0x2e4   : > { %12656 = vmatmul.mubr.msk.f32.vlgmr.msra.gmra.mrb[0].mxu0 %vm382_vm0, %v17506_v28 }
 0x2e5   : > { %12704 = vmatmul.mubr.msk.f32.vlgmr.msra.gmra.mrb[0].mxu1 %vm382_vm0, %v17506_v28  ;;  %14260 = vmatpush3.bf16.xpose.msk.msra.mxu0 %vm15539_vm1, %v14258_v19  ;;  %v7075_v28 = vld [vmem:[%s15535_s24 + $0x123] sm:$0xff] }
 0x2e6   : > { %14308 = vmatpush3.bf16.xpose.msk.msra.mxu1 %vm15539_vm1, %v14306_v20  ;;  %14263 = vmatprep.subr.msk.bf16.mxu0 %vm15539_vm1, %v14261_v21  ;;  %v14312_v35 = vpack.c.bf16 %v7075_v28, %v7074_v26  ;;  %v7083_v19 = vld [vmem:[%s15535_s24 + $0x163] sm:$0xff]  ;;  %v7068_v20 = vld [vmem:[%s15535_s24 + $0xeb] sm:$0xff]  ;;  %v7069_v21 = vld [vmem:[%s15535_s24 + $0xf3] sm:$0xff] }
 0x2e7   : > { %14311 = vmatprep.subr.msk.bf16.mxu1 %vm15539_vm1, %v14309_v22  ;;  %12657 = vmatprep.mubr.msk.f32.mxu0 %vm382_vm0, %v11131_v23  ;;  %v7100_v22 = vld [vmem:[%s15535_s24 + $0x1eb] sm:$0xff]  ;;  %v14336_v25 = vpack.c.bf16 %v7083_v19, %v7082_v18  ;;  %v14291_v26 = vpack.c.bf16 %v7069_v21, %v7068_v20  ;;  %v11222_v19 = vld [vmem:[%s18703_s1 + $0x2e0] sm:$0xff]  ;;  %v7688_v20 = vld [vmem:[%s15535_s24 + $0x134] sm:$0xff] }
 0x2e8   : > { %12705 = vmatprep.mubr.msk.f32.mxu1 %vm382_vm0, %v11131_v23  ;;  %12658 = vmatmul.mubr.msk.f32.gmra.mrb[2].mxu0 %vm382_vm0, %v11131_v23  ;;  %v7052_v28 = vld [vmem:[%s15535_s24 + $0x6b] sm:$0xff]  ;;  %v7673_v21 = vld [vmem:[%s15535_s24 + $0xbc] sm:$0xff] }
 0x2e9   : > { %12706 = vmatmul.mubr.msk.f32.gmra.mrb[2].mxu1 %vm382_vm0, %v11131_v23  ;;  %12659 = vmatprep.mubr.msk.f32.mxu0 %vm382_vm0, %v11132_v27  ;;  %v7101_v23 = vld [vmem:[%s15535_s24 + $0x1f3] sm:$0xff] }
 0x2ea   : > { %12707 = vmatprep.mubr.msk.f32.mxu1 %vm382_vm0, %v11132_v27  ;;  %v7687_v18 = vld [vmem:[%s15535_s24 + $0x12c] sm:$0xff] }
 0x2ec   : > { %12660 = vmatmul.mubr.msk.f32.gmra.mrb[4].mxu0 %vm382_vm0, %v11132_v27 }
 0x2ed   : > { %14266 = vmatpush3.bf16.xpose.msk.msra.mxu0 %vm15539_vm1, %v14264_v33  ;;  %12708 = vmatmul.mubr.msk.f32.gmra.mrb[4].mxu1 %vm382_vm0, %v11132_v27  ;;  %v14339_v27 = vpack.c.bf16 %v7101_v23, %v7100_v22  ;;  %v7071_v33 = vld [vmem:[%s15535_s24 + $0x103] sm:$0xff] }
 0x2ee   : > { %14314 = vmatpush3.bf16.xpose.msk.msra.mxu1 %vm15539_vm1, %v14312_v35  ;;  %14269 = vmatprep.subr.msk.bf16.mxu0 %vm15539_vm1, %v14267_v36  ;;  %v7102_v35 = vld [vmem:[%s15535_s24 + $0x1fb] sm:$0xff]  ;;  %v7103_v36 = vld [vmem:[%s15535_s24 + $0x203] sm:$0xff]  ;;  %v14297_v38 = vpack.c.bf16 %v7071_v33, %v7070_v32  ;;  %v11224_v33 = vld [vmem:[%s18703_s1 + $0x2f0] sm:$0xff] }
 0x2ef   : > { %14317 = vmatprep.subr.msk.bf16.mxu1 %vm15539_vm1, %v14315_v37  ;;  %12661 = vmatprep.mubr.msk.f32.mxu0 %vm382_vm0, %v11133_v34  ;;  %v14294_v37 = vpack.c.bf16 %v7053_v29, %v7052_v28  ;;  %v14345_v39 = vpack.c.bf16 %v7103_v36, %v7102_v35  ;;  %v7674_v22 = vld [vmem:[%s15535_s24 + $0xc4] sm:$0xff]  ;;  %v7705_v23 = vld [vmem:[%s15535_s24 + $0x1bc] sm:$0xff]  ;;  %v7675_v36 = vld [vmem:[%s15535_s24 + $0xcc] sm:$0xff] }
 0x2f0   : > { %12709 = vmatprep.mubr.msk.f32.mxu1 %vm382_vm0, %v11133_v34  ;;  %12662 = vmatmul.mubr.msk.f32.gmra.mrb[6].mxu0 %vm382_vm0, %v11133_v34  ;;  %v11223_v29 = vld [vmem:[%s18703_s1 + $0x2e8] sm:$0xff]  ;;  %v7689_v32 = vld [vmem:[%s15535_s24 + $0x13c] sm:$0xff] }
 0x2f1   : > { %12710 = vmatmul.mubr.msk.f32.gmra.mrb[6].mxu1 %vm382_vm0, %v11133_v34  ;;  %12663 = vmatprep.mubr.msk.f32.mxu0 %vm382_vm0, %v11134_v41  ;;  %v14342_v34 = vpack.c.bf16 %v7085_v31, %v7084_v30  ;;  %v7657_v30 = vld [vmem:[%s15535_s24 + $0x3c] sm:$0xff]  ;;  %v7658_v31 = vld [vmem:[%s15535_s24 + $0x44] sm:$0xff] }
 0x2f2   : > { %12711 = vmatprep.mubr.msk.f32.mxu1 %vm382_vm0, %v11134_v41  ;;  %v7690_v35 = vld [vmem:[%s15535_s24 + $0x144] sm:$0xff] }
 0x2f4   : > { %12664 = vmatmul.mubr.msk.f32.gmra.mrb[8].mxu0 %vm382_vm0, %v11134_v41 }
 0x2f5   : > { %14272 = vmatpush3.bf16.xpose.msk.msra.mxu0 %vm15539_vm1, %v14270_v47  ;;  %12712 = vmatmul.mubr.msk.f32.gmra.mrb[8].mxu1 %vm382_vm0, %v11134_v41  ;;  %v7055_v41 = vld [vmem:[%s15535_s24 + $0x83] sm:$0xff]  ;;  %v7700_v47 = vld [vmem:[%s15535_s24 + $0x194] sm:$0xff] }
 0x2f6   : > { %14320 = vmatpush3.bf16.xpose.msk.msra.mxu1 %vm15539_vm1, %v14318_v48  ;;  %14275 = vmatprep.subr.msk.bf16.mxu0 %vm15539_vm1, %v14273_v49  ;;  %v14300_v48 = vpack.c.bf16 %v7055_v41, %v7054_v40  ;;  %v14348_v49 = vpack.c.bf16 %v7087_v43, %v7086_v42  ;;  %v14420_v40 = vpack.c.bf16 %v7690_v35, %v7689_v32  ;;  %v11225_v43 = vld [vmem:[%s18703_s1 + $0x2f8] sm:$0xff]  ;;  %v8294_v32 = vld [vmem:[%s15535_s24 + $0x10d] sm:$0xff] }
 0x2f7   : > { %14323 = vmatprep.subr.msk.bf16.mxu1 %vm15539_vm1, %v14321_v50  ;;  %12665 = vmatprep.mubr.msk.f32.mxu0 %vm382_vm0, %v11135_v51  ;;  %v14351_v50 = vpack.c.bf16 %v7668_v45, %v7667_v44  ;;  %v7659_v44 = vld [vmem:[%s15535_s24 + $0x4c] sm:$0xff]  ;;  %v7660_v45 = vld [vmem:[%s15535_s24 + $0x54] sm:$0xff]  ;;  %v8280_v35 = vld [vmem:[%s15535_s24 + $0x9d] sm:$0xff] }
 0x2f8   : > { %12713 = vmatprep.mubr.msk.f32.mxu1 %vm382_vm0, %v11135_v51  ;;  %12666 = vmatmul.mubr.msk.f32.gmra.mrb[10].mxu0 %vm382_vm0, %v11135_v51  ;;  %v14378_v53 = vpack.c.bf16 %v7660_v45, %v7659_v44  ;;  %v8265_v44 = vld [vmem:[%s15535_s24 + $0x25] sm:$0xff]  ;;  %v8296_v45 = vld [vmem:[%s15535_s24 + $0x11d] sm:$0xff] }
 0x2f9   : > { %12714 = vmatmul.mubr.msk.f32.gmra.mrb[10].mxu1 %vm382_vm0, %v11135_v51  ;;  %12667 = vmatprep.mubr.msk.f32.mxu0 %vm382_vm0, %v11136_v55  ;;  %v14399_v51 = vpack.c.bf16 %v7700_v47, %v7699_v46  ;;  %v7691_v46 = vld [vmem:[%s15535_s24 + $0x14c] sm:$0xff]  ;;  %v17886_v47 = vld [vmem:[%s18703_s1 + $0x300] sm:$0xff] }
 0x2fa   : > { %12715 = vmatprep.mubr.msk.f32.mxu1 %vm382_vm0, %v11136_v55 }
 0x2fc   : > { %12668 = vmatmul.mubr.msk.f32.gmra.mrb[12].mxu0 %vm382_vm0, %v11136_v55 }
 0x2fd   : > { %14278 = vmatpush3.bf16.xpose.msk.msra.mxu0 %vm15539_vm1, %v14276_v60  ;;  %12716 = vmatmul.mubr.msk.f32.gmra.mrb[12].mxu1 %vm382_vm0, %v11136_v55  ;;  %v7684_v55 = vld [vmem:[%s15535_s24 + $0x114] sm:$0xff] }
 0x2fe   : > { %14326 = vmatpush3.bf16.xpose.msk.msra.mxu1 %vm15539_vm1, %v14324_v61  ;;  %14281 = vmatprep.subr.msk.bf16.mxu0 %vm15539_vm1, %v14279_v62  ;;  %v14402_v60 = vpack.c.bf16 %v7684_v55, %v7683_v54  ;;  %v14357_v61 = vpack.c.bf16 %v7670_v57, %v7669_v56  ;;  %v14405_v62 = vpack.c.bf16 %v7702_v0, %v7701_v58  ;;  %v7661_v57 = vld [vmem:[%s15535_s24 + $0x5c] sm:$0xff]  ;;  %v7662_v58 = vld [vmem:[%s15535_s24 + $0x64] sm:$0xff] }
 0x2ff   : > { %14329 = vmatprep.subr.msk.bf16.mxu1 %vm15539_vm1, %v14327_v63  ;;  %12669 = vmatprep.mubr.msk.f32.mxu0 %vm382_vm0, %v11137_v2  ;;  %v11219_v63 = vld [vmem:[%s18703_s1 + $0x2c8] sm:$0xff]  ;;  %v7693_v0 = vld [vmem:[%s15535_s24 + $0x15c] sm:$0xff] }
 0x300   : > { %12717 = vmatprep.mubr.msk.f32.mxu1 %vm382_vm0, %v11137_v2  ;;  %12670 = vmatmul.mubr.msk.f32.gmra.mrb[14].mxu0 %vm382_vm0, %v11137_v2 }
 0x301   : > { %12718 = vmatmul.mubr.msk.f32.gmra.mrb[14].mxu1 %vm382_vm0, %v11137_v2  ;;  %12751 = vmatprep.mubr.msk.f32.mxu0 %vm382_vm0, %v17696_v6  ;;  %v7653_v2 = vld [vmem:[%s15535_s24 + $0x1c] sm:$0xff] }
 0x302   : > { %12799 = vmatprep.mubr.msk.f32.mxu1 %vm382_vm0, %v17696_v6  ;;  %v14360_v11 = vpack.c.bf16 %v7654_v3, %v7653_v2  ;;  %v14384_v2 = vpack.c.bf16 %v7662_v58, %v7661_v57  ;;  %v8266_v57 = vld [vmem:[%s15535_s24 + $0x2d] sm:$0xff]  ;;  %v8267_v58 = vld [vmem:[%s15535_s24 + $0x35] sm:$0xff] }
 0x305   : > { %14284 = vmatpush3.bf16.xpose.msk.msra.mxu0 %vm15539_vm1, %v14282_v12 }
 0x306   : > { %14332 = vmatpush3.bf16.xpose.msk.msra.mxu1 %vm15539_vm1, %v14330_v13  ;;  %14287 = vmatprep.subr.msk.bf16.mxu0 %vm15539_vm1, %v14285_v14  ;;  %v14363_v13 = vpack.c.bf16 %v7672_v8, %v7671_v7  ;;  %v14411_v14 = vpack.c.bf16 %v7704_v10, %v7703_v9  ;;  %v7664_v7 = vld [vmem:[%s15535_s24 + $0x74] sm:$0xff]  ;;  %v7695_v8 = vld [vmem:[%s15535_s24 + $0x16c] sm:$0xff]  ;;  %v7681_v10 = vld [vmem:[%s15535_s24 + $0xfc] sm:$0xff] }
 0x307   : > { %14335 = vmatprep.subr.msk.bf16.mxu1 %vm15539_vm1, %v14333_v15  ;;  %v11221_v15 = vld [vmem:[%s18703_s1 + $0x2d8] sm:$0xff] }
 0x308   : > { %v7696_v9 = vld [vmem:[%s15535_s24 + $0x174] sm:$0xff] }
 0x30d   : > { %14290 = vmatpush3.bf16.xpose.msk.msra.mxu0 %vm15539_vm1, %v14288_v24  ;;  %v7706_v24 = vld [vmem:[%s15535_s24 + $0x1c4] sm:$0xff] }
 0x30e   : > { %14338 = vmatpush3.bf16.xpose.msk.msra.mxu1 %vm15539_vm1, %v14336_v25  ;;  %14293 = vmatprep.subr.msk.bf16.mxu0 %vm15539_vm1, %v14291_v26  ;;  %v14366_v25 = vpack.c.bf16 %v7656_v17, %v7655_v16  ;;  %v14414_v26 = vpack.c.bf16 %v7688_v20, %v7687_v18  ;;  %v14417_v28 = vpack.c.bf16 %v7706_v24, %v7705_v23  ;;  %v7665_v18 = vld [vmem:[%s15535_s24 + $0x7c] sm:$0xff]  ;;  %v8310_v24 = vld [vmem:[%s15535_s24 + $0x18d] sm:$0xff] }
 0x30f   : > { %14341 = vmatprep.subr.msk.bf16.mxu1 %vm15539_vm1, %v14339_v27  ;;  %v14369_v27 = vpack.c.bf16 %v7674_v22, %v7673_v21  ;;  %v7697_v20 = vld [vmem:[%s15535_s24 + $0x17c] sm:$0xff]  ;;  %v7698_v21 = vld [vmem:[%s15535_s24 + $0x184] sm:$0xff]  ;;  %v8278_v22 = vld [vmem:[%s15535_s24 + $0x8d] sm:$0xff] }
 0x310   : > { %v8279_v23 = vld [vmem:[%s15535_s24 + $0x95] sm:$0xff] }
 0x315   : > { %14296 = vmatpush3.bf16.xpose.msk.msra.mxu0 %vm15539_vm1, %v14294_v37  ;;  %v7676_v37 = vld [vmem:[%s15535_s24 + $0xd4] sm:$0xff] }
 0x316   : > { %14344 = vmatpush3.bf16.xpose.msk.msra.mxu1 %vm15539_vm1, %v14342_v34  ;;  %14299 = vmatprep.subr.msk.bf16.mxu0 %vm15539_vm1, %v14297_v38  ;;  %v7707_v34 = vld [vmem:[%s15535_s24 + $0x1cc] sm:$0xff]  ;;  %v7708_v38 = vld [vmem:[%s15535_s24 + $0x1d4] sm:$0xff]  ;;  %v14375_v41 = vpack.c.bf16 %v7676_v37, %v7675_v36  ;;  %v8312_v37 = vld [vmem:[%s15535_s24 + $0x19d] sm:$0xff] }
 0x317   : > { %14347 = vmatprep.subr.msk.bf16.mxu1 %vm15539_vm1, %v14345_v39  ;;  %v14372_v39 = vpack.c.bf16 %v7658_v31, %v7657_v30  ;;  %v14423_v42 = vpack.c.bf16 %v7708_v38, %v7707_v34  ;;  %v8262_v30 = vld [vmem:[%s15535_s24 + $0xd] sm:$0xff]  ;;  %v8263_v31 = vld [vmem:[%s15535_s24 + $0x15] sm:$0xff]  ;;  %v8281_v36 = vld [vmem:[%s15535_s24 + $0xa5] sm:$0xff] }
 0x318   : > { %v8313_v34 = vld [vmem:[%s15535_s24 + $0x1a5] sm:$0xff]  ;;  %v14450_v38 = vpack.c.bf16 %v8263_v31, %v8262_v30 }
 0x319   : > { %v8321_v30 = vld [vmem:[%s15535_s24 + $0x1e5] sm:$0xff] }
 0x31d   : > { %14302 = vmatpush3.bf16.xpose.msk.msra.mxu0 %vm15539_vm1, %v14300_v48  ;;  %v7692_v48 = vld [vmem:[%s15535_s24 + $0x154] sm:$0xff] }
 0x31e   : > { %14350 = vmatpush3.bf16.xpose.msk.msra.mxu1 %vm15539_vm1, %v14348_v49  ;;  %14353 = vmatprep.subr.msk.bf16.mxu0 %vm15539_vm1, %v14351_v50  ;;  %v7677_v49 = vld [vmem:[%s15535_s24 + $0xdc] sm:$0xff]  ;;  %v7678_v50 = vld [vmem:[%s15535_s24 + $0xe4] sm:$0xff]  ;;  %v14426_v54 = vpack.c.bf16 %v7692_v48, %v7691_v46  ;;  %v11308_v46 = vld [vmem:[%s18703_s1 + $0x310] sm:$0xff] }
 0x31f   : > { %14401 = vmatprep.subr.msk.bf16.mxu1 %vm15539_vm1, %v14399_v51  ;;  %v7709_v51 = vld [vmem:[%s15535_s24 + $0x1dc] sm:$0xff]  ;;  %v14381_v55 = vpack.c.bf16 %v7678_v50, %v7677_v49  ;;  %v8282_v48 = vld [vmem:[%s15535_s24 + $0xad] sm:$0xff] }
 0x320   : > { %v14429_v56 = vpack.c.bf16 %v7710_v52, %v7709_v51  ;;  %v8283_v49 = vld [vmem:[%s15535_s24 + $0xb5] sm:$0xff]  ;;  %v8314_v50 = vld [vmem:[%s15535_s24 + $0x1ad] sm:$0xff] }
 0x321   : > { %v8315_v51 = vld [vmem:[%s15535_s24 + $0x1b5] sm:$0xff] }
 0x324   : > { %12752 = vmatmul.mubr.msk.f32.vlgmr.msra.gmra.mrb[0].mxu0 %vm382_vm0, %v17696_v6 }
 0x325   : > { %12800 = vmatmul.mubr.msk.f32.vlgmr.msra.gmra.mrb[0].mxu1 %vm382_vm0, %v17696_v6  ;;  %14356 = vmatpush3.bf16.xpose.msk.msra.mxu0 %vm15539_vm1, %v14354_v59  ;;  %v7686_v6 = vld [vmem:[%s15535_s24 + $0x124] sm:$0xff] }
 0x326   : > { %14404 = vmatpush3.bf16.xpose.msk.msra.mxu1 %vm15539_vm1, %v14402_v60  ;;  %14359 = vmatprep.subr.msk.bf16.mxu0 %vm15539_vm1, %v14357_v61  ;;  %v14408_v12 = vpack.c.bf16 %v7686_v6, %v7685_v4  ;;  %v7694_v59 = vld [vmem:[%s15535_s24 + $0x164] sm:$0xff]  ;;  %v7679_v60 = vld [vmem:[%s15535_s24 + $0xec] sm:$0xff]  ;;  %v7680_v61 = vld [vmem:[%s15535_s24 + $0xf4] sm:$0xff] }
 0x327   : > { %14407 = vmatprep.subr.msk.bf16.mxu1 %vm15539_vm1, %v14405_v62  ;;  %12753 = vmatprep.mubr.msk.f32.mxu0 %vm382_vm0, %v11219_v63  ;;  %v7711_v62 = vld [vmem:[%s15535_s24 + $0x1ec] sm:$0xff]  ;;  %v14432_v3 = vpack.c.bf16 %v7694_v59, %v7693_v0  ;;  %v14387_v4 = vpack.c.bf16 %v7680_v61, %v7679_v60  ;;  %v11310_v59 = vld [vmem:[%s18703_s1 + $0x320] sm:$0xff]  ;;  %v8299_v60 = vld [vmem:[%s15535_s24 + $0x135] sm:$0xff] }
 0x328   : > { %12801 = vmatprep.mubr.msk.f32.mxu1 %vm382_vm0, %v11219_v63  ;;  %12754 = vmatmul.mubr.msk.f32.gmra.mrb[2].mxu0 %vm382_vm0, %v11219_v63  ;;  %v7663_v6 = vld [vmem:[%s15535_s24 + $0x6c] sm:$0xff]  ;;  %v8284_v61 = vld [vmem:[%s15535_s24 + $0xbd] sm:$0xff] }
 0x329   : > { %12802 = vmatmul.mubr.msk.f32.gmra.mrb[2].mxu1 %vm382_vm0, %v11219_v63  ;;  %12755 = vmatprep.mubr.msk.f32.mxu0 %vm382_vm0, %v11220_v5  ;;  %v7712_v63 = vld [vmem:[%s15535_s24 + $0x1f4] sm:$0xff] }
 0x32a   : > { %12803 = vmatprep.mubr.msk.f32.mxu1 %vm382_vm0, %v11220_v5  ;;  %v8298_v0 = vld [vmem:[%s15535_s24 + $0x12d] sm:$0xff] }
 0x32c   : > { %12756 = vmatmul.mubr.msk.f32.gmra.mrb[4].mxu0 %vm382_vm0, %v11220_v5 }
 0x32d   : > { %14362 = vmatpush3.bf16.xpose.msk.msra.mxu0 %vm15539_vm1, %v14360_v11  ;;  %12804 = vmatmul.mubr.msk.f32.gmra.mrb[4].mxu1 %vm382_vm0, %v11220_v5  ;;  %v14435_v5 = vpack.c.bf16 %v7712_v63, %v7711_v62  ;;  %v7682_v11 = vld [vmem:[%s15535_s24 + $0x104] sm:$0xff] }
 0x32e   : > { %14410 = vmatpush3.bf16.xpose.msk.msra.mxu1 %vm15539_vm1, %v14408_v12  ;;  %14365 = vmatprep.subr.msk.bf16.mxu0 %vm15539_vm1, %v14363_v13  ;;  %v7713_v12 = vld [vmem:[%s15535_s24 + $0x1fc] sm:$0xff]  ;;  %v7714_v13 = vld [vmem:[%s15535_s24 + $0x204] sm:$0xff]  ;;  %v14393_v16 = vpack.c.bf16 %v7682_v11, %v7681_v10  ;;  %v11312_v11 = vld [vmem:[%s18703_s1 + $0x330] sm:$0xff] }
 0x32f   : > { %14413 = vmatprep.subr.msk.bf16.mxu1 %vm15539_vm1, %v14411_v14  ;;  %12757 = vmatprep.mubr.msk.f32.mxu0 %vm382_vm0, %v11221_v15  ;;  %v14390_v14 = vpack.c.bf16 %v7664_v7, %v7663_v6  ;;  %v14441_v17 = vpack.c.bf16 %v7714_v13, %v7713_v12  ;;  %v8285_v62 = vld [vmem:[%s15535_s24 + $0xc5] sm:$0xff]  ;;  %v8316_v63 = vld [vmem:[%s15535_s24 + $0x1bd] sm:$0xff]  ;;  %v8286_v13 = vld [vmem:[%s15535_s24 + $0xcd] sm:$0xff] }
 0x330   : > { %12805 = vmatprep.mubr.msk.f32.mxu1 %vm382_vm0, %v11221_v15  ;;  %12758 = vmatmul.mubr.msk.f32.gmra.mrb[6].mxu0 %vm382_vm0, %v11221_v15  ;;  %v11311_v7 = vld [vmem:[%s18703_s1 + $0x328] sm:$0xff]  ;;  %v8300_v10 = vld [vmem:[%s15535_s24 + $0x13d] sm:$0xff] }
 0x331   : > { %12806 = vmatmul.mubr.msk.f32.gmra.mrb[6].mxu1 %vm382_vm0, %v11221_v15  ;;  %12759 = vmatprep.mubr.msk.f32.mxu0 %vm382_vm0, %v11222_v19  ;;  %v14438_v15 = vpack.c.bf16 %v7696_v9, %v7695_v8  ;;  %v8268_v8 = vld [vmem:[%s15535_s24 + $0x3d] sm:$0xff]  ;;  %v8269_v9 = vld [vmem:[%s15535_s24 + $0x45] sm:$0xff] }
 0x332   : > { %12807 = vmatprep.mubr.msk.f32.mxu1 %vm382_vm0, %v11222_v19  ;;  %v8301_v12 = vld [vmem:[%s15535_s24 + $0x145] sm:$0xff] }
 0x334   : > { %12760 = vmatmul.mubr.msk.f32.gmra.mrb[8].mxu0 %vm382_vm0, %v11222_v19 }
 0x335   : > { %14368 = vmatpush3.bf16.xpose.msk.msra.mxu0 %vm15539_vm1, %v14366_v25  ;;  %12808 = vmatmul.mubr.msk.f32.gmra.mrb[8].mxu1 %vm382_vm0, %v11222_v19  ;;  %v7666_v19 = vld [vmem:[%s15535_s24 + $0x84] sm:$0xff]  ;;  %v8311_v25 = vld [vmem:[%s15535_s24 + $0x195] sm:$0xff] }
 0x336   : > { %14416 = vmatpush3.bf16.xpose.msk.msra.mxu1 %vm15539_vm1, %v14414_v26  ;;  %14371 = vmatprep.subr.msk.bf16.mxu0 %vm15539_vm1, %v14369_v27  ;;  %v14396_v26 = vpack.c.bf16 %v7666_v19, %v7665_v18  ;;  %v14444_v27 = vpack.c.bf16 %v7698_v21, %v7697_v20  ;;  %v14516_v18 = vpack.c.bf16 %v8301_v12, %v8300_v10  ;;  %v11313_v21 = vld [vmem:[%s18703_s1 + $0x338] sm:$0xff]  ;;  %v8905_v10 = vld [vmem:[%s15535_s24 + $0x10e] sm:$0xff] }
 0x337   : > { %14419 = vmatprep.subr.msk.bf16.mxu1 %vm15539_vm1, %v14417_v28  ;;  %12761 = vmatprep.mubr.msk.f32.mxu0 %vm382_vm0, %v11223_v29  ;;  %v14447_v28 = vpack.c.bf16 %v8279_v23, %v8278_v22  ;;  %v8270_v22 = vld [vmem:[%s15535_s24 + $0x4d] sm:$0xff]  ;;  %v8271_v23 = vld [vmem:[%s15535_s24 + $0x55] sm:$0xff]  ;;  %v8891_v12 = vld [vmem:[%s15535_s24 + $0x9e] sm:$0xff] }
 0x338   : > { %12809 = vmatprep.mubr.msk.f32.mxu1 %vm382_vm0, %v11223_v29  ;;  %12762 = vmatmul.mubr.msk.f32.gmra.mrb[10].mxu0 %vm382_vm0, %v11223_v29  ;;  %v14474_v31 = vpack.c.bf16 %v8271_v23, %v8270_v22  ;;  %v8876_v22 = vld [vmem:[%s15535_s24 + $0x26] sm:$0xff]  ;;  %v8907_v23 = vld [vmem:[%s15535_s24 + $0x11e] sm:$0xff] }
 0x339   : > { %12810 = vmatmul.mubr.msk.f32.gmra.mrb[10].mxu1 %vm382_vm0, %v11223_v29  ;;  %12763 = vmatprep.mubr.msk.f32.mxu0 %vm382_vm0, %v11224_v33  ;;  %v14495_v29 = vpack.c.bf16 %v8311_v25, %v8310_v24  ;;  %v8302_v24 = vld [vmem:[%s15535_s24 + $0x14d] sm:$0xff]  ;;  %v18076_v25 = vld [vmem:[%s18703_s1 + $0x340] sm:$0xff] }
 0x33a   : > { %12811 = vmatprep.mubr.msk.f32.mxu1 %vm382_vm0, %v11224_v33 }
 0x33c   : > { %12764 = vmatmul.mubr.msk.f32.gmra.mrb[12].mxu0 %vm382_vm0, %v11224_v33 }
 0x33d   : > { %14374 = vmatpush3.bf16.xpose.msk.msra.mxu0 %vm15539_vm1, %v14372_v39  ;;  %12812 = vmatmul.mubr.msk.f32.gmra.mrb[12].mxu1 %vm382_vm0, %v11224_v33  ;;  %v8295_v33 = vld [vmem:[%s15535_s24 + $0x115] sm:$0xff] }
 0x33e   : > { %14422 = vmatpush3.bf16.xpose.msk.msra.mxu1 %vm15539_vm1, %v14420_v40  ;;  %14377 = vmatprep.subr.msk.bf16.mxu0 %vm15539_vm1, %v14375_v41  ;;  %v14498_v39 = vpack.c.bf16 %v8295_v33, %v8294_v32  ;;  %v14453_v40 = vpack.c.bf16 %v8281_v36, %v8280_v35  ;;  %v14501_v41 = vpack.c.bf16 %v8313_v34, %v8312_v37  ;;  %v8272_v36 = vld [vmem:[%s15535_s24 + $0x5d] sm:$0xff]  ;;  %v8273_v37 = vld [vmem:[%s15535_s24 + $0x65] sm:$0xff] }
 0x33f   : > { %14425 = vmatprep.subr.msk.bf16.mxu1 %vm15539_vm1, %v14423_v42  ;;  %12765 = vmatprep.mubr.msk.f32.mxu0 %vm382_vm0, %v11225_v43  ;;  %v11307_v42 = vld [vmem:[%s18703_s1 + $0x308] sm:$0xff]  ;;  %v8304_v34 = vld [vmem:[%s15535_s24 + $0x15d] sm:$0xff] }
 0x340   : > { %12813 = vmatprep.mubr.msk.f32.mxu1 %vm382_vm0, %v11225_v43  ;;  %12766 = vmatmul.mubr.msk.f32.gmra.mrb[14].mxu0 %vm382_vm0, %v11225_v43 }
 0x341   : > { %12814 = vmatmul.mubr.msk.f32.gmra.mrb[14].mxu1 %vm382_vm0, %v11225_v43  ;;  %12847 = vmatprep.mubr.msk.f32.mxu0 %vm382_vm0, %v17886_v47  ;;  %v8264_v43 = vld [vmem:[%s15535_s24 + $0x1d] sm:$0xff] }
 0x342   : > { %12895 = vmatprep.mubr.msk.f32.mxu1 %vm382_vm0, %v17886_v47  ;;  %v14456_v52 = vpack.c.bf16 %v8265_v44, %v8264_v43  ;;  %v14480_v43 = vpack.c.bf16 %v8273_v37, %v8272_v36  ;;  %v8877_v36 = vld [vmem:[%s15535_s24 + $0x2e] sm:$0xff]  ;;  %v8878_v37 = vld [vmem:[%s15535_s24 + $0x36] sm:$0xff] }
 0x345   : > { %14380 = vmatpush3.bf16.xpose.msk.msra.mxu0 %vm15539_vm1, %v14378_v53 }
 0x346   : > { %14428 = vmatpush3.bf16.xpose.msk.msra.mxu1 %vm15539_vm1, %v14426_v54  ;;  %14383 = vmatprep.subr.msk.bf16.mxu0 %vm15539_vm1, %v14381_v55  ;;  %v14459_v54 = vpack.c.bf16 %v8283_v49, %v8282_v48  ;;  %v14507_v55 = vpack.c.bf16 %v8315_v51, %v8314_v50  ;;  %v8275_v48 = vld [vmem:[%s15535_s24 + $0x75] sm:$0xff]  ;;  %v8306_v49 = vld [vmem:[%s15535_s24 + $0x16d] sm:$0xff]  ;;  %v8292_v51 = vld [vmem:[%s15535_s24 + $0xfd] sm:$0xff] }
 0x347   : > { %14431 = vmatprep.subr.msk.bf16.mxu1 %vm15539_vm1, %v14429_v56  ;;  %v11309_v56 = vld [vmem:[%s18703_s1 + $0x318] sm:$0xff] }
 0x348   : > { %v8307_v50 = vld [vmem:[%s15535_s24 + $0x175] sm:$0xff] }
 0x34d   : > { %14386 = vmatpush3.bf16.xpose.msk.msra.mxu0 %vm15539_vm1, %v14384_v2  ;;  %v8317_v2 = vld [vmem:[%s15535_s24 + $0x1c5] sm:$0xff] }
 0x34e   : > { %14434 = vmatpush3.bf16.xpose.msk.msra.mxu1 %vm15539_vm1, %v14432_v3  ;;  %14389 = vmatprep.subr.msk.bf16.mxu0 %vm15539_vm1, %v14387_v4  ;;  %v14462_v3 = vpack.c.bf16 %v8267_v58, %v8266_v57  ;;  %v14510_v4 = vpack.c.bf16 %v8299_v60, %v8298_v0  ;;  %v14513_v6 = vpack.c.bf16 %v8317_v2, %v8316_v63  ;;  %v8276_v0 = vld [vmem:[%s15535_s24 + $0x7d] sm:$0xff]  ;;  %v8921_v2 = vld [vmem:[%s15535_s24 + $0x18e] sm:$0xff] }
 0x34f   : > { %14437 = vmatprep.subr.msk.bf16.mxu1 %vm15539_vm1, %v14435_v5  ;;  %v14465_v5 = vpack.c.bf16 %v8285_v62, %v8284_v61  ;;  %v8308_v60 = vld [vmem:[%s15535_s24 + $0x17d] sm:$0xff]  ;;  %v8309_v61 = vld [vmem:[%s15535_s24 + $0x185] sm:$0xff]  ;;  %v8889_v62 = vld [vmem:[%s15535_s24 + $0x8e] sm:$0xff] }
 0x350   : > { %v8890_v63 = vld [vmem:[%s15535_s24 + $0x96] sm:$0xff] }
 0x355   : > { %14392 = vmatpush3.bf16.xpose.msk.msra.mxu0 %vm15539_vm1, %v14390_v14  ;;  %v8287_v14 = vld [vmem:[%s15535_s24 + $0xd5] sm:$0xff] }
 0x356   : > { %14440 = vmatpush3.bf16.xpose.msk.msra.mxu1 %vm15539_vm1, %v14438_v15  ;;  %14395 = vmatprep.subr.msk.bf16.mxu0 %vm15539_vm1, %v14393_v16  ;;  %v8318_v15 = vld [vmem:[%s15535_s24 + $0x1cd] sm:$0xff]  ;;  %v8319_v16 = vld [vmem:[%s15535_s24 + $0x1d5] sm:$0xff]  ;;  %v14471_v19 = vpack.c.bf16 %v8287_v14, %v8286_v13  ;;  %v8923_v14 = vld [vmem:[%s15535_s24 + $0x19e] sm:$0xff] }
 0x357   : > { %14443 = vmatprep.subr.msk.bf16.mxu1 %vm15539_vm1, %v14441_v17  ;;  %v14468_v17 = vpack.c.bf16 %v8269_v9, %v8268_v8  ;;  %v14519_v20 = vpack.c.bf16 %v8319_v16, %v8318_v15  ;;  %v8873_v8 = vld [vmem:[%s15535_s24 + $0xe] sm:$0xff]  ;;  %v8874_v9 = vld [vmem:[%s15535_s24 + $0x16] sm:$0xff]  ;;  %v8892_v13 = vld [vmem:[%s15535_s24 + $0xa6] sm:$0xff] }
 0x358   : > { %v8924_v15 = vld [vmem:[%s15535_s24 + $0x1a6] sm:$0xff]  ;;  %v14546_v16 = vpack.c.bf16 %v8874_v9, %v8873_v8 }
 0x359   : > { %v8932_v8 = vld [vmem:[%s15535_s24 + $0x1e6] sm:$0xff] }
 0x35d   : > { %14398 = vmatpush3.bf16.xpose.msk.msra.mxu0 %vm15539_vm1, %v14396_v26  ;;  %v8303_v26 = vld [vmem:[%s15535_s24 + $0x155] sm:$0xff] }
 0x35e   : > { %14446 = vmatpush3.bf16.xpose.msk.msra.mxu1 %vm15539_vm1, %v14444_v27  ;;  %14449 = vmatprep.subr.msk.bf16.mxu0 %vm15539_vm1, %v14447_v28  ;;  %v8288_v27 = vld [vmem:[%s15535_s24 + $0xdd] sm:$0xff]  ;;  %v8289_v28 = vld [vmem:[%s15535_s24 + $0xe5] sm:$0xff]  ;;  %v14522_v32 = vpack.c.bf16 %v8303_v26, %v8302_v24  ;;  %v11396_v24 = vld [vmem:[%s18703_s1 + $0x350] sm:$0xff] }
 0x35f   : > { %14497 = vmatprep.subr.msk.bf16.mxu1 %vm15539_vm1, %v14495_v29  ;;  %v8320_v29 = vld [vmem:[%s15535_s24 + $0x1dd] sm:$0xff]  ;;  %v14477_v33 = vpack.c.bf16 %v8289_v28, %v8288_v27  ;;  %v8893_v26 = vld [vmem:[%s15535_s24 + $0xae] sm:$0xff] }
 0x360   : > { %v14525_v35 = vpack.c.bf16 %v8321_v30, %v8320_v29  ;;  %v8894_v27 = vld [vmem:[%s15535_s24 + $0xb6] sm:$0xff]  ;;  %v8925_v28 = vld [vmem:[%s15535_s24 + $0x1ae] sm:$0xff] }
 0x361   : > { %v8926_v29 = vld [vmem:[%s15535_s24 + $0x1b6] sm:$0xff] }
 0x364   : > { %12848 = vmatmul.mubr.msk.f32.vlgmr.msra.gmra.mrb[0].mxu0 %vm382_vm0, %v17886_v47 }
 0x365   : > { %12896 = vmatmul.mubr.msk.f32.vlgmr.msra.gmra.mrb[0].mxu1 %vm382_vm0, %v17886_v47  ;;  %14452 = vmatpush3.bf16.xpose.msk.msra.mxu0 %vm15539_vm1, %v14450_v38  ;;  %v8297_v47 = vld [vmem:[%s15535_s24 + $0x125] sm:$0xff] }
 0x366   : > { %14500 = vmatpush3.bf16.xpose.msk.msra.mxu1 %vm15539_vm1, %v14498_v39  ;;  %14455 = vmatprep.subr.msk.bf16.mxu0 %vm15539_vm1, %v14453_v40  ;;  %v14504_v53 = vpack.c.bf16 %v8297_v47, %v8296_v45  ;;  %v8305_v38 = vld [vmem:[%s15535_s24 + $0x165] sm:$0xff]  ;;  %v8290_v39 = vld [vmem:[%s15535_s24 + $0xed] sm:$0xff]  ;;  %v8291_v40 = vld [vmem:[%s15535_s24 + $0xf5] sm:$0xff] }
 0x367   : > { %14503 = vmatprep.subr.msk.bf16.mxu1 %vm15539_vm1, %v14501_v41  ;;  %12849 = vmatprep.mubr.msk.f32.mxu0 %vm382_vm0, %v11307_v42  ;;  %v8322_v41 = vld [vmem:[%s15535_s24 + $0x1ed] sm:$0xff]  ;;  %v14528_v44 = vpack.c.bf16 %v8305_v38, %v8304_v34  ;;  %v14483_v45 = vpack.c.bf16 %v8291_v40, %v8290_v39  ;;  %v11398_v38 = vld [vmem:[%s18703_s1 + $0x360] sm:$0xff]  ;;  %v8910_v39 = vld [vmem:[%s15535_s24 + $0x136] sm:$0xff] }
 0x368   : > { %12897 = vmatprep.mubr.msk.f32.mxu1 %vm382_vm0, %v11307_v42  ;;  %12850 = vmatmul.mubr.msk.f32.gmra.mrb[2].mxu0 %vm382_vm0, %v11307_v42  ;;  %v8274_v47 = vld [vmem:[%s15535_s24 + $0x6d] sm:$0xff]  ;;  %v8895_v40 = vld [vmem:[%s15535_s24 + $0xbe] sm:$0xff] }
 0x369   : > { %12898 = vmatmul.mubr.msk.f32.gmra.mrb[2].mxu1 %vm382_vm0, %v11307_v42  ;;  %12851 = vmatprep.mubr.msk.f32.mxu0 %vm382_vm0, %v11308_v46  ;;  %v8323_v42 = vld [vmem:[%s15535_s24 + $0x1f5] sm:$0xff] }
 0x36a   : > { %12899 = vmatprep.mubr.msk.f32.mxu1 %vm382_vm0, %v11308_v46  ;;  %v8909_v34 = vld [vmem:[%s15535_s24 + $0x12e] sm:$0xff] }
 0x36c   : > { %12852 = vmatmul.mubr.msk.f32.gmra.mrb[4].mxu0 %vm382_vm0, %v11308_v46 }
 0x36d   : > { %14458 = vmatpush3.bf16.xpose.msk.msra.mxu0 %vm15539_vm1, %v14456_v52  ;;  %12900 = vmatmul.mubr.msk.f32.gmra.mrb[4].mxu1 %vm382_vm0, %v11308_v46  ;;  %v14531_v46 = vpack.c.bf16 %v8323_v42, %v8322_v41  ;;  %v8293_v52 = vld [vmem:[%s15535_s24 + $0x105] sm:$0xff] }
 0x36e   : > { %14506 = vmatpush3.bf16.xpose.msk.msra.mxu1 %vm15539_vm1, %v14504_v53  ;;  %14461 = vmatprep.subr.msk.bf16.mxu0 %vm15539_vm1, %v14459_v54  ;;  %v8324_v53 = vld [vmem:[%s15535_s24 + $0x1fd] sm:$0xff]  ;;  %v8325_v54 = vld [vmem:[%s15535_s24 + $0x205] sm:$0xff]  ;;  %v14489_v57 = vpack.c.bf16 %v8293_v52, %v8292_v51  ;;  %v11400_v52 = vld [vmem:[%s18703_s1 + $0x370] sm:$0xff] }
 0x36f   : > { %14509 = vmatprep.subr.msk.bf16.mxu1 %vm15539_vm1, %v14507_v55  ;;  %12853 = vmatprep.mubr.msk.f32.mxu0 %vm382_vm0, %v11309_v56  ;;  %v14486_v55 = vpack.c.bf16 %v8275_v48, %v8274_v47  ;;  %v14537_v58 = vpack.c.bf16 %v8325_v54, %v8324_v53  ;;  %v8896_v41 = vld [vmem:[%s15535_s24 + $0xc6] sm:$0xff]  ;;  %v8927_v42 = vld [vmem:[%s15535_s24 + $0x1be] sm:$0xff]  ;;  %v8897_v54 = vld [vmem:[%s15535_s24 + $0xce] sm:$0xff] }
 0x370   : > { %12901 = vmatprep.mubr.msk.f32.mxu1 %vm382_vm0, %v11309_v56  ;;  %12854 = vmatmul.mubr.msk.f32.gmra.mrb[6].mxu0 %vm382_vm0, %v11309_v56  ;;  %v11399_v48 = vld [vmem:[%s18703_s1 + $0x368] sm:$0xff]  ;;  %v8911_v51 = vld [vmem:[%s15535_s24 + $0x13e] sm:$0xff] }
 0x371   : > { %12902 = vmatmul.mubr.msk.f32.gmra.mrb[6].mxu1 %vm382_vm0, %v11309_v56  ;;  %12855 = vmatprep.mubr.msk.f32.mxu0 %vm382_vm0, %v11310_v59  ;;  %v14534_v56 = vpack.c.bf16 %v8307_v50, %v8306_v49  ;;  %v8879_v49 = vld [vmem:[%s15535_s24 + $0x3e] sm:$0xff]  ;;  %v8880_v50 = vld [vmem:[%s15535_s24 + $0x46] sm:$0xff] }
 0x372   : > { %12903 = vmatprep.mubr.msk.f32.mxu1 %vm382_vm0, %v11310_v59  ;;  %v8912_v53 = vld [vmem:[%s15535_s24 + $0x146] sm:$0xff] }
 0x374   : > { %12856 = vmatmul.mubr.msk.f32.gmra.mrb[8].mxu0 %vm382_vm0, %v11310_v59 }
 0x375   : > { %14464 = vmatpush3.bf16.xpose.msk.msra.mxu0 %vm15539_vm1, %v14462_v3  ;;  %12904 = vmatmul.mubr.msk.f32.gmra.mrb[8].mxu1 %vm382_vm0, %v11310_v59  ;;  %v8277_v59 = vld [vmem:[%s15535_s24 + $0x85] sm:$0xff]  ;;  %v8922_v3 = vld [vmem:[%s15535_s24 + $0x196] sm:$0xff] }
 0x376   : > { %14512 = vmatpush3.bf16.xpose.msk.msra.mxu1 %vm15539_vm1, %v14510_v4  ;;  %14467 = vmatprep.subr.msk.bf16.mxu0 %vm15539_vm1, %v14465_v5  ;;  %v14492_v4 = vpack.c.bf16 %v8277_v59, %v8276_v0  ;;  %v14540_v5 = vpack.c.bf16 %v8309_v61, %v8308_v60  ;;  %v14612_v0 = vpack.c.bf16 %v8912_v53, %v8911_v51  ;;  %v11401_v61 = vld [vmem:[%s18703_s1 + $0x378] sm:$0xff] }
 0x377   : > { %14515 = vmatprep.subr.msk.bf16.mxu1 %vm15539_vm1, %v14513_v6  ;;  %12857 = vmatprep.mubr.msk.f32.mxu0 %vm382_vm0, %v11311_v7  ;;  %v14543_v6 = vpack.c.bf16 %v8890_v63, %v8889_v62  ;;  %v8881_v62 = vld [vmem:[%s15535_s24 + $0x4e] sm:$0xff]  ;;  %v8882_v63 = vld [vmem:[%s15535_s24 + $0x56] sm:$0xff] }
 0x378   : > { %12905 = vmatprep.mubr.msk.f32.mxu1 %vm382_vm0, %v11311_v7  ;;  %12858 = vmatmul.mubr.msk.f32.gmra.mrb[10].mxu0 %vm382_vm0, %v11311_v7  ;;  %v14570_v9 = vpack.c.bf16 %v8882_v63, %v8881_v62  ;;  %v9501_v51 = vld [vmem:[%s15535_s24 + $0x97] sm:$0xff]  ;;  %v9503_v62 = vld [vmem:[%s15535_s24 + $0xa7] sm:$0xff]  ;;  %v9534_v63 = vld [vmem:[%s15535_s24 + $0x19f] sm:$0xff] }
 0x379   : > { %12906 = vmatmul.mubr.msk.f32.gmra.mrb[10].mxu1 %vm382_vm0, %v11311_v7  ;;  %12859 = vmatprep.mubr.msk.f32.mxu0 %vm382_vm0, %v11312_v11  ;;  %v14591_v7 = vpack.c.bf16 %v8922_v3, %v8921_v2  ;;  %v8913_v2 = vld [vmem:[%s15535_s24 + $0x14e] sm:$0xff]  ;;  %v18266_v3 = vld [vmem:[%s18703_s1 + $0x380] sm:$0xff]  ;;  %v9533_v53 = vld [vmem:[%s15535_s24 + $0x197] sm:$0xff] }
 0x37a   : > { %12907 = vmatprep.mubr.msk.f32.mxu1 %vm382_vm0, %v11312_v11 }
 0x37c   : > { %12860 = vmatmul.mubr.msk.f32.gmra.mrb[12].mxu0 %vm382_vm0, %v11312_v11 }
 0x37d   : > { %14470 = vmatpush3.bf16.xpose.msk.msra.mxu0 %vm15539_vm1, %v14468_v17  ;;  %12908 = vmatmul.mubr.msk.f32.gmra.mrb[12].mxu1 %vm382_vm0, %v11312_v11  ;;  %v8906_v11 = vld [vmem:[%s15535_s24 + $0x116] sm:$0xff] }
 0x37e   : > { %14518 = vmatpush3.bf16.xpose.msk.msra.mxu1 %vm15539_vm1, %v14516_v18  ;;  %14473 = vmatprep.subr.msk.bf16.mxu0 %vm15539_vm1, %v14471_v19  ;;  %v14594_v17 = vpack.c.bf16 %v8906_v11, %v8905_v10  ;;  %v14549_v18 = vpack.c.bf16 %v8892_v13, %v8891_v12  ;;  %v14597_v19 = vpack.c.bf16 %v8924_v15, %v8923_v14  ;;  %v198_v10 = vld [vmem:[%s18704_s2] sm:$0xff]  ;;  %v200_v11 = vld [vmem:[%s18704_s2 + $0x10] sm:$0xff]  ;;  %v15423_v14 = vmov 0  }
 0x37f   : > { %14521 = vmatprep.subr.msk.bf16.mxu1 %vm15539_vm1, %v14519_v20  ;;  %12861 = vmatprep.mubr.msk.f32.mxu0 %vm382_vm0, %v11313_v21  ;;  %v11395_v20 = vld [vmem:[%s18703_s1 + $0x348] sm:$0xff] }
 0x380   : > { %12909 = vmatprep.mubr.msk.f32.mxu1 %vm382_vm0, %v11313_v21  ;;  %12862 = vmatmul.mubr.msk.f32.gmra.mrb[14].mxu0 %vm382_vm0, %v11313_v21 }
 0x381   : > { %12910 = vmatmul.mubr.msk.f32.gmra.mrb[14].mxu1 %vm382_vm0, %v11313_v21  ;;  %12943 = vmatprep.mubr.msk.f32.mxu0 %vm382_vm0, %v18076_v25  ;;  %v8875_v21 = vld [vmem:[%s15535_s24 + $0x1e] sm:$0xff] }
 0x382   : > { %12991 = vmatprep.mubr.msk.f32.mxu1 %vm382_vm0, %v18076_v25  ;;  %v14552_v30 = vpack.c.bf16 %v8876_v22, %v8875_v21  ;;  %15325 = vset.pattern.permute.xlu0 %v15423_v14  ;;  %v8916_v21 = vld [vmem:[%s15535_s24 + $0x166] sm:$0xff]  ;;  %v8901_v22 = vld [vmem:[%s15535_s24 + $0xee] sm:$0xff] }
 0x383   : > { %208 = vperm.xlu0 %15325, %v198_v10   ;;  %15326 = vset.pattern.permute.xlu1 %v15423_v14  ;;  %v9487_v10 = vld [vmem:[%s15535_s24 + $0x27] sm:$0xff]  ;;  %v9505_v14 = vld [vmem:[%s15535_s24 + $0xb7] sm:$0xff] }
 0x384   : > { %218 = vperm.xlu1 %15326, %v200_v11   ;;  %v9518_v11 = vld [vmem:[%s15535_s24 + $0x11f] sm:$0xff] }
 0x385   : > { %14476 = vmatpush3.bf16.xpose.msk.msra.mxu0 %vm15539_vm1, %v14474_v31 }
 0x386   : > { %14524 = vmatpush3.bf16.xpose.msk.msra.mxu1 %vm15539_vm1, %v14522_v32  ;;  %14479 = vmatprep.subr.msk.bf16.mxu0 %vm15539_vm1, %v14477_v33  ;;  %v14555_v32 = vpack.c.bf16 %v8894_v27, %v8893_v26  ;;  %v14603_v33 = vpack.c.bf16 %v8926_v29, %v8925_v28  ;;  %v202_v26 = vld [vmem:[%s18704_s2 + $0x20] sm:$0xff]  ;;  %v203_v28 = vld [vmem:[%s18704_s2 + $0x28] sm:$0xff] }
 0x387   : > { %14527 = vmatprep.subr.msk.bf16.mxu1 %vm15539_vm1, %v14525_v35  ;;  %v11397_v35 = vld [vmem:[%s18703_s1 + $0x358] sm:$0xff] }
 0x38d   : > { %14482 = vmatpush3.bf16.xpose.msk.msra.mxu0 %vm15539_vm1, %v14480_v43  ;;  %v8928_v43 = vld [vmem:[%s15535_s24 + $0x1c6] sm:$0xff] }
 0x38e   : > { %14530 = vmatpush3.bf16.xpose.msk.msra.mxu1 %vm15539_vm1, %v14528_v44  ;;  %14485 = vmatprep.subr.msk.bf16.mxu0 %vm15539_vm1, %v14483_v45  ;;  %v14558_v44 = vpack.c.bf16 %v8878_v37, %v8877_v36  ;;  %v14606_v45 = vpack.c.bf16 %v8910_v39, %v8909_v34  ;;  %v14609_v47 = vpack.c.bf16 %v8928_v43, %v8927_v42  ;;  %v8886_v36 = vld [vmem:[%s15535_s24 + $0x76] sm:$0xff]  ;;  %v8917_v37 = vld [vmem:[%s15535_s24 + $0x16e] sm:$0xff]  ;;  %v8904_v39 = vld [vmem:[%s15535_s24 + $0x106] sm:$0xff] }
 0x38f   : > { %14533 = vmatprep.subr.msk.bf16.mxu1 %vm15539_vm1, %v14531_v46  ;;  %v14561_v46 = vpack.c.bf16 %v8896_v41, %v8895_v40  ;;  %v8918_v34 = vld [vmem:[%s15535_s24 + $0x176] sm:$0xff]  ;;  %v8935_v40 = vld [vmem:[%s15535_s24 + $0x1fe] sm:$0xff]  ;;  %v8936_v41 = vld [vmem:[%s15535_s24 + $0x206] sm:$0xff] }
 0x390   : > { %v14630_v43 = vpack.c.bf16 %v8918_v34, %v8917_v37  ;;  %v9490_v37 = vld [vmem:[%s15535_s24 + $0x3f] sm:$0xff]  ;;  %v9491_v34 = vld [vmem:[%s15535_s24 + $0x47] sm:$0xff] }
 0x395   : > { %14488 = vmatpush3.bf16.xpose.msk.msra.mxu0 %vm15539_vm1, %v14486_v55  ;;  %v8898_v55 = vld [vmem:[%s15535_s24 + $0xd6] sm:$0xff] }
 0x396   : > { %14536 = vmatpush3.bf16.xpose.msk.msra.mxu1 %vm15539_vm1, %v14534_v56  ;;  %14491 = vmatprep.subr.msk.bf16.mxu0 %vm15539_vm1, %v14489_v57  ;;  %v8929_v56 = vld [vmem:[%s15535_s24 + $0x1ce] sm:$0xff]  ;;  %v8930_v57 = vld [vmem:[%s15535_s24 + $0x1d6] sm:$0xff]  ;;  %v14567_v59 = vpack.c.bf16 %v8898_v55, %v8897_v54 }
 0x397   : > { %14539 = vmatprep.subr.msk.bf16.mxu1 %vm15539_vm1, %v14537_v58  ;;  %v14564_v58 = vpack.c.bf16 %v8880_v50, %v8879_v49  ;;  %v14615_v60 = vpack.c.bf16 %v8930_v57, %v8929_v56  ;;  %v8920_v49 = vld [vmem:[%s15535_s24 + $0x186] sm:$0xff]  ;;  %v9500_v50 = vld [vmem:[%s15535_s24 + $0x8f] sm:$0xff] }
 0x398   : > { %v14639_v56 = vpack.c.bf16 %v9501_v51, %v9500_v50  ;;  %v9492_v50 = vld [vmem:[%s15535_s24 + $0x4f] sm:$0xff]  ;;  %v9493_v51 = vld [vmem:[%s15535_s24 + $0x57] sm:$0xff] }
 0x39d   : > { %14494 = vmatpush3.bf16.xpose.msk.msra.mxu0 %vm15539_vm1, %v14492_v4  ;;  %v8914_v4 = vld [vmem:[%s15535_s24 + $0x156] sm:$0xff] }
 0x39e   : > { %14542 = vmatpush3.bf16.xpose.msk.msra.mxu1 %vm15539_vm1, %v14540_v5  ;;  %14545 = vmatprep.subr.msk.bf16.mxu0 %vm15539_vm1, %v14543_v6  ;;  %v8899_v5 = vld [vmem:[%s15535_s24 + $0xde] sm:$0xff]  ;;  %v8900_v6 = vld [vmem:[%s15535_s24 + $0xe6] sm:$0xff]  ;;  %v14618_v12 = vpack.c.bf16 %v8914_v4, %v8913_v2 }
 0x39f   : > { %14593 = vmatprep.subr.msk.bf16.mxu1 %vm15539_vm1, %v14591_v7  ;;  %v8931_v7 = vld [vmem:[%s15535_s24 + $0x1de] sm:$0xff]  ;;  %v14573_v13 = vpack.c.bf16 %v8900_v6, %v8899_v5  ;;  %v9535_v2 = vld [vmem:[%s15535_s24 + $0x1a7] sm:$0xff] }
 0x3a0   : > { %v14621_v15 = vpack.c.bf16 %v8932_v8, %v8931_v7  ;;  %v14693_v7 = vpack.c.bf16 %v9535_v2, %v9534_v63  ;;  %v11483_v8 = vld [vmem:[%s18703_s1 + $0x388] sm:$0xff]  ;;  %v9526_v2 = vld [vmem:[%s15535_s24 + $0x15f] sm:$0xff] }
 0x3a1   : > { %v9495_v63 = vld [vmem:[%s15535_s24 + $0x67] sm:$0xff] }
 0x3a4   : > { %12944 = vmatmul.mubr.msk.f32.vlgmr.msra.gmra.mrb[0].mxu0 %vm382_vm0, %v18076_v25 }
 0x3a5   : > { %12992 = vmatmul.mubr.msk.f32.vlgmr.msra.gmra.mrb[0].mxu1 %vm382_vm0, %v18076_v25  ;;  %14548 = vmatpush3.bf16.xpose.msk.msra.mxu0 %vm15539_vm1, %v14546_v16  ;;  %v8908_v25 = vld [vmem:[%s15535_s24 + $0x126] sm:$0xff] }
 0x3a6   : > { %14596 = vmatpush3.bf16.xpose.msk.msra.mxu1 %vm15539_vm1, %v14594_v17  ;;  %14551 = vmatprep.subr.msk.bf16.mxu0 %vm15539_vm1, %v14549_v18  ;;  %v14600_v31 = vpack.c.bf16 %v8908_v25, %v8907_v23  ;;  %v199_v16 = vld [vmem:[%s18704_s2 + $0x8] sm:$0xff]  ;;  %v201_v17 = vld [vmem:[%s18704_s2 + $0x18] sm:$0xff] }
 0x3a7   : > { %14599 = vmatprep.subr.msk.bf16.mxu1 %vm15539_vm1, %v14597_v19  ;;  %12945 = vmatprep.mubr.msk.f32.mxu0 %vm382_vm0, %v11395_v20  ;;  %v8883_v18 = vld [vmem:[%s15535_s24 + $0x5e] sm:$0xff]  ;;  %v8884_v19 = vld [vmem:[%s15535_s24 + $0x66] sm:$0xff]  ;;  %v8902_v23 = vld [vmem:[%s15535_s24 + $0xf6] sm:$0xff] }
 0x3a8   : > { %12993 = vmatprep.mubr.msk.f32.mxu1 %vm382_vm0, %v11395_v20  ;;  %12946 = vmatmul.mubr.msk.f32.gmra.mrb[2].mxu0 %vm382_vm0, %v11395_v20  ;;  %v8934_v25 = vld [vmem:[%s15535_s24 + $0x1f6] sm:$0xff]  ;;  %v14576_v27 = vpack.c.bf16 %v8884_v19, %v8883_v18 }
 0x3a9   : > { %12994 = vmatmul.mubr.msk.f32.gmra.mrb[2].mxu1 %vm382_vm0, %v11395_v20  ;;  %12947 = vmatprep.mubr.msk.f32.mxu0 %vm382_vm0, %v11396_v24  ;;  %v8915_v20 = vld [vmem:[%s15535_s24 + $0x15e] sm:$0xff] }
 0x3aa   : > { %12995 = vmatprep.mubr.msk.f32.mxu1 %vm382_vm0, %v11396_v24  ;;  %213 = vperm.xlu0 %15325, %v199_v16   ;;  %v14624_v29 = vpack.c.bf16 %v8916_v21, %v8915_v20  ;;  %v9537_v16 = vld [vmem:[%s15535_s24 + $0x1b7] sm:$0xff] }
 0x3ab   : > { %223 = vperm.xlu1 %15326, %v201_v17   ;;  %v11485_v21 = vld [vmem:[%s18703_s1 + $0x398] sm:$0xff] }
 0x3ac   : > { %12948 = vmatmul.mubr.msk.f32.gmra.mrb[4].mxu0 %vm382_vm0, %v11396_v24 }
 0x3ad   : > { %14554 = vmatpush3.bf16.xpose.msk.msra.mxu0 %vm15539_vm1, %v14552_v30  ;;  %12996 = vmatmul.mubr.msk.f32.gmra.mrb[4].mxu1 %vm382_vm0, %v11396_v24  ;;  %v8933_v24 = vld [vmem:[%s15535_s24 + $0x1ee] sm:$0xff]  ;;  %v14579_v30 = vpack.c.bf16 %v8902_v23, %v8901_v22  ;;  %v9489_v23 = vld [vmem:[%s15535_s24 + $0x37] sm:$0xff] }
 0x3ae   : > { %14602 = vmatpush3.bf16.xpose.msk.msra.mxu1 %vm15539_vm1, %v14600_v31  ;;  %14557 = vmatprep.subr.msk.bf16.mxu0 %vm15539_vm1, %v14555_v32  ;;  %v14627_v31 = vpack.c.bf16 %v8934_v25, %v8933_v24  ;;  %v204_v32 = vld [vmem:[%s18704_s2 + $0x30] sm:$0xff]  ;;  %v11486_v25 = vld [vmem:[%s18703_s1 + $0x3a0] sm:$0xff] }
 0x3af   : > { %14605 = vmatprep.subr.msk.bf16.mxu1 %vm15539_vm1, %v14603_v33  ;;  %12949 = vmatprep.mubr.msk.f32.mxu0 %vm382_vm0, %v11397_v35  ;;  %v205_v33 = vld [vmem:[%s18704_s2 + $0x38] sm:$0xff]  ;;  %v9488_v22 = vld [vmem:[%s15535_s24 + $0x2f] sm:$0xff] }
 0x3b0   : > { %12997 = vmatprep.mubr.msk.f32.mxu1 %vm382_vm0, %v11397_v35  ;;  %12950 = vmatmul.mubr.msk.f32.gmra.mrb[6].mxu0 %vm382_vm0, %v11397_v35  ;;  %v9520_v24 = vld [vmem:[%s15535_s24 + $0x12f] sm:$0xff] }
 0x3b1   : > { %12998 = vmatmul.mubr.msk.f32.gmra.mrb[6].mxu1 %vm382_vm0, %v11397_v35  ;;  %12951 = vmatprep.mubr.msk.f32.mxu0 %vm382_vm0, %v11398_v38  ;;  %v8885_v35 = vld [vmem:[%s15535_s24 + $0x6e] sm:$0xff] }
 0x3b2   : > { %12999 = vmatprep.mubr.msk.f32.mxu1 %vm382_vm0, %v11398_v38  ;;  %228 = vperm.xlu0 %15325, %v202_v26   ;;  %v14582_v42 = vpack.c.bf16 %v8886_v36, %v8885_v35  ;;  %v9521_v26 = vld [vmem:[%s15535_s24 + $0x137] sm:$0xff]  ;;  %v11487_v36 = vld [vmem:[%s18703_s1 + $0x3a8] sm:$0xff] }
 0x3b3   : > { %233 = vperm.xlu1 %15326, %v203_v28   ;;  %v9507_v28 = vld [vmem:[%s15535_s24 + $0xc7] sm:$0xff] }
 0x3b4   : > { %12952 = vmatmul.mubr.msk.f32.gmra.mrb[8].mxu0 %vm382_vm0, %v11398_v38 }
 0x3b5   : > { %14560 = vmatpush3.bf16.xpose.msk.msra.mxu0 %vm15539_vm1, %v14558_v44  ;;  %13000 = vmatmul.mubr.msk.f32.gmra.mrb[8].mxu1 %vm382_vm0, %v11398_v38  ;;  %v8903_v38 = vld [vmem:[%s15535_s24 + $0xfe] sm:$0xff] }
 0x3b6   : > { %14608 = vmatpush3.bf16.xpose.msk.msra.mxu1 %vm15539_vm1, %v14606_v45  ;;  %14563 = vmatprep.subr.msk.bf16.mxu0 %vm15539_vm1, %v14561_v46  ;;  %v14585_v44 = vpack.c.bf16 %v8904_v39, %v8903_v38  ;;  %v14633_v45 = vpack.c.bf16 %v8936_v41, %v8935_v40  ;;  %v8887_v46 = vld [vmem:[%s15535_s24 + $0x7e] sm:$0xff]  ;;  %v11488_v39 = vld [vmem:[%s18703_s1 + $0x3b0] sm:$0xff]  ;;  %v9523_v40 = vld [vmem:[%s15535_s24 + $0x147] sm:$0xff] }
 0x3b7   : > { %14611 = vmatprep.subr.msk.bf16.mxu1 %vm15539_vm1, %v14609_v47  ;;  %12953 = vmatprep.mubr.msk.f32.mxu0 %vm382_vm0, %v11399_v48  ;;  %v8888_v47 = vld [vmem:[%s15535_s24 + $0x86] sm:$0xff]  ;;  %v9508_v41 = vld [vmem:[%s15535_s24 + $0xcf] sm:$0xff] }
 0x3b8   : > { %13001 = vmatprep.mubr.msk.f32.mxu1 %vm382_vm0, %v11399_v48  ;;  %12954 = vmatmul.mubr.msk.f32.gmra.mrb[10].mxu0 %vm382_vm0, %v11399_v48  ;;  %v14588_v54 = vpack.c.bf16 %v8888_v47, %v8887_v46  ;;  %v9522_v38 = vld [vmem:[%s15535_s24 + $0x13f] sm:$0xff] }
 0x3b9   : > { %13002 = vmatmul.mubr.msk.f32.gmra.mrb[10].mxu1 %vm382_vm0, %v11399_v48  ;;  %12955 = vmatprep.mubr.msk.f32.mxu0 %vm382_vm0, %v11400_v52  ;;  %v8919_v48 = vld [vmem:[%s15535_s24 + $0x17e] sm:$0xff]  ;;  %v14708_v46 = vpack.c.bf16 %v9523_v40, %v9522_v38 }
 0x3ba   : > { %13003 = vmatprep.mubr.msk.f32.mxu1 %vm382_vm0, %v11400_v52  ;;  %238 = vperm.xlu0 %15325, %v204_v32   ;;  %v14636_v55 = vpack.c.bf16 %v8920_v49, %v8919_v48  ;;  %v14702_v32 = vpack.c.bf16 %v9521_v26, %v9520_v24  ;;  %v11489_v49 = vld [vmem:[%s18703_s1 + $0x3b8] sm:$0xff] }
 0x3bb   : > { %243 = vperm.xlu1 %15326, %v205_v33   ;;  %v9498_v24 = vld [vmem:[%s15535_s24 + $0x7f] sm:$0xff] }
 0x3bc   : > { %12956 = vmatmul.mubr.msk.f32.gmra.mrb[12].mxu0 %vm382_vm0, %v11400_v52  ;;  %v9530_v26 = vld [vmem:[%s15535_s24 + $0x17f] sm:$0xff] }
 0x3bd   : > { %14566 = vmatpush3.bf16.xpose.msk.msra.mxu0 %vm15539_vm1, %v14564_v58  ;;  %13004 = vmatmul.mubr.msk.f32.gmra.mrb[12].mxu1 %vm382_vm0, %v11400_v52  ;;  %v9532_v52 = vld [vmem:[%s15535_s24 + $0x18f] sm:$0xff] }
 0x3be   : > { %14614 = vmatpush3.bf16.xpose.msk.msra.mxu1 %vm15539_vm1, %v14612_v0  ;;  %14569 = vmatprep.subr.msk.bf16.mxu0 %vm15539_vm1, %v14567_v59  ;;  %v14687_v57 = vpack.c.bf16 %v9533_v53, %v9532_v52  ;;  %v9484_v58 = vld [vmem:[%s15535_s24 + $0xf] sm:$0xff]  ;;  %v9485_v0 = vld [vmem:[%s15535_s24 + $0x17] sm:$0xff]  ;;  %v18480_v53 = vld [vmem:[%s18703_s1 + $0x3c0] sm:$0xff] }
 0x3bf   : > { %14617 = vmatprep.subr.msk.bf16.mxu1 %vm15539_vm1, %v14615_v60  ;;  %12957 = vmatprep.mubr.msk.f32.mxu0 %vm382_vm0, %v11401_v61  ;;  %v9516_v59 = vld [vmem:[%s15535_s24 + $0x10f] sm:$0xff]  ;;  %v9517_v60 = vld [vmem:[%s15535_s24 + $0x117] sm:$0xff]  ;;  %v14642_v4 = vpack.c.bf16 %v9485_v0, %v9484_v58  ;;  %v9543_v58 = vld [vmem:[%s15535_s24 + $0x1e7] sm:$0xff]  ;;  %v14666_v0 = vpack.c.bf16 %v9493_v51, %v9492_v50 }
 0x3c0   : > { %13005 = vmatprep.mubr.msk.f32.mxu1 %vm382_vm0, %v11401_v61  ;;  %12958 = vmatmul.mubr.msk.f32.gmra.mrb[14].mxu0 %vm382_vm0, %v11401_v61  ;;  %v14690_v5 = vpack.c.bf16 %v9517_v60, %v9516_v59  ;;  %v9524_v52 = vld [vmem:[%s15535_s24 + $0x14f] sm:$0xff] }
 0x3c1   : > { %13006 = vmatmul.mubr.msk.f32.gmra.mrb[14].mxu1 %vm382_vm0, %v11401_v61  ;;  %13039 = vmatprep.mubr.msk.f32.mxu0 %vm382_vm0, %v18266_v3  ;;  %v9502_v61 = vld [vmem:[%s15535_s24 + $0x9f] sm:$0xff] }
 0x3c2   : > { %13087 = vmatprep.mubr.msk.f32.mxu1 %vm382_vm0, %v18266_v3  ;;  %v14645_v6 = vpack.c.bf16 %v9503_v62, %v9502_v61  ;;  %v9494_v62 = vld [vmem:[%s15535_s24 + $0x5f] sm:$0xff] }
 0x3c5   : > { %14572 = vmatpush3.bf16.xpose.msk.msra.mxu0 %vm15539_vm1, %v14570_v9  ;;  %v9486_v9 = vld [vmem:[%s15535_s24 + $0x1f] sm:$0xff] }
 0x3c6   : > { %14620 = vmatpush3.bf16.xpose.msk.msra.mxu1 %vm15539_vm1, %v14618_v12  ;;  %14575 = vmatprep.subr.msk.bf16.mxu0 %vm15539_vm1, %v14573_v13  ;;  %v11484_v12 = vld [vmem:[%s18703_s1 + $0x390] sm:$0xff]  ;;  %v14648_v17 = vpack.c.bf16 %v9487_v10, %v9486_v9  ;;  %v14672_v9 = vpack.c.bf16 %v9495_v63, %v9494_v62 }
 0x3c7   : > { %14623 = vmatprep.subr.msk.bf16.mxu1 %vm15539_vm1, %v14621_v15  ;;  %v9504_v13 = vld [vmem:[%s15535_s24 + $0xaf] sm:$0xff] }
 0x3c8   : > { %v9536_v15 = vld [vmem:[%s15535_s24 + $0x1af] sm:$0xff]  ;;  %v14651_v19 = vpack.c.bf16 %v9505_v14, %v9504_v13  ;;  %v9497_v13 = vld [vmem:[%s15535_s24 + $0x77] sm:$0xff] }
 0x3c9   : > { %v14699_v20 = vpack.c.bf16 %v9537_v16, %v9536_v15  ;;  %v9528_v14 = vld [vmem:[%s15535_s24 + $0x16f] sm:$0xff]  ;;  %v9529_v15 = vld [vmem:[%s15535_s24 + $0x177] sm:$0xff]  ;;  %v9514_v16 = vld [vmem:[%s15535_s24 + $0xff] sm:$0xff] }
 0x3cd   : > { %14578 = vmatpush3.bf16.xpose.msk.msra.mxu0 %vm15539_vm1, %v14576_v27  ;;  %v9506_v27 = vld [vmem:[%s15535_s24 + $0xbf] sm:$0xff] }
 0x3ce   : > { %14626 = vmatpush3.bf16.xpose.msk.msra.mxu1 %vm15539_vm1, %v14624_v29  ;;  %14581 = vmatprep.subr.msk.bf16.mxu0 %vm15539_vm1, %v14579_v30  ;;  %v9538_v29 = vld [vmem:[%s15535_s24 + $0x1bf] sm:$0xff]  ;;  %v9539_v30 = vld [vmem:[%s15535_s24 + $0x1c7] sm:$0xff]  ;;  %v14657_v33 = vpack.c.bf16 %v9507_v28, %v9506_v27 }
 0x3cf   : > { %14629 = vmatprep.subr.msk.bf16.mxu1 %vm15539_vm1, %v14627_v31  ;;  %v14654_v31 = vpack.c.bf16 %v9489_v23, %v9488_v22  ;;  %v14705_v35 = vpack.c.bf16 %v9539_v30, %v9538_v29  ;;  %v9531_v27 = vld [vmem:[%s15535_s24 + $0x187] sm:$0xff] }
 0x3d0   : > { %v14732_v29 = vpack.c.bf16 %v9531_v27, %v9530_v26  ;;  %v11571_v30 = vld [vmem:[%s18703_s1 + $0x3c8] sm:$0xff] }
 0x3d5   : > { %14584 = vmatpush3.bf16.xpose.msk.msra.mxu0 %vm15539_vm1, %v14582_v42  ;;  %v9509_v42 = vld [vmem:[%s15535_s24 + $0xd7] sm:$0xff] }
 0x3d6   : > { %14632 = vmatpush3.bf16.xpose.msk.msra.mxu1 %vm15539_vm1, %v14630_v43  ;;  %14587 = vmatprep.subr.msk.bf16.mxu0 %vm15539_vm1, %v14585_v44  ;;  %v9540_v43 = vld [vmem:[%s15535_s24 + $0x1cf] sm:$0xff]  ;;  %v9541_v44 = vld [vmem:[%s15535_s24 + $0x1d7] sm:$0xff]  ;;  %v14663_v47 = vpack.c.bf16 %v9509_v42, %v9508_v41 }
 0x3d7   : > { %14635 = vmatprep.subr.msk.bf16.mxu1 %vm15539_vm1, %v14633_v45  ;;  %v14660_v45 = vpack.c.bf16 %v9491_v34, %v9490_v37  ;;  %v14711_v48 = vpack.c.bf16 %v9541_v44, %v9540_v43 }
 0x3dd   : > { %14590 = vmatpush3.bf16.xpose.msk.msra.mxu0 %vm15539_vm1, %v14588_v54  ;;  %v9525_v54 = vld [vmem:[%s15535_s24 + $0x157] sm:$0xff] }
 0x3de   : > { %14638 = vmatpush3.bf16.xpose.msk.msra.mxu1 %vm15539_vm1, %v14636_v55  ;;  %14641 = vmatprep.subr.msk.bf16.mxu0 %vm15539_vm1, %v14639_v56  ;;  %v9510_v55 = vld [vmem:[%s15535_s24 + $0xdf] sm:$0xff]  ;;  %v9511_v56 = vld [vmem:[%s15535_s24 + $0xe7] sm:$0xff]  ;;  %v14714_v59 = vpack.c.bf16 %v9525_v54, %v9524_v52 }
 0x3df   : > { %14689 = vmatprep.subr.msk.bf16.mxu1 %vm15539_vm1, %v14687_v57  ;;  %v9542_v57 = vld [vmem:[%s15535_s24 + $0x1df] sm:$0xff]  ;;  %v14669_v60 = vpack.c.bf16 %v9511_v56, %v9510_v55 }
 0x3e0   : > { %v14717_v61 = vpack.c.bf16 %v9543_v58, %v9542_v57 }
 0x3e4   : > { %13040 = vmatmul.mubr.msk.f32.vlgmr.msra.gmra.mrb[0].mxu0 %vm382_vm0, %v18266_v3 }
 0x3e5   : > { %13088 = vmatmul.mubr.msk.f32.vlgmr.msra.gmra.mrb[0].mxu1 %vm382_vm0, %v18266_v3  ;;  %14644 = vmatpush3.bf16.xpose.msk.msra.mxu0 %vm15539_vm1, %v14642_v4  ;;  %v9519_v3 = vld [vmem:[%s15535_s24 + $0x127] sm:$0xff] }
 0x3e6   : > { %14692 = vmatpush3.bf16.xpose.msk.msra.mxu1 %vm15539_vm1, %v14690_v5  ;;  %14647 = vmatprep.subr.msk.bf16.mxu0 %vm15539_vm1, %v14645_v6  ;;  %v14696_v18 = vpack.c.bf16 %v9519_v3, %v9518_v11  ;;  %v9527_v4 = vld [vmem:[%s15535_s24 + $0x167] sm:$0xff]  ;;  %v9512_v5 = vld [vmem:[%s15535_s24 + $0xef] sm:$0xff]  ;;  %v9513_v6 = vld [vmem:[%s15535_s24 + $0xf7] sm:$0xff] }
 0x3e7   : > { %14695 = vmatprep.subr.msk.bf16.mxu1 %vm15539_vm1, %v14693_v7  ;;  %13041 = vmatprep.mubr.msk.f32.mxu0 %vm382_vm0, %v11483_v8  ;;  %v9544_v7 = vld [vmem:[%s15535_s24 + $0x1ef] sm:$0xff]  ;;  %v14720_v10 = vpack.c.bf16 %v9527_v4, %v9526_v2  ;;  %v14675_v11 = vpack.c.bf16 %v9513_v6, %v9512_v5 }
 0x3e8   : > { %13089 = vmatprep.mubr.msk.f32.mxu1 %vm382_vm0, %v11483_v8  ;;  %13042 = vmatmul.mubr.msk.f32.gmra.mrb[2].mxu0 %vm382_vm0, %v11483_v8  ;;  %v9496_v3 = vld [vmem:[%s15535_s24 + $0x6f] sm:$0xff] }
 0x3e9   : > { %13090 = vmatmul.mubr.msk.f32.gmra.mrb[2].mxu1 %vm382_vm0, %v11483_v8  ;;  %13043 = vmatprep.mubr.msk.f32.mxu0 %vm382_vm0, %v11484_v12  ;;  %v9545_v8 = vld [vmem:[%s15535_s24 + $0x1f7] sm:$0xff] }
 0x3ea   : > { %13091 = vmatprep.mubr.msk.f32.mxu1 %vm382_vm0, %v11484_v12 }
 0x3ec   : > { %13044 = vmatmul.mubr.msk.f32.gmra.mrb[4].mxu0 %vm382_vm0, %v11484_v12 }
 0x3ed   : > { %14650 = vmatpush3.bf16.xpose.msk.msra.mxu0 %vm15539_vm1, %v14648_v17  ;;  %13092 = vmatmul.mubr.msk.f32.gmra.mrb[4].mxu1 %vm382_vm0, %v11484_v12  ;;  %v14723_v12 = vpack.c.bf16 %v9545_v8, %v9544_v7  ;;  %v9515_v17 = vld [vmem:[%s15535_s24 + $0x107] sm:$0xff] }
 0x3ee   : > { %14698 = vmatpush3.bf16.xpose.msk.msra.mxu1 %vm15539_vm1, %v14696_v18  ;;  %14653 = vmatprep.subr.msk.bf16.mxu0 %vm15539_vm1, %v14651_v19  ;;  %v9546_v18 = vld [vmem:[%s15535_s24 + $0x1ff] sm:$0xff]  ;;  %v9547_v19 = vld [vmem:[%s15535_s24 + $0x207] sm:$0xff]  ;;  %v14681_v22 = vpack.c.bf16 %v9515_v17, %v9514_v16 }
 0x3ef   : > { %14701 = vmatprep.subr.msk.bf16.mxu1 %vm15539_vm1, %v14699_v20  ;;  %13045 = vmatprep.mubr.msk.f32.mxu0 %vm382_vm0, %v11485_v21  ;;  %v14678_v20 = vpack.c.bf16 %v9497_v13, %v9496_v3  ;;  %v14729_v23 = vpack.c.bf16 %v9547_v19, %v9546_v18 }
 0x3f0   : > { %13093 = vmatprep.mubr.msk.f32.mxu1 %vm382_vm0, %v11485_v21  ;;  %13046 = vmatmul.mubr.msk.f32.gmra.mrb[6].mxu0 %vm382_vm0, %v11485_v21 }
 0x3f1   : > { %13094 = vmatmul.mubr.msk.f32.gmra.mrb[6].mxu1 %vm382_vm0, %v11485_v21  ;;  %13047 = vmatprep.mubr.msk.f32.mxu0 %vm382_vm0, %v11486_v25  ;;  %v14726_v21 = vpack.c.bf16 %v9529_v15, %v9528_v14 }
 0x3f2   : > { %13095 = vmatprep.mubr.msk.f32.mxu1 %vm382_vm0, %v11486_v25 }
 0x3f4   : > { %13048 = vmatmul.mubr.msk.f32.gmra.mrb[8].mxu0 %vm382_vm0, %v11486_v25 }
 0x3f5   : > { %14656 = vmatpush3.bf16.xpose.msk.msra.mxu0 %vm15539_vm1, %v14654_v31  ;;  %13096 = vmatmul.mubr.msk.f32.gmra.mrb[8].mxu1 %vm382_vm0, %v11486_v25  ;;  %v9499_v25 = vld [vmem:[%s15535_s24 + $0x87] sm:$0xff]  ;;  %v11572_v31 = vld [vmem:[%s18703_s1 + $0x3d0] sm:$0xff]  ;;  %s18601_s24 = scalar_lea.vmem [#allocation3], %s10256_s11 }
 0x3f6   : > { %14704 = vmatpush3.bf16.xpose.msk.msra.mxu1 %vm15539_vm1, %v14702_v32  ;;  %14659 = vmatprep.subr.msk.bf16.mxu0 %vm15539_vm1, %v14657_v33  ;;  %v14684_v28 = vpack.c.bf16 %v9499_v25, %v9498_v24  ;;  %v11574_v32 = vld [vmem:[%s18703_s1 + $0x3e0] sm:$0xff]  ;;  %v11575_v33 = vld [vmem:[%s18703_s1 + $0x3e8] sm:$0xff]  ;;  %s10166_s27 = sshll.u32 %s18601_s24, 4  ;;  %s18642_s27 = int_to_ptr.vmem [resolvable:$true] %s10166_s27 }
 0x3f7   : > { %14707 = vmatprep.subr.msk.bf16.mxu1 %vm15539_vm1, %v14705_v35  ;;  %13049 = vmatprep.mubr.msk.f32.mxu0 %vm382_vm0, %v11487_v36  ;;  %v11576_v35 = vld [vmem:[%s18703_s1 + $0x3f0] sm:$0xff]  ;;  %s15327_s6 = scalar_lea.vmem %s18642_s27, 4096  ;;  %p15334_p4 = scmp.lt.s32.totalorder %s18642_s27, %s15332_s8 }
 0x3f8   : > { %13097 = vmatprep.mubr.msk.f32.mxu1 %vm382_vm0, %v11487_v36  ;;  %13050 = vmatmul.mubr.msk.f32.gmra.mrb[10].mxu0 %vm382_vm0, %v11487_v36  ;;  %p15328_p0 = scmp.ne.s32.totalorder %s18642_s27, %s15327_s6  ;;  %p15335_p5 = scmp.lt.s32.totalorder %s15333_s9, %s15327_s6 }
 0x3f9   : > { %13098 = vmatmul.mubr.msk.f32.gmra.mrb[10].mxu1 %vm382_vm0, %v11487_v36  ;;  %13051 = vmatprep.mubr.msk.f32.mxu0 %vm382_vm0, %v11488_v39  ;;  %v11577_v36 = vld [vmem:[%s18703_s1 + $0x3f8] sm:$0xff] }
 0x3fa   : > { %13099 = vmatprep.mubr.msk.f32.mxu1 %vm382_vm0, %v11488_v39  ;;  %p15329_p1 = pnand %p15328_p0, %p15499_p3  ;;  %p15336_p6 = por %p15335_p5, %p15334_p4 }
 0x3fc   : > { %13052 = vmatmul.mubr.msk.f32.gmra.mrb[12].mxu0 %vm382_vm0, %v11488_v39  ;;  %p15330_p2 = pneg %p15329_p1 }
 0x3fd   : > { %14662 = vmatpush3.bf16.xpose.msk.msra.mxu0 %vm15539_vm1, %v14660_v45  ;;  %13100 = vmatmul.mubr.msk.f32.gmra.mrb[12].mxu1 %vm382_vm0, %v11488_v39 }
 0x3fe   : > { %14710 = vmatpush3.bf16.xpose.msk.msra.mxu1 %vm15539_vm1, %v14708_v46  ;;  %14665 = vmatprep.subr.msk.bf16.mxu0 %vm15539_vm1, %v14663_v47  ;;  %p15337_p7 = pnand %p15336_p6, %p15330_p2 }
 0x3ff   : > { %14713 = vmatprep.subr.msk.bf16.mxu1 %vm15539_vm1, %v14711_v48  ;;  %13053 = vmatprep.mubr.msk.f32.mxu0 %vm382_vm0, %v11489_v49 }
 0x400   : > { %13101 = vmatprep.mubr.msk.f32.mxu1 %vm382_vm0, %v11489_v49  ;;  %13054 = vmatmul.mubr.msk.f32.gmra.mrb[14].mxu0 %vm382_vm0, %v11489_v49 }
 0x401   : > { %13102 = vmatmul.mubr.msk.f32.gmra.mrb[14].mxu1 %vm382_vm0, %v11489_v49  ;;  %13135 = vmatprep.mubr.msk.f32.mxu0 %vm382_vm0, %v18480_v53 }
 0x402   : > { %13183 = vmatprep.mubr.msk.f32.mxu1 %vm382_vm0, %v18480_v53  ;;  %v209_v37 = vpop.permute.xlu0 %208 }
 0x403   : > { %v219_v55 = vpop.permute.xlu1 %218 }
 0x405   : > { %14668 = vmatpush3.bf16.xpose.msk.msra.mxu0 %vm15539_vm1, %v14666_v0 }
 0x406   : > { %14716 = vmatpush3.bf16.xpose.msk.msra.mxu1 %vm15539_vm1, %v14714_v59  ;;  %14671 = vmatprep.subr.msk.bf16.mxu0 %vm15539_vm1, %v14669_v60 }
 0x407   : > { %14719 = vmatprep.subr.msk.bf16.mxu1 %vm15539_vm1, %v14717_v61 }
 0x40d   : > { %14674 = vmatpush3.bf16.xpose.msk.msra.mxu0 %vm15539_vm1, %v14672_v9 }
 0x40e   : > { %14722 = vmatpush3.bf16.xpose.msk.msra.mxu1 %vm15539_vm1, %v14720_v10  ;;  %14677 = vmatprep.subr.msk.bf16.mxu0 %vm15539_vm1, %v14675_v11 }
 0x40f   : > { %14725 = vmatprep.subr.msk.bf16.mxu1 %vm15539_vm1, %v14723_v12 }
 0x415   : > { %14680 = vmatpush3.bf16.xpose.msk.msra.mxu0 %vm15539_vm1, %v14678_v20 }
 0x416   : > { %14728 = vmatpush3.bf16.xpose.msk.msra.mxu1 %vm15539_vm1, %v14726_v21  ;;  %14683 = vmatprep.subr.msk.bf16.mxu0 %vm15539_vm1, %v14681_v22 }
 0x417   : > { %14731 = vmatprep.subr.msk.bf16.mxu1 %vm15539_vm1, %v14729_v23 }
 0x41d   : > { %14686 = vmatpush3.bf16.xpose.msk.msra.mxu0 %vm15539_vm1, %v14684_v28 }
 0x41e   : > { %14734 = vmatpush3.bf16.xpose.msk.msra.mxu1 %vm15539_vm1, %v14732_v29 }
 0x424   : > { %13136 = vmatmul.mubr.msk.f32.vlgmr.msra.gmra.mrb[0].mxu0 %vm382_vm0, %v18480_v53 }
 0x425   : > { %13184 = vmatmul.mubr.msk.f32.vlgmr.msra.gmra.mrb[0].mxu1 %vm382_vm0, %v18480_v53  ;;  %13137 = vmatprep.mubr.msk.f32.mxu0 %vm382_vm0, %v11571_v30 }
 0x426   : > { %13185 = vmatprep.mubr.msk.f32.mxu1 %vm382_vm0, %v11571_v30 }
 0x428   : > { %13138 = vmatmul.mubr.msk.f32.gmra.mrb[2].mxu0 %vm382_vm0, %v11571_v30 }
 0x429   : > { %13186 = vmatmul.mubr.msk.f32.gmra.mrb[2].mxu1 %vm382_vm0, %v11571_v30  ;;  %13139 = vmatprep.mubr.msk.f32.mxu0 %vm382_vm0, %v11572_v31  ;;  %v214_v44 = vpop.permute.xlu0 %213 }
 0x42a   : > { %13187 = vmatprep.mubr.msk.f32.mxu1 %vm382_vm0, %v11572_v31  ;;  %v224_v11 = vpop.permute.xlu1 %223 }
 0x42c   : > { %13140 = vmatmul.mubr.msk.f32.gmra.mrb[4].mxu0 %vm382_vm0, %v11572_v31 }
 0x42d   : > { %13188 = vmatmul.mubr.msk.f32.gmra.mrb[4].mxu1 %vm382_vm0, %v11572_v31  ;;  %13141 = vmatprep.mubr.msk.f32.mxu0 %vm382_vm0, %v11573_v1 }
 0x42e   : > { %13189 = vmatprep.mubr.msk.f32.mxu1 %vm382_vm0, %v11573_v1 }
 0x430   : > { %13142 = vmatmul.mubr.msk.f32.gmra.mrb[6].mxu0 %vm382_vm0, %v11573_v1 }
 0x431   : > { %13190 = vmatmul.mubr.msk.f32.gmra.mrb[6].mxu1 %vm382_vm0, %v11573_v1  ;;  %13143 = vmatprep.mubr.msk.f32.mxu0 %vm382_vm0, %v11574_v32  ;;  %v229_v23 = vpop.permute.xlu0 %228 }
 0x432   : > { %13191 = vmatprep.mubr.msk.f32.mxu1 %vm382_vm0, %v11574_v32 }
 0x434   : > { %13144 = vmatmul.mubr.msk.f32.gmra.mrb[8].mxu0 %vm382_vm0, %v11574_v32 }
 0x435   : > { %13192 = vmatmul.mubr.msk.f32.gmra.mrb[8].mxu1 %vm382_vm0, %v11574_v32  ;;  %13145 = vmatprep.mubr.msk.f32.mxu0 %vm382_vm0, %v11575_v33 }
 0x436   : > { %13193 = vmatprep.mubr.msk.f32.mxu1 %vm382_vm0, %v11575_v33 }
 0x438   : > { %13146 = vmatmul.mubr.msk.f32.gmra.mrb[10].mxu0 %vm382_vm0, %v11575_v33 }
 0x439   : > { %13194 = vmatmul.mubr.msk.f32.gmra.mrb[10].mxu1 %vm382_vm0, %v11575_v33  ;;  %13147 = vmatprep.mubr.msk.f32.mxu0 %vm382_vm0, %v11576_v35 }
 0x43a   : > { %13195 = vmatprep.mubr.msk.f32.mxu1 %vm382_vm0, %v11576_v35 }
 0x43c   : > { %13148 = vmatmul.mubr.msk.f32.gmra.mrb[12].mxu0 %vm382_vm0, %v11576_v35 }
 0x43d   : > { %13196 = vmatmul.mubr.msk.f32.gmra.mrb[12].mxu1 %vm382_vm0, %v11576_v35  ;;  %13149 = vmatprep.mubr.msk.f32.mxu0 %vm382_vm0, %v11577_v36  ;;  %v234_v35 = vpop.permute.xlu1 %233 }
 0x43e   : > { %13197 = vmatprep.mubr.msk.f32.mxu1 %vm382_vm0, %v11577_v36 }
 0x440   : > { %13150 = vmatmul.mubr.msk.f32.gmra.mrb[14].mxu0 %vm382_vm0, %v11577_v36 }
 0x441   : > { %13198 = vmatmul.mubr.msk.f32.gmra.mrb[14].mxu1 %vm382_vm0, %v11577_v36 }
 0x4f7   : > { %v9830_v34 = vpop.f32.mrb[0].mxu0 }
 0x4f8   : > { %v14735_v38 = vadd.f32 %v9830_v34, %v209_v37  ;;  %v9943_v39 = vpop.f32.mrb[0].mxu1  ;;  %v9832_v40 = vpop.f32.mrb[1].mxu0 }
 0x4f9   : > { %v14751_v41 = vadd.f32 %v9943_v39, %v209_v37  ;;  %v14736_v42 = vadd.f32 %v9832_v40, %v209_v37  ;;  %v9945_v43 = vpop.f32.mrb[1].mxu1 }
 0x4fa   : > { %v10086_v45 = vmax.f32 %v14735_v38, 0.0  ;;  %v14752_v46 = vadd.f32 %v9945_v43, %v209_v37 }
 0x4fb   : > { %v10088_v47 = vmax.f32 %v14751_v41, 0.0  ;;  %v10087_v48 = vmax.f32 %v14736_v42, 0.0  ;;  %v9836_v49 = vpop.f32.mrb[2].mxu0 }
 0x4fc   : > { %10118 = vst [vmem:[%s18601_s24] sm:$0xff] %v10086_v45  ;;  %v10089_v50 = vmax.f32 %v14752_v46, 0.0  ;;  %v14737_v51 = vadd.f32 %v9836_v49, %v214_v44  ;;  %v9949_v52 = vpop.f32.mrb[2].mxu1  ;;  %v9838_v53 = vpop.f32.mrb[3].mxu0 }
 0x4fd   : > { %10120 = vst [vmem:[%s18601_s24 + $0x10] sm:$0xff] %v10088_v47  ;;  %10119 = vst [vmem:[%s18601_s24 + $0x8] sm:$0xff] %v10087_v48  ;;  %v14753_v54 = vadd.f32 %v9949_v52, %v214_v44  ;;  %v14738_v56 = vadd.f32 %v9838_v53, %v214_v44  ;;  %v9951_v57 = vpop.f32.mrb[3].mxu1  ;;  %v239_v47 = vpop.permute.xlu0 %238 }
 0x4fe   : > { %10121 = vst [vmem:[%s18601_s24 + $0x18] sm:$0xff] %v10089_v50  ;;  %v10090_v58 = vmax.f32 %v14737_v51, 0.0  ;;  %v14754_v0 = vadd.f32 %v9951_v57, %v214_v44 }
 0x4ff   : > { %v10092_v59 = vmax.f32 %v14753_v54, 0.0  ;;  %v10091_v60 = vmax.f32 %v14738_v56, 0.0  ;;  %v9842_v61 = vpop.f32.mrb[4].mxu0 }
 0x500   : > { %10122 = vst [vmem:[%s18601_s24 + $0x20] sm:$0xff] %v10090_v58  ;;  %v10093_v62 = vmax.f32 %v14754_v0, 0.0  ;;  %v14739_v63 = vadd.f32 %v9842_v61, %v219_v55  ;;  %v9955_v2 = vpop.f32.mrb[4].mxu1  ;;  %v9844_v4 = vpop.f32.mrb[5].mxu0 }
 0x501   : > { %10124 = vst [vmem:[%s18601_s24 + $0x30] sm:$0xff] %v10092_v59  ;;  %10123 = vst [vmem:[%s18601_s24 + $0x28] sm:$0xff] %v10091_v60  ;;  %v14755_v5 = vadd.f32 %v9955_v2, %v219_v55  ;;  %v14740_v6 = vadd.f32 %v9844_v4, %v219_v55  ;;  %v9957_v7 = vpop.f32.mrb[5].mxu1  ;;  %v244_v59 = vpop.permute.xlu1 %243 }
 0x502   : > { %10125 = vst [vmem:[%s18601_s24 + $0x38] sm:$0xff] %v10093_v62  ;;  %v10094_v8 = vmax.f32 %v14739_v63, 0.0  ;;  %v14756_v9 = vadd.f32 %v9957_v7, %v219_v55 }
 0x503   : > { %v10096_v10 = vmax.f32 %v14755_v5, 0.0  ;;  %v10095_v12 = vmax.f32 %v14740_v6, 0.0  ;;  %v9848_v3 = vpop.f32.mrb[6].mxu0 }
 0x504   : > { %10126 = vst [vmem:[%s18601_s24 + $0x40] sm:$0xff] %v10094_v8  ;;  %v10097_v13 = vmax.f32 %v14756_v9, 0.0  ;;  %v14741_v14 = vadd.f32 %v9848_v3, %v224_v11  ;;  %v9961_v15 = vpop.f32.mrb[6].mxu1  ;;  %v9850_v16 = vpop.f32.mrb[7].mxu0 }
 0x505   : > { %10128 = vst [vmem:[%s18601_s24 + $0x50] sm:$0xff] %v10096_v10  ;;  %10127 = vst [vmem:[%s18601_s24 + $0x48] sm:$0xff] %v10095_v12  ;;  %v14757_v17 = vadd.f32 %v9961_v15, %v224_v11  ;;  %v14742_v18 = vadd.f32 %v9850_v16, %v224_v11  ;;  %v9963_v19 = vpop.f32.mrb[7].mxu1 }
 0x506   : > { %10129 = vst [vmem:[%s18601_s24 + $0x58] sm:$0xff] %v10097_v13  ;;  %v10098_v20 = vmax.f32 %v14741_v14, 0.0  ;;  %v14758_v21 = vadd.f32 %v9963_v19, %v224_v11 }
 0x507   : > { %v10100_v22 = vmax.f32 %v14757_v17, 0.0  ;;  %v10099_v24 = vmax.f32 %v14742_v18, 0.0  ;;  %v9854_v25 = vpop.f32.mrb[8].mxu0 }
 0x508   : > { %10130 = vst [vmem:[%s18601_s24 + $0x60] sm:$0xff] %v10098_v20  ;;  %v10101_v26 = vmax.f32 %v14758_v21, 0.0  ;;  %v14743_v27 = vadd.f32 %v9854_v25, %v229_v23  ;;  %v9967_v28 = vpop.f32.mrb[8].mxu1  ;;  %v9856_v29 = vpop.f32.mrb[9].mxu0 }
 0x509   : > { %10132 = vst [vmem:[%s18601_s24 + $0x70] sm:$0xff] %v10100_v22  ;;  %10131 = vst [vmem:[%s18601_s24 + $0x68] sm:$0xff] %v10099_v24  ;;  %v14759_v30 = vadd.f32 %v9967_v28, %v229_v23  ;;  %v14744_v31 = vadd.f32 %v9856_v29, %v229_v23  ;;  %v9969_v1 = vpop.f32.mrb[9].mxu1 }
 0x50a   : > { %10133 = vst [vmem:[%s18601_s24 + $0x78] sm:$0xff] %v10101_v26  ;;  %v10102_v32 = vmax.f32 %v14743_v27, 0.0  ;;  %v14760_v33 = vadd.f32 %v9969_v1, %v229_v23 }
 0x50b   : > { %v10104_v36 = vmax.f32 %v14759_v30, 0.0  ;;  %v10103_v37 = vmax.f32 %v14744_v31, 0.0  ;;  %v9860_v34 = vpop.f32.mrb[10].mxu0 }
 0x50c   : > { %10134 = vst [vmem:[%s18601_s24 + $0x80] sm:$0xff] %v10102_v32  ;;  %v10105_v38 = vmax.f32 %v14760_v33, 0.0  ;;  %v14745_v39 = vadd.f32 %v9860_v34, %v234_v35  ;;  %v9973_v40 = vpop.f32.mrb[10].mxu1  ;;  %v9862_v41 = vpop.f32.mrb[11].mxu0 }
 0x50d   : > { %10136 = vst [vmem:[%s18601_s24 + $0x90] sm:$0xff] %v10104_v36  ;;  %10135 = vst [vmem:[%s18601_s24 + $0x88] sm:$0xff] %v10103_v37  ;;  %v14761_v42 = vadd.f32 %v9973_v40, %v234_v35  ;;  %v14746_v43 = vadd.f32 %v9862_v41, %v234_v35  ;;  %v9975_v44 = vpop.f32.mrb[11].mxu1 }
 0x50e   : > { %10137 = vst [vmem:[%s18601_s24 + $0x98] sm:$0xff] %v10105_v38  ;;  %v10106_v45 = vmax.f32 %v14745_v39, 0.0  ;;  %v14762_v46 = vadd.f32 %v9975_v44, %v234_v35 }
 0x50f   : > { %v10108_v48 = vmax.f32 %v14761_v42, 0.0  ;;  %v10107_v49 = vmax.f32 %v14746_v43, 0.0  ;;  %v9866_v50 = vpop.f32.mrb[12].mxu0 }
 0x510   : > { %10138 = vst [vmem:[%s18601_s24 + $0xa0] sm:$0xff] %v10106_v45  ;;  %v10109_v51 = vmax.f32 %v14762_v46, 0.0  ;;  %v14747_v52 = vadd.f32 %v9866_v50, %v239_v47  ;;  %v9979_v53 = vpop.f32.mrb[12].mxu1  ;;  %v9868_v54 = vpop.f32.mrb[13].mxu0 }
 0x511   : > { %10140 = vst [vmem:[%s18601_s24 + $0xb0] sm:$0xff] %v10108_v48  ;;  %10139 = vst [vmem:[%s18601_s24 + $0xa8] sm:$0xff] %v10107_v49  ;;  %v14763_v55 = vadd.f32 %v9979_v53, %v239_v47  ;;  %v14748_v56 = vadd.f32 %v9868_v54, %v239_v47  ;;  %v9981_v57 = vpop.f32.mrb[13].mxu1 }
 0x512   : > { %10141 = vst [vmem:[%s18601_s24 + $0xb8] sm:$0xff] %v10109_v51  ;;  %v10110_v58 = vmax.f32 %v14747_v52, 0.0  ;;  %v14764_v0 = vadd.f32 %v9981_v57, %v239_v47 }
 0x513   : > { %v10112_v60 = vmax.f32 %v14763_v55, 0.0  ;;  %v10111_v61 = vmax.f32 %v14748_v56, 0.0  ;;  %v9872_v62 = vpop.f32.mrb[14].mxu0 }
 0x514   : > { %10142 = vst [vmem:[%s18601_s24 + $0xc0] sm:$0xff] %v10110_v58  ;;  %v10113_v63 = vmax.f32 %v14764_v0, 0.0  ;;  %v14749_v2 = vadd.f32 %v9872_v62, %v244_v59  ;;  %v9985_v4 = vpop.f32.mrb[14].mxu1  ;;  %v9874_v5 = vpop.f32.mrb[15].mxu0 }
 0x515   : > { %10144 = vst [vmem:[%s18601_s24 + $0xd0] sm:$0xff] %v10112_v60  ;;  %10143 = vst [vmem:[%s18601_s24 + $0xc8] sm:$0xff] %v10111_v61  ;;  %v14765_v6 = vadd.f32 %v9985_v4, %v244_v59  ;;  %v14750_v7 = vadd.f32 %v9874_v5, %v244_v59  ;;  %v9987_v8 = vpop.f32.mrb[15].mxu1 }
 0x516   : > { %10145 = vst [vmem:[%s18601_s24 + $0xd8] sm:$0xff] %v10113_v63  ;;  %v10114_v9 = vmax.f32 %v14749_v2, 0.0  ;;  %v14766_v10 = vadd.f32 %v9987_v8, %v244_v59 }
 0x517   : > { %v10116_v11 = vmax.f32 %v14765_v6, 0.0  ;;  %v10115_v12 = vmax.f32 %v14750_v7, 0.0 }
 0x518   : > { %10146 = vst [vmem:[%s18601_s24 + $0xe0] sm:$0xff] %v10114_v9  ;;  %v10117_v3 = vmax.f32 %v14766_v10, 0.0 }
 0x519   : > { %10148 = vst [vmem:[%s18601_s24 + $0xf0] sm:$0xff] %v10116_v11  ;;  %10147 = vst [vmem:[%s18601_s24 + $0xe8] sm:$0xff] %v10115_v12 }
 0x51a   : > { %10149 = vst [vmem:[%s18601_s24 + $0xf8] sm:$0xff] %v10117_v3 }
 0x51b   : > { %15340 = shalt.err (!%p15337_p7)
}
 0x51c   : > { %s15341_s10 = scalar_lea.hbm %s18640_s4, 4096  ;;  %s15345_s20 = scalar_lea.hbm %s18705_s3, 24576 }
 0x51d   : > { %p15342_p9 = scmp.ne.s32.totalorder %s18640_s4, %s15341_s10  ;;  %p15346_p12 = scmp.lt.u32.totalorder %s18640_s4, %s18705_s3 }
 0x51e   : > { %p15347_p13 = scmp.lt.u32.totalorder %s15345_s20, %s15341_s10  ;;  %p15349_p1 = scmp.lt.u32.totalorder %s15341_s10, %s18640_s4 }
 0x51f   : > { %p15343_p10 = pnand %p15342_p9, %p15499_p3 }
 0x520   : > { %p15348_p0 = por %p15347_p13, %p15346_p12 }
 0x521   : > { %p15344_p11 = pneg %p15343_p10 }
 0x522   : > { %p15350_p2 = por %p15349_p1, %p15348_p0 }
 0x524   : > { %p15351_p4 = pnand %p15350_p2, %p15344_p11 }
 0x526   : > { %15354 = shalt.err (!%p15351_p4)
}
 0x527   : > { %s15425_s15 = smov 512   ;;  %s15426_s28 = smov 1536  }
 0x528   : > { %s15427_s29 = smov 32  }
 0x529   : > { %15250 = dma.vmem_to_hbm [thread:$0]  (%p15499_p3), %s18642_s27, 4096, %s18640_s4, %s18650_s5, %s15425_s15, %s15426_s28, %s15427_s29  }
 0x52a PF: > { %p15256_p5 = scmp.ge.s32.totalorder %s15421_s19, 2  ;;  %s10181_s6 = sand.u32 1, %s15393_s12  }
 0x52b   : > { %s10182_s7 = scalar_lea.sflag [#allocation4], %s10181_s6 }
 0x52c   : > { %p15253_p6 = pnand %p15256_p5, %p15508_p8 }
 0x52e   : > { %15388 = dma.done.wait (!%p15253_p6), %s10182_s7, 4096  }
 0x52f   : > { %15390 = vsyncadd (!%p15253_p6), %s10182_s7, 4294963200  ;;  %s16_s19 = sadd.s32 1, %s15421_s19   ;;  %s18710_s12 = smov %s15397_s13 }
 0x530   : > { %p13_p7 = scmp.ge.s32.totalorder %s16_s19, 8   ;;  %s18711_s13 = smov %s15401_s14 }
 0x531   : > { %s18712_s14 = smov %s15517_s30  ;;  %s18713_s15 = smov %s15413_s17 }
 0x532   : > { %s18714_s16 = smov %s15417_s18  ;;  %s18715_s17 = smov %s18718_s22 }
 0x533   : > { %s18716_s18 = smov %s18722_s23  ;;  %15 = sbr.rel (!%p13_p7) target bundleno = 5 (0x5), region = 82 }
 0x53a   :  { %10187 = vsyncpa [#allocation4], 1 }
 0x53b   :  { %10189 = vsyncpa [#allocation4 + $0x1], 1 }

</bundles_post_ra>
